<compile_context>
chip_gen: v7x
topology: tpu7x:2x2x1
jax: 0.10.0
libtpu: 0.0.40
codegen_flags: <defaults>
</compile_context>

<pallas_src>
import functools

import numpy as np
import jax
import jax.numpy as jnp
from jax import lax
from jax.experimental import pallas as pl
from jax.experimental.pallas import tpu as pltpu

EPS = 1e-5


# ---------------------------------------------------------------------------
# generation-aware sizing helpers
# ---------------------------------------------------------------------------
def _vmem_limit_bytes():
    try:
        cap = int(pltpu.get_tpu_info().vmem_capacity_bytes)   # 64 MiB v7x, 128 MiB v5e/v6e
    except Exception:
        cap = 64 * 1024 * 1024
    return int(min(cap // 2, 64 * 1024 * 1024))


_VMEM_LIMIT = _vmem_limit_bytes()


def _cparams():
    return pltpu.CompilerParams(dimension_semantics=("parallel",),
                                vmem_limit_bytes=_VMEM_LIMIT)


def _auto_tile_rows(widest_lanes):
    # ~6 live f32 row blocks of the widest operand (double-buffered in/out +
    # temporaries) within 1/8 of the VMEM budget.
    budget = _VMEM_LIMIT // 8
    rows = budget // max(1, widest_lanes * 4 * 6)
    return int(max(64, min(4096, (rows // 8) * 8)))


def _tile_rows(total_rows, requested):
    if total_rows % 8:
        return total_rows
    t = max(8, min((int(requested) // 8) * 8, total_rows))
    while total_rows % t:
        t -= 8
    return t


# ---------------------------------------------------------------------------
# kernels
# ---------------------------------------------------------------------------
def _stats_kernel(x_ref, st_ref):
    """Per-tile (sum, sum of squares) over rows, per lane."""
    x = x_ref[...]
    st_ref[0:1, :] = jnp.sum(x, axis=0, keepdims=True)
    st_ref[1:2, :] = jnp.sum(x * x, axis=0, keepdims=True)


def _make_kernel_a(has_shortcut):
    """BN1-apply (+ shortcut-BN-apply) -> ReLU -> 1x1 conv(s); emits per-tile
    lane partials of y1 (for BN2)."""
    def kernel(x_ref, sc1_ref, sh1_ref, w1_ref, *rest):
        if has_shortcut:
            scs_ref, shs_ref, ws_ref, y1_ref, res_ref, st_ref = rest
        else:
            y1_ref, st_ref = rest
        x = x_ref[...]
        a1 = jnp.maximum(x * sc1_ref[...] + sh1_ref[...], 0.0)
        y1 = jnp.dot(a1.astype(jnp.bfloat16), w1_ref[...],
                     preferred_element_type=jnp.float32)
        y1_ref[...] = y1
        st_ref[0:1, :] = jnp.sum(y1, axis=0, keepdims=True)
        st_ref[1:2, :] = jnp.sum(y1 * y1, axis=0, keepdims=True)
        if has_shortcut:
            asc = jnp.maximum(x * scs_ref[...] + shs_ref[...], 0.0)
            res_ref[...] = jnp.dot(asc.astype(jnp.bfloat16), ws_ref[...],
                                   preferred_element_type=jnp.float32)
    return kernel


def _make_kernel_b(D, H, Lmid, halo):
    """BN2-apply -> ReLU -> 3x3x3 conv (padding=1) for one sample.

    The compact (D*H, W*cm) line block is copied once into a VMEM scratch with
    `halo` zero rows on each side; each (kd, kh) tap is then an in-bounds
    row-shifted slice feeding one banded (W*cm, W*cm) matmul.  D-boundary taps
    read the zeroed halo; H-boundary taps are masked; W boundaries are encoded
    in the band matrices.  Emits per-sample lane partials of y2 (for BN3).
    """
    DH = D * H

    def kernel(y1_ref, sc2_ref, sh2_ref, mlo_ref, mhi_ref, wb_ref,
               y2_ref, st_ref, pad_ref):
        a2 = jnp.maximum(y1_ref[...] * sc2_ref[...] + sh2_ref[...], 0.0)
        pad_ref[...] = jnp.zeros((DH + 2 * halo, Lmid), jnp.float32)
        pad_ref[halo:halo + DH, :] = a2
        acc = jnp.zeros((DH, Lmid), jnp.float32)
        for t in range(9):
            kd, kh = divmod(t, 3)
            shift = (kd - 1) * H + (kh - 1)
            xa = pad_ref[halo + shift:halo + shift + DH, :].astype(jnp.bfloat16)
            p = jnp.dot(xa, wb_ref[t * Lmid:(t + 1) * Lmid, :],
                        preferred_element_type=jnp.float32)
            if kh == 0:
                p = p * mlo_ref[...]
            elif kh == 2:
                p = p * mhi_ref[...]
            acc = acc + p
        y2_ref[...] = acc
        st_ref[0:1, :] = jnp.sum(acc, axis=0, keepdims=True)
        st_ref[1:2, :] = jnp.sum(acc * acc, axis=0, keepdims=True)
    return kernel


def _kernel_c(y2_ref, sc3_ref, sh3_ref, w3_ref, res_ref, o_ref, st_ref):
    """BN3-apply -> ReLU -> 1x1 conv -> + residual; emits lane partials of the
    block output (= next block's BN1 statistics)."""
    a3 = jnp.maximum(y2_ref[...] * sc3_ref[...] + sh3_ref[...], 0.0)
    out = jnp.dot(a3.astype(jnp.bfloat16), w3_ref[...],
                  preferred_element_type=jnp.float32) + res_ref[...]
    o_ref[...] = out
    st_ref[0:1, :] = jnp.sum(out, axis=0, keepdims=True)
    st_ref[1:2, :] = jnp.sum(out * out, axis=0, keepdims=True)


def _make_pool_kernel(D, H):
    """MaxPool3d(2, stride=2) for one sample, emitting only kept outputs."""
    def kernel(x_ref, dr_ref, se_ref, so_ref, o_ref):
        for do in range(D // 2):
            xs = x_ref[2 * do * H:(2 * do + 2) * H, :]
            m1 = jnp.maximum(xs[0:H, :], xs[H:2 * H, :])        # depth pair
            m2 = jnp.maximum(m1[0:H - 1, :], m1[1:H, :])        # height neighbours
            m2 = m2.astype(jnp.bfloat16)
            md = jnp.dot(dr_ref[...], m2,
                         preferred_element_type=jnp.float32)    # keep even h rows
            md = md.astype(jnp.bfloat16)
            e = jnp.dot(md, se_ref[...], preferred_element_type=jnp.float32)
            o = jnp.dot(md, so_ref[...], preferred_element_type=jnp.float32)
            o_ref[do * (H // 2):(do + 1) * (H // 2), :] = jnp.maximum(e, o)
    return kernel


# ---------------------------------------------------------------------------
# host-side glue (tiny per-channel XLA ops between kernels)
# ---------------------------------------------------------------------------
def _bn_scale_shift(lane_stats, W, C, count, gamma, beta):
    """Per-tile lane partials -> per-channel BN scale/shift, tiled back to the
    (1, W*C) lane layout.  Training-mode BN (biased variance, eps=1e-5)."""
    s = jnp.sum(lane_stats, axis=0).reshape(2, W, C).sum(axis=1)   # (2, C)
    mean = s[0] / count
    var = jnp.maximum(s[1] / count - mean * mean, 0.0)
    scale = gamma * lax.rsqrt(var + EPS)
    shift = beta - mean * scale
    return (jnp.tile(scale, W).reshape(1, W * C),
            jnp.tile(shift, W).reshape(1, W * C))


def _lane_stats(x2d, tile):
    rows, L = x2d.shape
    grid = rows // tile
    return pl.pallas_call(
        _stats_kernel,
        grid=(grid,),
        in_specs=[pl.BlockSpec((tile, L), lambda i: (i, 0))],
        out_specs=pl.BlockSpec((None, 2, L), lambda i: (i, 0, 0)),
        out_shape=jax.ShapeDtypeStruct((grid, 2, L), jnp.float32),
        compiler_params=_cparams(),
    )(x2d)


def _res_block(feat, in_stats, dims, blk, shortcut, tile):
    """ResBlock: (BN-ReLU-Conv1)(BN-ReLU-Conv3)(BN-ReLU-Conv1) + shortcut."""
    N, D, H, W = dims
    rows = N * D * H
    DH = D * H
    Lin, Lmid = blk['w1k'].shape
    Lout = blk['w3k'].shape[1]
    cin, cm, co = Lin // W, Lmid // W, Lout // W
    count = N * D * H * W

    def bcast(shape):
        return pl.BlockSpec(shape, lambda i: (0, 0))

    # ---- kernel A: BN1(+shortcut BN, shared batch stats) -> ReLU -> 1x1 ----
    sc1, sh1 = _bn_scale_shift(in_stats, W, cin, count, blk['g1'], blk['b1'])
    grid_a = rows // tile
    x_spec = pl.BlockSpec((tile, Lin), lambda i: (i, 0))
    y1_spec = pl.BlockSpec((tile, Lmid), lambda i: (i, 0))
    st_a_spec = pl.BlockSpec((None, 2, Lmid), lambda i: (i, 0, 0))

    if shortcut is not None:
        scs, shs = _bn_scale_shift(in_stats, W, cin, count,
                                   shortcut['g'], shortcut['b'])
        y1, res, y1_st = pl.pallas_call(
            _make_kernel_a(True),
            grid=(grid_a,),
            in_specs=[x_spec, bcast((1, Lin)), bcast((1, Lin)),
                      bcast((Lin, Lmid)),
                      bcast((1, Lin)), bcast((1, Lin)), bcast((Lin, Lout))],
            out_specs=(y1_spec,
                       pl.BlockSpec((tile, Lout), lambda i: (i, 0)),
                       st_a_spec),
            out_shape=(jax.ShapeDtypeStruct((rows, Lmid), jnp.float32),
                       jax.ShapeDtypeStruct((rows, Lout), jnp.float32),
                       jax.ShapeDtypeStruct((grid_a, 2, Lmid), jnp.float32)),
            compiler_params=_cparams(),
        )(feat, sc1, sh1, blk['w1k'], scs, shs, shortcut['wk'])
    else:
        assert Lin == Lout, "identity shortcut requires cin == co"
        y1, y1_st = pl.pallas_call(
            _make_kernel_a(False),
            grid=(grid_a,),
            in_specs=[x_spec, bcast((1, Lin)), bcast((1, Lin)),
                      bcast((Lin, Lmid))],
            out_specs=(y1_spec, st_a_spec),
            out_shape=(jax.ShapeDtypeStruct((rows, Lmid), jnp.float32),
                       jax.ShapeDtypeStruct((grid_a, 2, Lmid), jnp.float32)),
            compiler_params=_cparams(),
        )(feat, sc1, sh1, blk['w1k'])
        res = feat                                   # identity shortcut

    # ---- kernel B: BN2 -> ReLU -> 3x3x3 conv (per-sample grid) -------------
    sc2, sh2 = _bn_scale_shift(y1_st, W, cm, count, blk['g2'], blk['b2'])
    halo = ((H + 1 + 7) // 8) * 8
    idx = np.arange(DH)
    mlo = jnp.asarray(((idx % H) != 0).astype(np.float32).reshape(DH, 1))
    mhi = jnp.asarray(((idx % H) != (H - 1)).astype(np.float32).reshape(DH, 1))

    y2, y2_st = pl.pallas_call(
        _make_kernel_b(D, H, Lmid, halo),
        grid=(N,),
        in_specs=[pl.BlockSpec((DH, Lmid), lambda n: (n, 0)),
                  bcast((1, Lmid)), bcast((1, Lmid)),
                  bcast((DH, 1)), bcast((DH, 1)),
                  bcast((9 * Lmid, Lmid))],
        out_specs=(pl.BlockSpec((DH, Lmid), lambda n: (n, 0)),
                   pl.BlockSpec((None, 2, Lmid), lambda n: (n, 0, 0))),
        out_shape=(jax.ShapeDtypeStruct((rows, Lmid), jnp.float32),
                   jax.ShapeDtypeStruct((N, 2, Lmid), jnp.float32)),
        scratch_shapes=[pltpu.VMEM((DH + 2 * halo, Lmid), jnp.float32)],
        compiler_params=_cparams(),
    )(y1, sc2, sh2, mlo, mhi, blk['wband'])
    # TODO(synk): at production feature-map sizes kernel B should also tile over
    # depth slabs (halo DMA) and keep bf16 intermediates on v6e/v7x.

    # ---- kernel C: BN3 -> ReLU -> 1x1 conv -> + residual -------------------
    sc3, sh3 = _bn_scale_shift(y2_st, W, cm, count, blk['g3'], blk['b3'])
    grid_c = rows // tile
    out, out_st = pl.pallas_call(
        _kernel_c,
        grid=(grid_c,),
        in_specs=[pl.BlockSpec((tile, Lmid), lambda i: (i, 0)),
                  bcast((1, Lmid)), bcast((1, Lmid)),
                  bcast((Lmid, Lout)),
                  pl.BlockSpec((tile, Lout), lambda i: (i, 0))],
        out_specs=(pl.BlockSpec((tile, Lout), lambda i: (i, 0)),
                   pl.BlockSpec((None, 2, Lout), lambda i: (i, 0, 0))),
        out_shape=(jax.ShapeDtypeStruct((rows, Lout), jnp.float32),
                   jax.ShapeDtypeStruct((grid_c, 2, Lout), jnp.float32)),
        compiler_params=_cparams(),
    )(y2, sc3, sh3, blk['w3k'], res)

    return out, out_st


def _maxpool(feat, dims):
    """MaxPool3d(kernel=2, stride=2) over the line-layout feature map."""
    N, D, H, W = dims
    Lout = feat.shape[1]
    co = Lout // W
    half = (W // 2) * co
    orow = (D // 2) * (H // 2)
    assert orow % 8 == 0 or N == 1, "pool output tile must be sublane aligned"

    se = np.zeros((Lout, half), np.float32)
    so = np.zeros((Lout, half), np.float32)
    for wo in range(W // 2):
        se[2 * wo * co:(2 * wo + 1) * co, wo * co:(wo + 1) * co] = np.eye(co)
        so[(2 * wo + 1) * co:(2 * wo + 2) * co, wo * co:(wo + 1) * co] = np.eye(co)
    drow = np.zeros((H // 2, H - 1), np.float32)
    drow[np.arange(H // 2), 2 * np.arange(H // 2)] = 1.0

    return pl.pallas_call(
        _make_pool_kernel(D, H),
        grid=(N,),
        in_specs=[pl.BlockSpec((D * H, Lout), lambda n: (n, 0)),
                  pl.BlockSpec((H // 2, H - 1), lambda n: (0, 0)),
                  pl.BlockSpec((Lout, half), lambda n: (0, 0)),
                  pl.BlockSpec((Lout, half), lambda n: (0, 0))],
        out_specs=pl.BlockSpec((orow, half), lambda n: (n, 0)),
        out_shape=jax.ShapeDtypeStruct((N * orow, half), jnp.float32),
        compiler_params=_cparams(),
    )(feat, jnp.asarray(drow, jnp.bfloat16), jnp.asarray(se, jnp.bfloat16),
      jnp.asarray(so, jnp.bfloat16))


@functools.partial(jax.jit, static_argnames=('tile_rows',))
def down_refinement_block(x_ncdhw, params, tile_rows=None):
    """DownRefinementBlock forward (PyTorch NCDHW in / NCDHW out)."""
    x = jnp.transpose(x_ncdhw, (0, 2, 3, 4, 1)).astype(jnp.float32)   # NDHWC
    N, D, H, W, C = x.shape
    assert D % 2 == 0 and H % 2 == 0 and W % 2 == 0, "MaxPool3d(2,2) needs even D/H/W"
    assert (D * H) % 8 == 0 or N == 1
    dims = (N, D, H, W)
    rows = N * D * H

    if tile_rows is None:
        widest = max(max(b['w1k'].shape[0], b['w3k'].shape[1])
                     for b in params['blocks'])
        tile_rows = _auto_tile_rows(widest)
    tile = _tile_rows(rows, tile_rows)

    feat = x.reshape(rows, W * C)                # line layout (N*D*H, W*C)
    stats = _lane_stats(feat, tile)              # BN1 stats of the block-0 input
    for i, blk in enumerate(params['blocks']):
        sc = params['shortcut'] if i == 0 else None
        feat, stats = _res_block(feat, stats, dims, blk, sc, tile)

    pooled = _maxpool(feat, dims)                # (N*(D/2)*(H/2), (W/2)*co)
    co = feat.shape[1] // W
    out = pooled.reshape(N, D // 2, H // 2, W // 2, co)
    return jnp.transpose(out, (0, 4, 1, 2, 3))   # -> NCDHW
# TODO(synk): BatchNorm running-stat (momentum) buffer updates are stateful
# side effects with no influence on the forward output; not modeled.


# ---------------------------------------------------------------------------
# parameters (raw torch-like init + one-time Pallas-ready preparation)
# ---------------------------------------------------------------------------
def init_params(key, in_c, out_c, num_blk):
    mid_c = out_c // 4
    keys = iter(jax.random.split(key, 64))

    def bn(c):
        g = 1.0 + 0.1 * jax.random.normal(next(keys), (c,), jnp.float32)
        b = 0.1 * jax.random.normal(next(keys), (c,), jnp.float32)
        return g, b

    def conv1(cin, cout):          # PyTorch (cout,cin,1,1,1) stored (cin,cout)
        return jax.random.normal(next(keys), (cin, cout), jnp.float32) / np.sqrt(cin)

    def conv3(cin, cout):          # PyTorch (cout,cin,3,3,3) stored (3,3,3,cin,cout)
        return (jax.random.normal(next(keys), (3, 3, 3, cin, cout), jnp.float32)
                / np.sqrt(27.0 * cin))

    shortcut = (*bn(in_c), conv1(in_c, out_c))
    blocks, c_in = [], in_c
    for _ in range(num_blk):
        blocks.append(dict(bn1=bn(c_in), w1=conv1(c_in, mid_c),
                           bn2=bn(mid_c), w2=conv3(mid_c, mid_c),
                           bn3=bn(mid_c), w3=conv1(mid_c, out_c)))
        c_in = out_c
    return dict(shortcut=shortcut, blocks=blocks)


def _band_matrices(w2, W):
    """(3,3,3,ci,co) conv weights -> 9 banded (W*ci, W*co) matrices, one per
    (kd, kh); the kw taps and the W-boundary truncation live inside the band."""
    ci, co = w2.shape[3], w2.shape[4]
    band = np.zeros((9, W * ci, W * co), np.float32)
    for kd in range(3):
        for kh in range(3):
            t = kd * 3 + kh
            for kw in range(3):
                for wo in range(W):
                    wi = wo + kw - 1
                    if 0 <= wi < W:
                        band[t, wi * ci:(wi + 1) * ci,
                             wo * co:(wo + 1) * co] = w2[kd, kh, kw]
    return band.reshape(9 * W * ci, W * co)


def prepare_params(raw, W):
    """Build all Pallas-ready weight constants ONCE (outside the jitted
    forward): kron'd 1x1 weights, banded 3x3x3 weights, BN affine params."""
    def kron_eye(w):               # (cin, cout) -> (W*cin, W*cout), bf16
        return jnp.asarray(np.kron(np.eye(W, dtype=np.float32), np.asarray(w)),
                           jnp.bfloat16)

    blocks = []
    for b in raw['blocks']:
        blocks.append(dict(
            g1=jnp.asarray(b['bn1'][0]), b1=jnp.asarray(b['bn1'][1]),
            g2=jnp.asarray(b['bn2'][0]), b2=jnp.asarray(b['bn2'][1]),
            g3=jnp.asarray(b['bn3'][0]), b3=jnp.asarray(b['bn3'][1]),
            w1k=kron_eye(b['w1']),
            wband=jnp.asarray(_band_matrices(np.asarray(b['w2']), W), jnp.bfloat16),
            w3k=kron_eye(b['w3']),
        ))
    g, bb, w = raw['shortcut']
    shortcut = dict(g=jnp.asarray(g), b=jnp.asarray(bb), wk=kron_eye(w))
    return dict(shortcut=shortcut, blocks=blocks)


# ---------------------------------------------------------------------------
# pure-JAX reference (for a loose numerical check; kernels use bf16 matmuls)
# ---------------------------------------------------------------------------
def reference_forward(x_ncdhw, raw):
    x = jnp.transpose(x_ncdhw, (0, 2, 3, 4, 1)).astype(jnp.float32)

    def bn(v, g, b):
        m = jnp.mean(v, axis=(0, 1, 2, 3))
        va = jnp.var(v, axis=(0, 1, 2, 3))
        return (v - m) * lax.rsqrt(va + EPS) * g + b

    def conv1(v, w):
        return jnp.einsum('ndhwc,co->ndhwo', v, w)

    def conv3(v, w):
        return lax.conv_general_dilated(
            v, w, (1, 1, 1), [(1, 1)] * 3,
            dimension_numbers=('NDHWC', 'DHWIO', 'NDHWC'))

    feat = x
    for i, blk in enumerate(raw['blocks']):
        y1 = conv1(jax.nn.relu(bn(feat, *blk['bn1'])), blk['w1'])
        y2 = conv3(jax.nn.relu(bn(y1, *blk['bn2'])), blk['w2'])
        y3 = conv1(jax.nn.relu(bn(y2, *blk['bn3'])), blk['w3'])
        if i == 0:
            g, b, w = raw['shortcut']
            res = conv1(jax.nn.relu(bn(feat, g, b)), w)
        else:
            res = feat
        feat = y3 + res
    N, D, H, W, C = feat.shape
    pooled = feat.reshape(N, D // 2, 2, H // 2, 2, W // 2, 2, C).max(axis=(2, 4, 6))
    return jnp.transpose(pooled, (0, 4, 1, 2, 3))


# ---------------------------------------------------------------------------
if __name__ == "__main__":
    key = jax.random.PRNGKey(0)
    kx, kp = jax.random.split(key)

    N, in_c, out_c, num_blk, S = 2, 4, 16, 2, 8
    x = jax.random.normal(kx, (N, in_c, S, S, S), jnp.float32)       # NCDHW
    raw = init_params(kp, in_c, out_c, num_blk)
    params = prepare_params(raw, W=S)

    # tile_rows=64 -> 2 grid steps for the row-tiled kernels at this test size
    # (None would auto-size from the VMEM budget; same code path).
    out = down_refinement_block(x, params, tile_rows=64)
    out = jax.block_until_ready(out)
    assert out.shape == (N, out_c, S // 2, S // 2, S // 2), out.shape

    ref = jax.block_until_ready(reference_forward(x, raw))
    np.testing.assert_allclose(np.asarray(out), np.asarray(ref),
                               rtol=0.1, atol=0.1)

    print("KERNEL_OK")
</pallas_src>

<mosaic_0001>
module attributes {stable_mosaic.version = 11 : i64} {
  func.func @_stats_kernel(%arg0: i32, %arg1: memref<64x32xf32, #tpu.memory_space<vmem>>, %arg2: memref<1x2x32xf32, #tpu.memory_space<vmem>>) attributes {dimension_semantics = [#tpu.dimension_semantics<parallel>], iteration_bounds = array<i64: 2>, scalar_prefetch = 0 : i64, scratch_operands = 0 : i64, tpu.core_type = #tpu.core_type<tc>, window_params = [{transform_indices = @transform_0, window_bounds = array<i64: 64, 32>}, {transform_indices = @transform_1, window_bounds = array<i64: 1, 2, 32>}]} {
    %c0 = arith.constant 0 : index
    %c0_0 = arith.constant 0 : index
    %0 = vector.load %arg1[%c0, %c0_0] : memref<64x32xf32, #tpu.memory_space<vmem>>, vector<64x32xf32>
    %cst = arith.constant dense<0.000000e+00> : vector<32xf32>
    %1 = vector.multi_reduction <add>, %0, %cst [0] : vector<64x32xf32> to vector<32xf32>
    %2 = vector.shape_cast %1 : vector<32xf32> to vector<1x32xf32>
    %c0_1 = arith.constant 0 : index
    %c0_2 = arith.constant 0 : index
    %c0_3 = arith.constant 0 : index
    %3 = vector.load %arg2[%c0_1, %c0_2, %c0_3] : memref<1x2x32xf32, #tpu.memory_space<vmem>>, vector<1x1x32xf32>
    %4 = vector.shape_cast %3 : vector<1x1x32xf32> to vector<1x32xf32>
    %5 = vector.shape_cast %2 : vector<1x32xf32> to vector<1x1x32xf32>
    tpu.vector_store %arg2[%c0_1, %c0_2, %c0_3], %5 {strides = array<i32>} : memref<1x2x32xf32, #tpu.memory_space<vmem>>, vector<1x1x32xf32>,
    %6 = arith.mulf %0, %0 : vector<64x32xf32>
    %cst_4 = arith.constant dense<0.000000e+00> : vector<32xf32>
    %7 = vector.multi_reduction <add>, %6, %cst_4 [0] : vector<64x32xf32> to vector<32xf32>
    %8 = vector.shape_cast %7 : vector<32xf32> to vector<1x32xf32>
    %c0_5 = arith.constant 0 : index
    %c1 = arith.constant 1 : index
    %c0_6 = arith.constant 0 : index
    %9 = vector.load %arg2[%c0_5, %c1, %c0_6] : memref<1x2x32xf32, #tpu.memory_space<vmem>>, vector<1x1x32xf32>
    %10 = vector.shape_cast %9 : vector<1x1x32xf32> to vector<1x32xf32>
    %11 = vector.shape_cast %8 : vector<1x32xf32> to vector<1x1x32xf32>
    tpu.vector_store %arg2[%c0_5, %c1, %c0_6], %11 {strides = array<i32>} : memref<1x2x32xf32, #tpu.memory_space<vmem>>, vector<1x1x32xf32>,
    return
  }
  func.func @transform_0(%arg0: i32) -> (i32, i32) {
    %c0_i32 = arith.constant 0 : i32
    %c0_i32_0 = arith.constant 0 : i32
    return %arg0, %c0_i32 : i32, i32
  }
  func.func @transform_1(%arg0: i32) -> (i32, i32, i32) {
    %c0_i32 = arith.constant 0 : i32
    %c0_i32_0 = arith.constant 0 : i32
    %c0_i32_1 = arith.constant 0 : i32
    return %arg0, %c0_i32, %c0_i32_0 : i32, i32, i32
  }
}

module attributes {stable_mosaic.version = 11 : i64} {
  func.func @kernel(%arg0: i32, %arg1: memref<64x32xf32, #tpu.memory_space<vmem>>, %arg2: memref<1x32xf32, #tpu.memory_space<vmem>>, %arg3: memref<1x32xf32, #tpu.memory_space<vmem>>, %arg4: memref<64x1xf32, #tpu.memory_space<vmem>>, %arg5: memref<64x1xf32, #tpu.memory_space<vmem>>, %arg6: memref<288x32xbf16, #tpu.memory_space<vmem>>, %arg7: memref<64x32xf32, #tpu.memory_space<vmem>>, %arg8: memref<1x2x32xf32, #tpu.memory_space<vmem>>, %arg9: memref<96x32xf32, #tpu.memory_space<vmem>>) attributes {dimension_semantics = [#tpu.dimension_semantics<parallel>], iteration_bounds = array<i64: 2>, scalar_prefetch = 0 : i64, scratch_operands = 1 : i64, tpu.core_type = #tpu.core_type<tc>, window_params = [{transform_indices = @transform_0, window_bounds = array<i64: 64, 32>}, {pipeline_mode = #tpu.pipeline_mode<synchronous>, transform_indices = @transform_1, window_bounds = array<i64: 1, 32>}, {pipeline_mode = #tpu.pipeline_mode<synchronous>, transform_indices = @transform_2, window_bounds = array<i64: 1, 32>}, {pipeline_mode = #tpu.pipeline_mode<synchronous>, transform_indices = @transform_3, window_bounds = array<i64: 64, 1>}, {pipeline_mode = #tpu.pipeline_mode<synchronous>, transform_indices = @transform_4, window_bounds = array<i64: 64, 1>}, {pipeline_mode = #tpu.pipeline_mode<synchronous>, transform_indices = @transform_5, window_bounds = array<i64: 288, 32>}, {transform_indices = @transform_6, window_bounds = array<i64: 64, 32>}, {transform_indices = @transform_7, window_bounds = array<i64: 1, 2, 32>}]} {
    %c0 = arith.constant 0 : index
    %c0_0 = arith.constant 0 : index
    %0 = vector.load %arg1[%c0, %c0_0] : memref<64x32xf32, #tpu.memory_space<vmem>>, vector<64x32xf32>
    %c0_1 = arith.constant 0 : index
    %c0_2 = arith.constant 0 : index
    %1 = vector.load %arg2[%c0_1, %c0_2] : memref<1x32xf32, #tpu.memory_space<vmem>>, vector<1x32xf32>
    %2 = vector.broadcast %1 : vector<1x32xf32> to vector<64x32xf32>
    %3 = arith.mulf %0, %2 : vector<64x32xf32>
    %c0_3 = arith.constant 0 : index
    %c0_4 = arith.constant 0 : index
    %4 = vector.load %arg3[%c0_3, %c0_4] : memref<1x32xf32, #tpu.memory_space<vmem>>, vector<1x32xf32>
    %5 = vector.broadcast %4 : vector<1x32xf32> to vector<64x32xf32>
    %6 = arith.addf %3, %5 : vector<64x32xf32>
    %cst = arith.constant 0.000000e+00 : f32
    %7 = vector.broadcast %cst : f32 to vector<64x32xf32>
    %8 = arith.maximumf %6, %7 : vector<64x32xf32>
    %cst_5 = arith.constant 0.000000e+00 : f32
    %9 = vector.broadcast %cst_5 : f32 to vector<96x32xf32>
    %c0_6 = arith.constant 0 : index
    %c0_7 = arith.constant 0 : index
    %10 = vector.load %arg9[%c0_6, %c0_7] : memref<96x32xf32, #tpu.memory_space<vmem>>, vector<96x32xf32>
    tpu.vector_store %arg9[%c0_6, %c0_7], %9 {strides = array<i32>} : memref<96x32xf32, #tpu.memory_space<vmem>>, vector<96x32xf32>,
    %c16 = arith.constant 16 : index
    %c0_8 = arith.constant 0 : index
    %11 = vector.load %arg9[%c16, %c0_8] : memref<96x32xf32, #tpu.memory_space<vmem>>, vector<64x32xf32>
    tpu.vector_store %arg9[%c16, %c0_8], %8 {strides = array<i32>} : memref<96x32xf32, #tpu.memory_space<vmem>>, vector<64x32xf32>,
    %cst_9 = arith.constant 0.000000e+00 : f32
    %12 = vector.broadcast %cst_9 : f32 to vector<64x32xf32>
    %c7 = arith.constant 7 : index
    %c0_10 = arith.constant 0 : index
    %13 = vector.load %arg9[%c7, %c0_10] : memref<96x32xf32, #tpu.memory_space<vmem>>, vector<64x32xf32>
    %14 = arith.truncf %13 : vector<64x32xf32> to vector<64x32xbf16>
    %c0_11 = arith.constant 0 : index
    %c0_12 = arith.constant 0 : index
    %15 = vector.load %arg6[%c0_11, %c0_12] : memref<288x32xbf16, #tpu.memory_space<vmem>>, vector<32x32xbf16>
    %cst_13 = arith.constant dense<0.000000e+00> : vector<64x32xf32>
    %16 = tpu.matmul %14, %15, %cst_13 {dimension_numbers = #tpu.dot_dimension_numbers<[1], [0], [0], [1], [0, 0, 1, 1], [], []>} : vector<64x32xbf16>, vector<32x32xbf16>, vector<64x32xf32> -> vector<64x32xf32>
    %c0_14 = arith.constant 0 : index
    %c0_15 = arith.constant 0 : index
    %17 = vector.load %arg4[%c0_14, %c0_15] : memref<64x1xf32, #tpu.memory_space<vmem>>, vector<64x1xf32>
    %18 = vector.broadcast %17 : vector<64x1xf32> to vector<64x32xf32>
    %19 = arith.mulf %16, %18 : vector<64x32xf32>
    %20 = arith.addf %12, %19 : vector<64x32xf32>
    %c8 = arith.constant 8 : index
    %c0_16 = arith.constant 0 : index
    %21 = vector.load %arg9[%c8, %c0_16] : memref<96x32xf32, #tpu.memory_space<vmem>>, vector<64x32xf32>
    %22 = arith.truncf %21 : vector<64x32xf32> to vector<64x32xbf16>
    %c32 = arith.constant 32 : index
    %c0_17 = arith.constant 0 : index
    %23 = vector.load %arg6[%c32, %c0_17] : memref<288x32xbf16, #tpu.memory_space<vmem>>, vector<32x32xbf16>
    %cst_18 = arith.constant dense<0.000000e+00> : vector<64x32xf32>
    %24 = tpu.matmul %22, %23, %cst_18 {dimension_numbers = #tpu.dot_dimension_numbers<[1], [0], [0], [1], [0, 0, 1, 1], [], []>} : vector<64x32xbf16>, vector<32x32xbf16>, vector<64x32xf32> -> vector<64x32xf32>
    %25 = arith.addf %20, %24 : vector<64x32xf32>
    %c9 = arith.constant 9 : index
    %c0_19 = arith.constant 0 : index
    %26 = vector.load %arg9[%c9, %c0_19] : memref<96x32xf32, #tpu.memory_space<vmem>>, vector<64x32xf32>
    %27 = arith.truncf %26 : vector<64x32xf32> to vector<64x32xbf16>
    %c64 = arith.constant 64 : index
    %c0_20 = arith.constant 0 : index
    %28 = vector.load %arg6[%c64, %c0_20] : memref<288x32xbf16, #tpu.memory_space<vmem>>, vector<32x32xbf16>
    %cst_21 = arith.constant dense<0.000000e+00> : vector<64x32xf32>
    %29 = tpu.matmul %27, %28, %cst_21 {dimension_numbers = #tpu.dot_dimension_numbers<[1], [0], [0], [1], [0, 0, 1, 1], [], []>} : vector<64x32xbf16>, vector<32x32xbf16>, vector<64x32xf32> -> vector<64x32xf32>
    %c0_22 = arith.constant 0 : index
    %c0_23 = arith.constant 0 : index
    %30 = vector.load %arg5[%c0_22, %c0_23] : memref<64x1xf32, #tpu.memory_space<vmem>>, vector<64x1xf32>
    %31 = vector.broadcast %30 : vector<64x1xf32> to vector<64x32xf32>
    %32 = arith.mulf %29, %31 : vector<64x32xf32>
    %33 = arith.addf %25, %32 : vector<64x32xf32>
    %c15 = arith.constant 15 : index
    %c0_24 = arith.constant 0 : index
    %34 = vector.load %arg9[%c15, %c0_24] : memref<96x32xf32, #tpu.memory_space<vmem>>, vector<64x32xf32>
    %35 = arith.truncf %34 : vector<64x32xf32> to vector<64x32xbf16>
    %c96 = arith.constant 96 : index
    %c0_25 = arith.constant 0 : index
    %36 = vector.load %arg6[%c96, %c0_25] : memref<288x32xbf16, #tpu.memory_space<vmem>>, vector<32x32xbf16>
    %cst_26 = arith.constant dense<0.000000e+00> : vector<64x32xf32>
    %37 = tpu.matmul %35, %36, %cst_26 {dimension_numbers = #tpu.dot_dimension_numbers<[1], [0], [0], [1], [0, 0, 1, 1], [], []>} : vector<64x32xbf16>, vector<32x32xbf16>, vector<64x32xf32> -> vector<64x32xf32>
    %c0_27 = arith.constant 0 : index
    %c0_28 = arith.constant 0 : index
    %38 = vector.load %arg4[%c0_27, %c0_28] : memref<64x1xf32, #tpu.memory_space<vmem>>, vector<64x1xf32>
    %39 = vector.broadcast %38 : vector<64x1xf32> to vector<64x32xf32>
    %40 = arith.mulf %37, %39 : vector<64x32xf32>
    %41 = arith.addf %33, %40 : vector<64x32xf32>
    %c16_29 = arith.constant 16 : index
    %c0_30 = arith.constant 0 : index
    %42 = vector.load %arg9[%c16_29, %c0_30] : memref<96x32xf32, #tpu.memory_space<vmem>>, vector<64x32xf32>
    %43 = arith.truncf %42 : vector<64x32xf32> to vector<64x32xbf16>
    %c128 = arith.constant 128 : index
    %c0_31 = arith.constant 0 : index
    %44 = vector.load %arg6[%c128, %c0_31] : memref<288x32xbf16, #tpu.memory_space<vmem>>, vector<32x32xbf16>
    %cst_32 = arith.constant dense<0.000000e+00> : vector<64x32xf32>
    %45 = tpu.matmul %43, %44, %cst_32 {dimension_numbers = #tpu.dot_dimension_numbers<[1], [0], [0], [1], [0, 0, 1, 1], [], []>} : vector<64x32xbf16>, vector<32x32xbf16>, vector<64x32xf32> -> vector<64x32xf32>
    %46 = arith.addf %41, %45 : vector<64x32xf32>
    %c17 = arith.constant 17 : index
    %c0_33 = arith.constant 0 : index
    %47 = vector.load %arg9[%c17, %c0_33] : memref<96x32xf32, #tpu.memory_space<vmem>>, vector<64x32xf32>
    %48 = arith.truncf %47 : vector<64x32xf32> to vector<64x32xbf16>
    %c160 = arith.constant 160 : index
    %c0_34 = arith.constant 0 : index
    %49 = vector.load %arg6[%c160, %c0_34] : memref<288x32xbf16, #tpu.memory_space<vmem>>, vector<32x32xbf16>
    %cst_35 = arith.constant dense<0.000000e+00> : vector<64x32xf32>
    %50 = tpu.matmul %48, %49, %cst_35 {dimension_numbers = #tpu.dot_dimension_numbers<[1], [0], [0], [1], [0, 0, 1, 1], [], []>} : vector<64x32xbf16>, vector<32x32xbf16>, vector<64x32xf32> -> vector<64x32xf32>
    %c0_36 = arith.constant 0 : index
    %c0_37 = arith.constant 0 : index
    %51 = vector.load %arg5[%c0_36, %c0_37] : memref<64x1xf32, #tpu.memory_space<vmem>>, vector<64x1xf32>
    %52 = vector.broadcast %51 : vector<64x1xf32> to vector<64x32xf32>
    %53 = arith.mulf %50, %52 : vector<64x32xf32>
    %54 = arith.addf %46, %53 : vector<64x32xf32>
    %c23 = arith.constant 23 : index
    %c0_38 = arith.constant 0 : index
    %55 = vector.load %arg9[%c23, %c0_38] : memref<96x32xf32, #tpu.memory_space<vmem>>, vector<64x32xf32>
    %56 = arith.truncf %55 : vector<64x32xf32> to vector<64x32xbf16>
    %c192 = arith.constant 192 : index
    %c0_39 = arith.constant 0 : index
    %57 = vector.load %arg6[%c192, %c0_39] : memref<288x32xbf16, #tpu.memory_space<vmem>>, vector<32x32xbf16>
    %cst_40 = arith.constant dense<0.000000e+00> : vector<64x32xf32>
    %58 = tpu.matmul %56, %57, %cst_40 {dimension_numbers = #tpu.dot_dimension_numbers<[1], [0], [0], [1], [0, 0, 1, 1], [], []>} : vector<64x32xbf16>, vector<32x32xbf16>, vector<64x32xf32> -> vector<64x32xf32>
    %c0_41 = arith.constant 0 : index
    %c0_42 = arith.constant 0 : index
    %59 = vector.load %arg4[%c0_41, %c0_42] : memref<64x1xf32, #tpu.memory_space<vmem>>, vector<64x1xf32>
    %60 = vector.broadcast %59 : vector<64x1xf32> to vector<64x32xf32>
    %61 = arith.mulf %58, %60 : vector<64x32xf32>
    %62 = arith.addf %54, %61 : vector<64x32xf32>
    %c24 = arith.constant 24 : index
    %c0_43 = arith.constant 0 : index
    %63 = vector.load %arg9[%c24, %c0_43] : memref<96x32xf32, #tpu.memory_space<vmem>>, vector<64x32xf32>
    %64 = arith.truncf %63 : vector<64x32xf32> to vector<64x32xbf16>
    %c224 = arith.constant 224 : index
    %c0_44 = arith.constant 0 : index
    %65 = vector.load %arg6[%c224, %c0_44] : memref<288x32xbf16, #tpu.memory_space<vmem>>, vector<32x32xbf16>
    %cst_45 = arith.constant dense<0.000000e+00> : vector<64x32xf32>
    %66 = tpu.matmul %64, %65, %cst_45 {dimension_numbers = #tpu.dot_dimension_numbers<[1], [0], [0], [1], [0, 0, 1, 1], [], []>} : vector<64x32xbf16>, vector<32x32xbf16>, vector<64x32xf32> -> vector<64x32xf32>
    %67 = arith.addf %62, %66 : vector<64x32xf32>
    %c25 = arith.constant 25 : index
    %c0_46 = arith.constant 0 : index
    %68 = vector.load %arg9[%c25, %c0_46] : memref<96x32xf32, #tpu.memory_space<vmem>>, vector<64x32xf32>
    %69 = arith.truncf %68 : vector<64x32xf32> to vector<64x32xbf16>
    %c256 = arith.constant 256 : index
    %c0_47 = arith.constant 0 : index
    %70 = vector.load %arg6[%c256, %c0_47] : memref<288x32xbf16, #tpu.memory_space<vmem>>, vector<32x32xbf16>
    %cst_48 = arith.constant dense<0.000000e+00> : vector<64x32xf32>
    %71 = tpu.matmul %69, %70, %cst_48 {dimension_numbers = #tpu.dot_dimension_numbers<[1], [0], [0], [1], [0, 0, 1, 1], [], []>} : vector<64x32xbf16>, vector<32x32xbf16>, vector<64x32xf32> -> vector<64x32xf32>
    %c0_49 = arith.constant 0 : index
    %c0_50 = arith.constant 0 : index
    %72 = vector.load %arg5[%c0_49, %c0_50] : memref<64x1xf32, #tpu.memory_space<vmem>>, vector<64x1xf32>
    %73 = vector.broadcast %72 : vector<64x1xf32> to vector<64x32xf32>
    %74 = arith.mulf %71, %73 : vector<64x32xf32>
    %75 = arith.addf %67, %74 : vector<64x32xf32>
    %c0_51 = arith.constant 0 : index
    %c0_52 = arith.constant 0 : index
    %76 = vector.load %arg7[%c0_51, %c0_52] : memref<64x32xf32, #tpu.memory_space<vmem>>, vector<64x32xf32>
    tpu.vector_store %arg7[%c0_51, %c0_52], %75 {strides = array<i32>} : memref<64x32xf32, #tpu.memory_space<vmem>>, vector<64x32xf32>,
    %cst_53 = arith.constant dense<0.000000e+00> : vector<32xf32>
    %77 = vector.multi_reduction <add>, %75, %cst_53 [0] : vector<64x32xf32> to vector<32xf32>
    %78 = vector.shape_cast %77 : vector<32xf32> to vector<1x32xf32>
    %c0_54 = arith.constant 0 : index
    %c0_55 = arith.constant 0 : index
    %c0_56 = arith.constant 0 : index
    %79 = vector.load %arg8[%c0_54, %c0_55, %c0_56] : memref<1x2x32xf32, #tpu.memory_space<vmem>>, vector<1x1x32xf32>
    %80 = vector.shape_cast %79 : vector<1x1x32xf32> to vector<1x32xf32>
    %81 = vector.shape_cast %78 : vector<1x32xf32> to vector<1x1x32xf32>
    tpu.vector_store %arg8[%c0_54, %c0_55, %c0_56], %81 {strides = array<i32>} : memref<1x2x32xf32, #tpu.memory_space<vmem>>, vector<1x1x32xf32>,
    %82 = arith.mulf %75, %75 : vector<64x32xf32>
    %cst_57 = arith.constant dense<0.000000e+00> : vector<32xf32>
    %83 = vector.multi_reduction <add>, %82, %cst_57 [0] : vector<64x32xf32> to vector<32xf32>
    %84 = vector.shape_cast %83 : vector<32xf32> to vector<1x32xf32>
    %c0_58 = arith.constant 0 : index
    %c1 = arith.constant 1 : index
    %c0_59 = arith.constant 0 : index
    %85 = vector.load %arg8[%c0_58, %c1, %c0_59] : memref<1x2x32xf32, #tpu.memory_space<vmem>>, vector<1x1x32xf32>
    %86 = vector.shape_cast %85 : vector<1x1x32xf32> to vector<1x32xf32>
    %87 = vector.shape_cast %84 : vector<1x32xf32> to vector<1x1x32xf32>
    tpu.vector_store %arg8[%c0_58, %c1, %c0_59], %87 {strides = array<i32>} : memref<1x2x32xf32, #tpu.memory_space<vmem>>, vector<1x1x32xf32>,
    return
  }
  func.func @transform_0(%arg0: i32) -> (i32, i32) {
    %c0_i32 = arith.constant 0 : i32
    %c0_i32_0 = arith.constant 0 : i32
    return %arg0, %c0_i32 : i32, i32
  }
  func.func @transform_1(%arg0: i32) -> (i32, i32) {
    %c0_i32 = arith.constant 0 : i32
    %c0_i32_0 = arith.constant 0 : i32
    %c0_i32_1 = arith.constant 0 : i32
    return %c0_i32, %c0_i32_0 : i32, i32
  }
  func.func @transform_2(%arg0: i32) -> (i32, i32) {
    %c0_i32 = arith.constant 0 : i32
    %c0_i32_0 = arith.constant 0 : i32
    %c0_i32_1 = arith.constant 0 : i32
    return %c0_i32, %c0_i32_0 : i32, i32
  }
  func.func @transform_3(%arg0: i32) -> (i32, i32) {
    %c0_i32 = arith.constant 0 : i32
    %c0_i32_0 = arith.constant 0 : i32
    %c0_i32_1 = arith.constant 0 : i32
    return %c0_i32, %c0_i32_0 : i32, i32
  }
  func.func @transform_4(%arg0: i32) -> (i32, i32) {
    %c0_i32 = arith.constant 0 : i32
    %c0_i32_0 = arith.constant 0 : i32
    %c0_i32_1 = arith.constant 0 : i32
    return %c0_i32, %c0_i32_0 : i32, i32
  }
  func.func @transform_5(%arg0: i32) -> (i32, i32) {
    %c0_i32 = arith.constant 0 : i32
    %c0_i32_0 = arith.constant 0 : i32
    %c0_i32_1 = arith.constant 0 : i32
    return %c0_i32, %c0_i32_0 : i32, i32
  }
  func.func @transform_6(%arg0: i32) -> (i32, i32) {
    %c0_i32 = arith.constant 0 : i32
    %c0_i32_0 = arith.constant 0 : i32
    return %arg0, %c0_i32 : i32, i32
  }
  func.func @transform_7(%arg0: i32) -> (i32, i32, i32) {
    %c0_i32 = arith.constant 0 : i32
    %c0_i32_0 = arith.constant 0 : i32
    %c0_i32_1 = arith.constant 0 : i32
    return %arg0, %c0_i32, %c0_i32_0 : i32, i32, i32
  }
}

module attributes {stable_mosaic.version = 11 : i64} {
  func.func @_kernel_c(%arg0: i32, %arg1: memref<64x32xf32, #tpu.memory_space<vmem>>, %arg2: memref<1x32xf32, #tpu.memory_space<vmem>>, %arg3: memref<1x32xf32, #tpu.memory_space<vmem>>, %arg4: memref<32x128xbf16, #tpu.memory_space<vmem>>, %arg5: memref<64x128xf32, #tpu.memory_space<vmem>>, %arg6: memref<64x128xf32, #tpu.memory_space<vmem>>, %arg7: memref<1x2x128xf32, #tpu.memory_space<vmem>>) attributes {dimension_semantics = [#tpu.dimension_semantics<parallel>], iteration_bounds = array<i64: 2>, scalar_prefetch = 0 : i64, scratch_operands = 0 : i64, tpu.core_type = #tpu.core_type<tc>, window_params = [{transform_indices = @transform_0, window_bounds = array<i64: 64, 32>}, {pipeline_mode = #tpu.pipeline_mode<synchronous>, transform_indices = @transform_1, window_bounds = array<i64: 1, 32>}, {pipeline_mode = #tpu.pipeline_mode<synchronous>, transform_indices = @transform_2, window_bounds = array<i64: 1, 32>}, {pipeline_mode = #tpu.pipeline_mode<synchronous>, transform_indices = @transform_3, window_bounds = array<i64: 32, 128>}, {transform_indices = @transform_4, window_bounds = array<i64: 64, 128>}, {transform_indices = @transform_5, window_bounds = array<i64: 64, 128>}, {transform_indices = @transform_6, window_bounds = array<i64: 1, 2, 128>}]} {
    %c0 = arith.constant 0 : index
    %c0_0 = arith.constant 0 : index
    %0 = vector.load %arg1[%c0, %c0_0] : memref<64x32xf32, #tpu.memory_space<vmem>>, vector<64x32xf32>
    %c0_1 = arith.constant 0 : index
    %c0_2 = arith.constant 0 : index
    %1 = vector.load %arg2[%c0_1, %c0_2] : memref<1x32xf32, #tpu.memory_space<vmem>>, vector<1x32xf32>
    %2 = vector.broadcast %1 : vector<1x32xf32> to vector<64x32xf32>
    %3 = arith.mulf %0, %2 : vector<64x32xf32>
    %c0_3 = arith.constant 0 : index
    %c0_4 = arith.constant 0 : index
    %4 = vector.load %arg3[%c0_3, %c0_4] : memref<1x32xf32, #tpu.memory_space<vmem>>, vector<1x32xf32>
    %5 = vector.broadcast %4 : vector<1x32xf32> to vector<64x32xf32>
    %6 = arith.addf %3, %5 : vector<64x32xf32>
    %cst = arith.constant 0.000000e+00 : f32
    %7 = vector.broadcast %cst : f32 to vector<64x32xf32>
    %8 = arith.maximumf %6, %7 : vector<64x32xf32>
    %9 = arith.truncf %8 : vector<64x32xf32> to vector<64x32xbf16>
    %c0_5 = arith.constant 0 : index
    %c0_6 = arith.constant 0 : index
    %10 = vector.load %arg4[%c0_5, %c0_6] : memref<32x128xbf16, #tpu.memory_space<vmem>>, vector<32x128xbf16>
    %cst_7 = arith.constant dense<0.000000e+00> : vector<64x128xf32>
    %11 = tpu.matmul %9, %10, %cst_7 {dimension_numbers = #tpu.dot_dimension_numbers<[1], [0], [0], [1], [0, 0, 1, 1], [], []>} : vector<64x32xbf16>, vector<32x128xbf16>, vector<64x128xf32> -> vector<64x128xf32>
    %c0_8 = arith.constant 0 : index
    %c0_9 = arith.constant 0 : index
    %12 = vector.load %arg5[%c0_8, %c0_9] : memref<64x128xf32, #tpu.memory_space<vmem>>, vector<64x128xf32>
    %13 = arith.addf %11, %12 : vector<64x128xf32>
    %c0_10 = arith.constant 0 : index
    %c0_11 = arith.constant 0 : index
    %14 = vector.load %arg6[%c0_10, %c0_11] : memref<64x128xf32, #tpu.memory_space<vmem>>, vector<64x128xf32>
    tpu.vector_store %arg6[%c0_10, %c0_11], %13 {strides = array<i32>} : memref<64x128xf32, #tpu.memory_space<vmem>>, vector<64x128xf32>,
    %cst_12 = arith.constant dense<0.000000e+00> : vector<128xf32>
    %15 = vector.multi_reduction <add>, %13, %cst_12 [0] : vector<64x128xf32> to vector<128xf32>
    %16 = vector.shape_cast %15 : vector<128xf32> to vector<1x128xf32>
    %c0_13 = arith.constant 0 : index
    %c0_14 = arith.constant 0 : index
    %c0_15 = arith.constant 0 : index
    %17 = vector.load %arg7[%c0_13, %c0_14, %c0_15] : memref<1x2x128xf32, #tpu.memory_space<vmem>>, vector<1x1x128xf32>
    %18 = vector.shape_cast %17 : vector<1x1x128xf32> to vector<1x128xf32>
    %19 = vector.shape_cast %16 : vector<1x128xf32> to vector<1x1x128xf32>
    tpu.vector_store %arg7[%c0_13, %c0_14, %c0_15], %19 {strides = array<i32>} : memref<1x2x128xf32, #tpu.memory_space<vmem>>, vector<1x1x128xf32>,
    %20 = arith.mulf %13, %13 : vector<64x128xf32>
    %cst_16 = arith.constant dense<0.000000e+00> : vector<128xf32>
    %21 = vector.multi_reduction <add>, %20, %cst_16 [0] : vector<64x128xf32> to vector<128xf32>
    %22 = vector.shape_cast %21 : vector<128xf32> to vector<1x128xf32>
    %c0_17 = arith.constant 0 : index
    %c1 = arith.constant 1 : index
    %c0_18 = arith.constant 0 : index
    %23 = vector.load %arg7[%c0_17, %c1, %c0_18] : memref<1x2x128xf32, #tpu.memory_space<vmem>>, vector<1x1x128xf32>
    %24 = vector.shape_cast %23 : vector<1x1x128xf32> to vector<1x128xf32>
    %25 = vector.shape_cast %22 : vector<1x128xf32> to vector<1x1x128xf32>
    tpu.vector_store %arg7[%c0_17, %c1, %c0_18], %25 {strides = array<i32>} : memref<1x2x128xf32, #tpu.memory_space<vmem>>, vector<1x1x128xf32>,
    return
  }
  func.func @transform_0(%arg0: i32) -> (i32, i32) {
    %c0_i32 = arith.constant 0 : i32
    %c0_i32_0 = arith.constant 0 : i32
    return %arg0, %c0_i32 : i32, i32
  }
  func.func @transform_1(%arg0: i32) -> (i32, i32) {
    %c0_i32 = arith.constant 0 : i32
    %c0_i32_0 = arith.constant 0 : i32
    %c0_i32_1 = arith.constant 0 : i32
    return %c0_i32, %c0_i32_0 : i32, i32
  }
  func.func @transform_2(%arg0: i32) -> (i32, i32) {
    %c0_i32 = arith.constant 0 : i32
    %c0_i32_0 = arith.constant 0 : i32
    %c0_i32_1 = arith.constant 0 : i32
    return %c0_i32, %c0_i32_0 : i32, i32
  }
  func.func @transform_3(%arg0: i32) -> (i32, i32) {
    %c0_i32 = arith.constant 0 : i32
    %c0_i32_0 = arith.constant 0 : i32
    %c0_i32_1 = arith.constant 0 : i32
    return %c0_i32, %c0_i32_0 : i32, i32
  }
  func.func @transform_4(%arg0: i32) -> (i32, i32) {
    %c0_i32 = arith.constant 0 : i32
    %c0_i32_0 = arith.constant 0 : i32
    return %arg0, %c0_i32 : i32, i32
  }
  func.func @transform_5(%arg0: i32) -> (i32, i32) {
    %c0_i32 = arith.constant 0 : i32
    %c0_i32_0 = arith.constant 0 : i32
    return %arg0, %c0_i32 : i32, i32
  }
  func.func @transform_6(%arg0: i32) -> (i32, i32, i32) {
    %c0_i32 = arith.constant 0 : i32
    %c0_i32_0 = arith.constant 0 : i32
    %c0_i32_1 = arith.constant 0 : i32
    return %arg0, %c0_i32, %c0_i32_0 : i32, i32, i32
  }
}

module attributes {stable_mosaic.version = 11 : i64} {
  func.func @kernel(%arg0: i32, %arg1: memref<64x32xf32, #tpu.memory_space<vmem>>, %arg2: memref<1x32xf32, #tpu.memory_space<vmem>>, %arg3: memref<1x32xf32, #tpu.memory_space<vmem>>, %arg4: memref<32x32xbf16, #tpu.memory_space<vmem>>, %arg5: memref<1x32xf32, #tpu.memory_space<vmem>>, %arg6: memref<1x32xf32, #tpu.memory_space<vmem>>, %arg7: memref<32x128xbf16, #tpu.memory_space<vmem>>, %arg8: memref<64x32xf32, #tpu.memory_space<vmem>>, %arg9: memref<64x128xf32, #tpu.memory_space<vmem>>, %arg10: memref<1x2x32xf32, #tpu.memory_space<vmem>>) attributes {dimension_semantics = [#tpu.dimension_semantics<parallel>], iteration_bounds = array<i64: 2>, scalar_prefetch = 0 : i64, scratch_operands = 0 : i64, tpu.core_type = #tpu.core_type<tc>, window_params = [{transform_indices = @transform_0, window_bounds = array<i64: 64, 32>}, {pipeline_mode = #tpu.pipeline_mode<synchronous>, transform_indices = @transform_1, window_bounds = array<i64: 1, 32>}, {pipeline_mode = #tpu.pipeline_mode<synchronous>, transform_indices = @transform_2, window_bounds = array<i64: 1, 32>}, {pipeline_mode = #tpu.pipeline_mode<synchronous>, transform_indices = @transform_3, window_bounds = array<i64: 32, 32>}, {pipeline_mode = #tpu.pipeline_mode<synchronous>, transform_indices = @transform_4, window_bounds = array<i64: 1, 32>}, {pipeline_mode = #tpu.pipeline_mode<synchronous>, transform_indices = @transform_5, window_bounds = array<i64: 1, 32>}, {pipeline_mode = #tpu.pipeline_mode<synchronous>, transform_indices = @transform_6, window_bounds = array<i64: 32, 128>}, {transform_indices = @transform_7, window_bounds = array<i64: 64, 32>}, {transform_indices = @transform_8, window_bounds = array<i64: 64, 128>}, {transform_indices = @transform_9, window_bounds = array<i64: 1, 2, 32>}]} {
    %c0 = arith.constant 0 : index
    %c0_0 = arith.constant 0 : index
    %0 = vector.load %arg1[%c0, %c0_0] : memref<64x32xf32, #tpu.memory_space<vmem>>, vector<64x32xf32>
    %c0_1 = arith.constant 0 : index
    %c0_2 = arith.constant 0 : index
    %1 = vector.load %arg2[%c0_1, %c0_2] : memref<1x32xf32, #tpu.memory_space<vmem>>, vector<1x32xf32>
    %2 = vector.broadcast %1 : vector<1x32xf32> to vector<64x32xf32>
    %3 = arith.mulf %0, %2 : vector<64x32xf32>
    %c0_3 = arith.constant 0 : index
    %c0_4 = arith.constant 0 : index
    %4 = vector.load %arg3[%c0_3, %c0_4] : memref<1x32xf32, #tpu.memory_space<vmem>>, vector<1x32xf32>
    %5 = vector.broadcast %4 : vector<1x32xf32> to vector<64x32xf32>
    %6 = arith.addf %3, %5 : vector<64x32xf32>
    %cst = arith.constant 0.000000e+00 : f32
    %7 = vector.broadcast %cst : f32 to vector<64x32xf32>
    %8 = arith.maximumf %6, %7 : vector<64x32xf32>
    %9 = arith.truncf %8 : vector<64x32xf32> to vector<64x32xbf16>
    %c0_5 = arith.constant 0 : index
    %c0_6 = arith.constant 0 : index
    %10 = vector.load %arg4[%c0_5, %c0_6] : memref<32x32xbf16, #tpu.memory_space<vmem>>, vector<32x32xbf16>
    %cst_7 = arith.constant dense<0.000000e+00> : vector<64x32xf32>
    %11 = tpu.matmul %9, %10, %cst_7 {dimension_numbers = #tpu.dot_dimension_numbers<[1], [0], [0], [1], [0, 0, 1, 1], [], []>} : vector<64x32xbf16>, vector<32x32xbf16>, vector<64x32xf32> -> vector<64x32xf32>
    %c0_8 = arith.constant 0 : index
    %c0_9 = arith.constant 0 : index
    %12 = vector.load %arg8[%c0_8, %c0_9] : memref<64x32xf32, #tpu.memory_space<vmem>>, vector<64x32xf32>
    tpu.vector_store %arg8[%c0_8, %c0_9], %11 {strides = array<i32>} : memref<64x32xf32, #tpu.memory_space<vmem>>, vector<64x32xf32>,
    %cst_10 = arith.constant dense<0.000000e+00> : vector<32xf32>
    %13 = vector.multi_reduction <add>, %11, %cst_10 [0] : vector<64x32xf32> to vector<32xf32>
    %14 = vector.shape_cast %13 : vector<32xf32> to vector<1x32xf32>
    %c0_11 = arith.constant 0 : index
    %c0_12 = arith.constant 0 : index
    %c0_13 = arith.constant 0 : index
    %15 = vector.load %arg10[%c0_11, %c0_12, %c0_13] : memref<1x2x32xf32, #tpu.memory_space<vmem>>, vector<1x1x32xf32>
    %16 = vector.shape_cast %15 : vector<1x1x32xf32> to vector<1x32xf32>
    %17 = vector.shape_cast %14 : vector<1x32xf32> to vector<1x1x32xf32>
    tpu.vector_store %arg10[%c0_11, %c0_12, %c0_13], %17 {strides = array<i32>} : memref<1x2x32xf32, #tpu.memory_space<vmem>>, vector<1x1x32xf32>,
    %18 = arith.mulf %11, %11 : vector<64x32xf32>
    %cst_14 = arith.constant dense<0.000000e+00> : vector<32xf32>
    %19 = vector.multi_reduction <add>, %18, %cst_14 [0] : vector<64x32xf32> to vector<32xf32>
    %20 = vector.shape_cast %19 : vector<32xf32> to vector<1x32xf32>
    %c0_15 = arith.constant 0 : index
    %c1 = arith.constant 1 : index
    %c0_16 = arith.constant 0 : index
    %21 = vector.load %arg10[%c0_15, %c1, %c0_16] : memref<1x2x32xf32, #tpu.memory_space<vmem>>, vector<1x1x32xf32>
    %22 = vector.shape_cast %21 : vector<1x1x32xf32> to vector<1x32xf32>
    %23 = vector.shape_cast %20 : vector<1x32xf32> to vector<1x1x32xf32>
    tpu.vector_store %arg10[%c0_15, %c1, %c0_16], %23 {strides = array<i32>} : memref<1x2x32xf32, #tpu.memory_space<vmem>>, vector<1x1x32xf32>,
    %c0_17 = arith.constant 0 : index
    %c0_18 = arith.constant 0 : index
    %24 = vector.load %arg5[%c0_17, %c0_18] : memref<1x32xf32, #tpu.memory_space<vmem>>, vector<1x32xf32>
    %25 = vector.broadcast %24 : vector<1x32xf32> to vector<64x32xf32>
    %26 = arith.mulf %0, %25 : vector<64x32xf32>
    %c0_19 = arith.constant 0 : index
    %c0_20 = arith.constant 0 : index
    %27 = vector.load %arg6[%c0_19, %c0_20] : memref<1x32xf32, #tpu.memory_space<vmem>>, vector<1x32xf32>
    %28 = vector.broadcast %27 : vector<1x32xf32> to vector<64x32xf32>
    %29 = arith.addf %26, %28 : vector<64x32xf32>
    %cst_21 = arith.constant 0.000000e+00 : f32
    %30 = vector.broadcast %cst_21 : f32 to vector<64x32xf32>
    %31 = arith.maximumf %29, %30 : vector<64x32xf32>
    %32 = arith.truncf %31 : vector<64x32xf32> to vector<64x32xbf16>
    %c0_22 = arith.constant 0 : index
    %c0_23 = arith.constant 0 : index
    %33 = vector.load %arg7[%c0_22, %c0_23] : memref<32x128xbf16, #tpu.memory_space<vmem>>, vector<32x128xbf16>
    %cst_24 = arith.constant dense<0.000000e+00> : vector<64x128xf32>
    %34 = tpu.matmul %32, %33, %cst_24 {dimension_numbers = #tpu.dot_dimension_numbers<[1], [0], [0], [1], [0, 0, 1, 1], [], []>} : vector<64x32xbf16>, vector<32x128xbf16>, vector<64x128xf32> -> vector<64x128xf32>
    %c0_25 = arith.constant 0 : index
    %c0_26 = arith.constant 0 : index
    %35 = vector.load %arg9[%c0_25, %c0_26] : memref<64x128xf32, #tpu.memory_space<vmem>>, vector<64x128xf32>
    tpu.vector_store %arg9[%c0_25, %c0_26], %34 {strides = array<i32>} : memref<64x128xf32, #tpu.memory_space<vmem>>, vector<64x128xf32>,
    return
  }
  func.func @transform_0(%arg0: i32) -> (i32, i32) {
    %c0_i32 = arith.constant 0 : i32
    %c0_i32_0 = arith.constant 0 : i32
    return %arg0, %c0_i32 : i32, i32
  }
  func.func @transform_1(%arg0: i32) -> (i32, i32) {
    %c0_i32 = arith.constant 0 : i32
    %c0_i32_0 = arith.constant 0 : i32
    %c0_i32_1 = arith.constant 0 : i32
    return %c0_i32, %c0_i32_0 : i32, i32
  }
  func.func @transform_2(%arg0: i32) -> (i32, i32) {
    %c0_i32 = arith.constant 0 : i32
    %c0_i32_0 = arith.constant 0 : i32
    %c0_i32_1 = arith.constant 0 : i32
    return %c0_i32, %c0_i32_0 : i32, i32
  }
  func.func @transform_3(%arg0: i32) -> (i32, i32) {
    %c0_i32 = arith.constant 0 : i32
    %c0_i32_0 = arith.constant 0 : i32
    %c0_i32_1 = arith.constant 0 : i32
    return %c0_i32, %c0_i32_0 : i32, i32
  }
  func.func @transform_4(%arg0: i32) -> (i32, i32) {
    %c0_i32 = arith.constant 0 : i32
    %c0_i32_0 = arith.constant 0 : i32
    %c0_i32_1 = arith.constant 0 : i32
    return %c0_i32, %c0_i32_0 : i32, i32
  }
  func.func @transform_5(%arg0: i32) -> (i32, i32) {
    %c0_i32 = arith.constant 0 : i32
    %c0_i32_0 = arith.constant 0 : i32
    %c0_i32_1 = arith.constant 0 : i32
    return %c0_i32, %c0_i32_0 : i32, i32
  }
  func.func @transform_6(%arg0: i32) -> (i32, i32) {
    %c0_i32 = arith.constant 0 : i32
    %c0_i32_0 = arith.constant 0 : i32
    %c0_i32_1 = arith.constant 0 : i32
    return %c0_i32, %c0_i32_0 : i32, i32
  }
  func.func @transform_7(%arg0: i32) -> (i32, i32) {
    %c0_i32 = arith.constant 0 : i32
    %c0_i32_0 = arith.constant 0 : i32
    return %arg0, %c0_i32 : i32, i32
  }
  func.func @transform_8(%arg0: i32) -> (i32, i32) {
    %c0_i32 = arith.constant 0 : i32
    %c0_i32_0 = arith.constant 0 : i32
    return %arg0, %c0_i32 : i32, i32
  }
  func.func @transform_9(%arg0: i32) -> (i32, i32, i32) {
    %c0_i32 = arith.constant 0 : i32
    %c0_i32_0 = arith.constant 0 : i32
    %c0_i32_1 = arith.constant 0 : i32
    return %arg0, %c0_i32, %c0_i32_0 : i32, i32, i32
  }
}

module attributes {stable_mosaic.version = 11 : i64} {
  func.func @kernel(%arg0: i32, %arg1: memref<64x128xf32, #tpu.memory_space<vmem>>, %arg2: memref<1x128xf32, #tpu.memory_space<vmem>>, %arg3: memref<1x128xf32, #tpu.memory_space<vmem>>, %arg4: memref<128x32xbf16, #tpu.memory_space<vmem>>, %arg5: memref<64x32xf32, #tpu.memory_space<vmem>>, %arg6: memref<1x2x32xf32, #tpu.memory_space<vmem>>) attributes {dimension_semantics = [#tpu.dimension_semantics<parallel>], iteration_bounds = array<i64: 2>, scalar_prefetch = 0 : i64, scratch_operands = 0 : i64, tpu.core_type = #tpu.core_type<tc>, window_params = [{transform_indices = @transform_0, window_bounds = array<i64: 64, 128>}, {pipeline_mode = #tpu.pipeline_mode<synchronous>, transform_indices = @transform_1, window_bounds = array<i64: 1, 128>}, {pipeline_mode = #tpu.pipeline_mode<synchronous>, transform_indices = @transform_2, window_bounds = array<i64: 1, 128>}, {pipeline_mode = #tpu.pipeline_mode<synchronous>, transform_indices = @transform_3, window_bounds = array<i64: 128, 32>}, {transform_indices = @transform_4, window_bounds = array<i64: 64, 32>}, {transform_indices = @transform_5, window_bounds = array<i64: 1, 2, 32>}]} {
    %c0 = arith.constant 0 : index
    %c0_0 = arith.constant 0 : index
    %0 = vector.load %arg1[%c0, %c0_0] : memref<64x128xf32, #tpu.memory_space<vmem>>, vector<64x128xf32>
    %c0_1 = arith.constant 0 : index
    %c0_2 = arith.constant 0 : index
    %1 = vector.load %arg2[%c0_1, %c0_2] : memref<1x128xf32, #tpu.memory_space<vmem>>, vector<1x128xf32>
    %2 = vector.broadcast %1 : vector<1x128xf32> to vector<64x128xf32>
    %3 = arith.mulf %0, %2 : vector<64x128xf32>
    %c0_3 = arith.constant 0 : index
    %c0_4 = arith.constant 0 : index
    %4 = vector.load %arg3[%c0_3, %c0_4] : memref<1x128xf32, #tpu.memory_space<vmem>>, vector<1x128xf32>
    %5 = vector.broadcast %4 : vector<1x128xf32> to vector<64x128xf32>
    %6 = arith.addf %3, %5 : vector<64x128xf32>
    %cst = arith.constant 0.000000e+00 : f32
    %7 = vector.broadcast %cst : f32 to vector<64x128xf32>
    %8 = arith.maximumf %6, %7 : vector<64x128xf32>
    %9 = arith.truncf %8 : vector<64x128xf32> to vector<64x128xbf16>
    %c0_5 = arith.constant 0 : index
    %c0_6 = arith.constant 0 : index
    %10 = vector.load %arg4[%c0_5, %c0_6] : memref<128x32xbf16, #tpu.memory_space<vmem>>, vector<128x32xbf16>
    %cst_7 = arith.constant dense<0.000000e+00> : vector<64x32xf32>
    %11 = tpu.matmul %9, %10, %cst_7 {dimension_numbers = #tpu.dot_dimension_numbers<[1], [0], [0], [1], [0, 0, 1, 1], [], []>} : vector<64x128xbf16>, vector<128x32xbf16>, vector<64x32xf32> -> vector<64x32xf32>
    %c0_8 = arith.constant 0 : index
    %c0_9 = arith.constant 0 : index
    %12 = vector.load %arg5[%c0_8, %c0_9] : memref<64x32xf32, #tpu.memory_space<vmem>>, vector<64x32xf32>
    tpu.vector_store %arg5[%c0_8, %c0_9], %11 {strides = array<i32>} : memref<64x32xf32, #tpu.memory_space<vmem>>, vector<64x32xf32>,
    %cst_10 = arith.constant dense<0.000000e+00> : vector<32xf32>
    %13 = vector.multi_reduction <add>, %11, %cst_10 [0] : vector<64x32xf32> to vector<32xf32>
    %14 = vector.shape_cast %13 : vector<32xf32> to vector<1x32xf32>
    %c0_11 = arith.constant 0 : index
    %c0_12 = arith.constant 0 : index
    %c0_13 = arith.constant 0 : index
    %15 = vector.load %arg6[%c0_11, %c0_12, %c0_13] : memref<1x2x32xf32, #tpu.memory_space<vmem>>, vector<1x1x32xf32>
    %16 = vector.shape_cast %15 : vector<1x1x32xf32> to vector<1x32xf32>
    %17 = vector.shape_cast %14 : vector<1x32xf32> to vector<1x1x32xf32>
    tpu.vector_store %arg6[%c0_11, %c0_12, %c0_13], %17 {strides = array<i32>} : memref<1x2x32xf32, #tpu.memory_space<vmem>>, vector<1x1x32xf32>,
    %18 = arith.mulf %11, %11 : vector<64x32xf32>
    %cst_14 = arith.constant dense<0.000000e+00> : vector<32xf32>
    %19 = vector.multi_reduction <add>, %18, %cst_14 [0] : vector<64x32xf32> to vector<32xf32>
    %20 = vector.shape_cast %19 : vector<32xf32> to vector<1x32xf32>
    %c0_15 = arith.constant 0 : index
    %c1 = arith.constant 1 : index
    %c0_16 = arith.constant 0 : index
    %21 = vector.load %arg6[%c0_15, %c1, %c0_16] : memref<1x2x32xf32, #tpu.memory_space<vmem>>, vector<1x1x32xf32>
    %22 = vector.shape_cast %21 : vector<1x1x32xf32> to vector<1x32xf32>
    %23 = vector.shape_cast %20 : vector<1x32xf32> to vector<1x1x32xf32>
    tpu.vector_store %arg6[%c0_15, %c1, %c0_16], %23 {strides = array<i32>} : memref<1x2x32xf32, #tpu.memory_space<vmem>>, vector<1x1x32xf32>,
    return
  }
  func.func @transform_0(%arg0: i32) -> (i32, i32) {
    %c0_i32 = arith.constant 0 : i32
    %c0_i32_0 = arith.constant 0 : i32
    return %arg0, %c0_i32 : i32, i32
  }
  func.func @transform_1(%arg0: i32) -> (i32, i32) {
    %c0_i32 = arith.constant 0 : i32
    %c0_i32_0 = arith.constant 0 : i32
    %c0_i32_1 = arith.constant 0 : i32
    return %c0_i32, %c0_i32_0 : i32, i32
  }
  func.func @transform_2(%arg0: i32) -> (i32, i32) {
    %c0_i32 = arith.constant 0 : i32
    %c0_i32_0 = arith.constant 0 : i32
    %c0_i32_1 = arith.constant 0 : i32
    return %c0_i32, %c0_i32_0 : i32, i32
  }
  func.func @transform_3(%arg0: i32) -> (i32, i32) {
    %c0_i32 = arith.constant 0 : i32
    %c0_i32_0 = arith.constant 0 : i32
    %c0_i32_1 = arith.constant 0 : i32
    return %c0_i32, %c0_i32_0 : i32, i32
  }
  func.func @transform_4(%arg0: i32) -> (i32, i32) {
    %c0_i32 = arith.constant 0 : i32
    %c0_i32_0 = arith.constant 0 : i32
    return %arg0, %c0_i32 : i32, i32
  }
  func.func @transform_5(%arg0: i32) -> (i32, i32, i32) {
    %c0_i32 = arith.constant 0 : i32
    %c0_i32_0 = arith.constant 0 : i32
    %c0_i32_1 = arith.constant 0 : i32
    return %arg0, %c0_i32, %c0_i32_0 : i32, i32, i32
  }
}

module attributes {stable_mosaic.version = 11 : i64} {
  func.func @kernel(%arg0: i32, %arg1: memref<64x128xf32, #tpu.memory_space<vmem>>, %arg2: memref<4x7xbf16, #tpu.memory_space<vmem>>, %arg3: memref<128x64xbf16, #tpu.memory_space<vmem>>, %arg4: memref<128x64xbf16, #tpu.memory_space<vmem>>, %arg5: memref<16x64xf32, #tpu.memory_space<vmem>>) attributes {dimension_semantics = [#tpu.dimension_semantics<parallel>], iteration_bounds = array<i64: 2>, scalar_prefetch = 0 : i64, scratch_operands = 0 : i64, tpu.core_type = #tpu.core_type<tc>, window_params = [{transform_indices = @transform_0, window_bounds = array<i64: 64, 128>}, {pipeline_mode = #tpu.pipeline_mode<synchronous>, transform_indices = @transform_1, window_bounds = array<i64: 4, 7>}, {pipeline_mode = #tpu.pipeline_mode<synchronous>, transform_indices = @transform_2, window_bounds = array<i64: 128, 64>}, {pipeline_mode = #tpu.pipeline_mode<synchronous>, transform_indices = @transform_3, window_bounds = array<i64: 128, 64>}, {transform_indices = @transform_4, window_bounds = array<i64: 16, 64>}]} {
    %c0 = arith.constant 0 : index
    %c0_0 = arith.constant 0 : index
    %0 = vector.load %arg1[%c0, %c0_0] : memref<64x128xf32, #tpu.memory_space<vmem>>, vector<16x128xf32>
    %1 = vector.extract_strided_slice %0 {offsets = [0, 0], sizes = [8, 128], strides = [1, 1]} : vector<16x128xf32> to vector<8x128xf32>
    %2 = vector.extract_strided_slice %0 {offsets = [8, 0], sizes = [8, 128], strides = [1, 1]} : vector<16x128xf32> to vector<8x128xf32>
    %3 = arith.maximumf %1, %2 : vector<8x128xf32>
    %4 = vector.extract_strided_slice %3 {offsets = [0, 0], sizes = [7, 128], strides = [1, 1]} : vector<8x128xf32> to vector<7x128xf32>
    %5 = vector.extract_strided_slice %3 {offsets = [1, 0], sizes = [7, 128], strides = [1, 1]} : vector<8x128xf32> to vector<7x128xf32>
    %6 = arith.maximumf %4, %5 : vector<7x128xf32>
    %7 = arith.truncf %6 : vector<7x128xf32> to vector<7x128xbf16>
    %c0_1 = arith.constant 0 : index
    %c0_2 = arith.constant 0 : index
    %8 = vector.load %arg2[%c0_1, %c0_2] : memref<4x7xbf16, #tpu.memory_space<vmem>>, vector<4x7xbf16>
    %cst = arith.constant dense<0.000000e+00> : vector<4x128xf32>
    %9 = tpu.matmul %8, %7, %cst {dimension_numbers = #tpu.dot_dimension_numbers<[1], [0], [0], [1], [0, 0, 1, 1], [], []>} : vector<4x7xbf16>, vector<7x128xbf16>, vector<4x128xf32> -> vector<4x128xf32>
    %10 = arith.truncf %9 : vector<4x128xf32> to vector<4x128xbf16>
    %c0_3 = arith.constant 0 : index
    %c0_4 = arith.constant 0 : index
    %11 = vector.load %arg3[%c0_3, %c0_4] : memref<128x64xbf16, #tpu.memory_space<vmem>>, vector<128x64xbf16>
    %cst_5 = arith.constant dense<0.000000e+00> : vector<4x64xf32>
    %12 = tpu.matmul %10, %11, %cst_5 {dimension_numbers = #tpu.dot_dimension_numbers<[1], [0], [0], [1], [0, 0, 1, 1], [], []>} : vector<4x128xbf16>, vector<128x64xbf16>, vector<4x64xf32> -> vector<4x64xf32>
    %c0_6 = arith.constant 0 : index
    %c0_7 = arith.constant 0 : index
    %13 = vector.load %arg4[%c0_6, %c0_7] : memref<128x64xbf16, #tpu.memory_space<vmem>>, vector<128x64xbf16>
    %cst_8 = arith.constant dense<0.000000e+00> : vector<4x64xf32>
    %14 = tpu.matmul %10, %13, %cst_8 {dimension_numbers = #tpu.dot_dimension_numbers<[1], [0], [0], [1], [0, 0, 1, 1], [], []>} : vector<4x128xbf16>, vector<128x64xbf16>, vector<4x64xf32> -> vector<4x64xf32>
    %15 = arith.maximumf %12, %14 : vector<4x64xf32>
    %c0_9 = arith.constant 0 : index
    %c0_10 = arith.constant 0 : index
    %16 = vector.load %arg5[%c0_9, %c0_10] : memref<16x64xf32, #tpu.memory_space<vmem>>, vector<4x64xf32>
    tpu.vector_store %arg5[%c0_9, %c0_10], %15 {strides = array<i32>} : memref<16x64xf32, #tpu.memory_space<vmem>>, vector<4x64xf32>,
    %c16 = arith.constant 16 : index
    %c0_11 = arith.constant 0 : index
    %17 = vector.load %arg1[%c16, %c0_11] : memref<64x128xf32, #tpu.memory_space<vmem>>, vector<16x128xf32>
    %18 = vector.extract_strided_slice %17 {offsets = [0, 0], sizes = [8, 128], strides = [1, 1]} : vector<16x128xf32> to vector<8x128xf32>
    %19 = vector.extract_strided_slice %17 {offsets = [8, 0], sizes = [8, 128], strides = [1, 1]} : vector<16x128xf32> to vector<8x128xf32>
    %20 = arith.maximumf %18, %19 : vector<8x128xf32>
    %21 = vector.extract_strided_slice %20 {offsets = [0, 0], sizes = [7, 128], strides = [1, 1]} : vector<8x128xf32> to vector<7x128xf32>
    %22 = vector.extract_strided_slice %20 {offsets = [1, 0], sizes = [7, 128], strides = [1, 1]} : vector<8x128xf32> to vector<7x128xf32>
    %23 = arith.maximumf %21, %22 : vector<7x128xf32>
    %24 = arith.truncf %23 : vector<7x128xf32> to vector<7x128xbf16>
    %c0_12 = arith.constant 0 : index
    %c0_13 = arith.constant 0 : index
    %25 = vector.load %arg2[%c0_12, %c0_13] : memref<4x7xbf16, #tpu.memory_space<vmem>>, vector<4x7xbf16>
    %cst_14 = arith.constant dense<0.000000e+00> : vector<4x128xf32>
    %26 = tpu.matmul %25, %24, %cst_14 {dimension_numbers = #tpu.dot_dimension_numbers<[1], [0], [0], [1], [0, 0, 1, 1], [], []>} : vector<4x7xbf16>, vector<7x128xbf16>, vector<4x128xf32> -> vector<4x128xf32>
    %27 = arith.truncf %26 : vector<4x128xf32> to vector<4x128xbf16>
    %c0_15 = arith.constant 0 : index
    %c0_16 = arith.constant 0 : index
    %28 = vector.load %arg3[%c0_15, %c0_16] : memref<128x64xbf16, #tpu.memory_space<vmem>>, vector<128x64xbf16>
    %cst_17 = arith.constant dense<0.000000e+00> : vector<4x64xf32>
    %29 = tpu.matmul %27, %28, %cst_17 {dimension_numbers = #tpu.dot_dimension_numbers<[1], [0], [0], [1], [0, 0, 1, 1], [], []>} : vector<4x128xbf16>, vector<128x64xbf16>, vector<4x64xf32> -> vector<4x64xf32>
    %c0_18 = arith.constant 0 : index
    %c0_19 = arith.constant 0 : index
    %30 = vector.load %arg4[%c0_18, %c0_19] : memref<128x64xbf16, #tpu.memory_space<vmem>>, vector<128x64xbf16>
    %cst_20 = arith.constant dense<0.000000e+00> : vector<4x64xf32>
    %31 = tpu.matmul %27, %30, %cst_20 {dimension_numbers = #tpu.dot_dimension_numbers<[1], [0], [0], [1], [0, 0, 1, 1], [], []>} : vector<4x128xbf16>, vector<128x64xbf16>, vector<4x64xf32> -> vector<4x64xf32>
    %32 = arith.maximumf %29, %31 : vector<4x64xf32>
    %c4 = arith.constant 4 : index
    %c0_21 = arith.constant 0 : index
    %33 = vector.load %arg5[%c4, %c0_21] : memref<16x64xf32, #tpu.memory_space<vmem>>, vector<4x64xf32>
    tpu.vector_store %arg5[%c4, %c0_21], %32 {strides = array<i32>} : memref<16x64xf32, #tpu.memory_space<vmem>>, vector<4x64xf32>,
    %c32 = arith.constant 32 : index
    %c0_22 = arith.constant 0 : index
    %34 = vector.load %arg1[%c32, %c0_22] : memref<64x128xf32, #tpu.memory_space<vmem>>, vector<16x128xf32>
    %35 = vector.extract_strided_slice %34 {offsets = [0, 0], sizes = [8, 128], strides = [1, 1]} : vector<16x128xf32> to vector<8x128xf32>
    %36 = vector.extract_strided_slice %34 {offsets = [8, 0], sizes = [8, 128], strides = [1, 1]} : vector<16x128xf32> to vector<8x128xf32>
    %37 = arith.maximumf %35, %36 : vector<8x128xf32>
    %38 = vector.extract_strided_slice %37 {offsets = [0, 0], sizes = [7, 128], strides = [1, 1]} : vector<8x128xf32> to vector<7x128xf32>
    %39 = vector.extract_strided_slice %37 {offsets = [1, 0], sizes = [7, 128], strides = [1, 1]} : vector<8x128xf32> to vector<7x128xf32>
    %40 = arith.maximumf %38, %39 : vector<7x128xf32>
    %41 = arith.truncf %40 : vector<7x128xf32> to vector<7x128xbf16>
    %c0_23 = arith.constant 0 : index
    %c0_24 = arith.constant 0 : index
    %42 = vector.load %arg2[%c0_23, %c0_24] : memref<4x7xbf16, #tpu.memory_space<vmem>>, vector<4x7xbf16>
    %cst_25 = arith.constant dense<0.000000e+00> : vector<4x128xf32>
    %43 = tpu.matmul %42, %41, %cst_25 {dimension_numbers = #tpu.dot_dimension_numbers<[1], [0], [0], [1], [0, 0, 1, 1], [], []>} : vector<4x7xbf16>, vector<7x128xbf16>, vector<4x128xf32> -> vector<4x128xf32>
    %44 = arith.truncf %43 : vector<4x128xf32> to vector<4x128xbf16>
    %c0_26 = arith.constant 0 : index
    %c0_27 = arith.constant 0 : index
    %45 = vector.load %arg3[%c0_26, %c0_27] : memref<128x64xbf16, #tpu.memory_space<vmem>>, vector<128x64xbf16>
    %cst_28 = arith.constant dense<0.000000e+00> : vector<4x64xf32>
    %46 = tpu.matmul %44, %45, %cst_28 {dimension_numbers = #tpu.dot_dimension_numbers<[1], [0], [0], [1], [0, 0, 1, 1], [], []>} : vector<4x128xbf16>, vector<128x64xbf16>, vector<4x64xf32> -> vector<4x64xf32>
    %c0_29 = arith.constant 0 : index
    %c0_30 = arith.constant 0 : index
    %47 = vector.load %arg4[%c0_29, %c0_30] : memref<128x64xbf16, #tpu.memory_space<vmem>>, vector<128x64xbf16>
    %cst_31 = arith.constant dense<0.000000e+00> : vector<4x64xf32>
    %48 = tpu.matmul %44, %47, %cst_31 {dimension_numbers = #tpu.dot_dimension_numbers<[1], [0], [0], [1], [0, 0, 1, 1], [], []>} : vector<4x128xbf16>, vector<128x64xbf16>, vector<4x64xf32> -> vector<4x64xf32>
    %49 = arith.maximumf %46, %48 : vector<4x64xf32>
    %c8 = arith.constant 8 : index
    %c0_32 = arith.constant 0 : index
    %50 = vector.load %arg5[%c8, %c0_32] : memref<16x64xf32, #tpu.memory_space<vmem>>, vector<4x64xf32>
    tpu.vector_store %arg5[%c8, %c0_32], %49 {strides = array<i32>} : memref<16x64xf32, #tpu.memory_space<vmem>>, vector<4x64xf32>,
    %c48 = arith.constant 48 : index
    %c0_33 = arith.constant 0 : index
    %51 = vector.load %arg1[%c48, %c0_33] : memref<64x128xf32, #tpu.memory_space<vmem>>, vector<16x128xf32>
    %52 = vector.extract_strided_slice %51 {offsets = [0, 0], sizes = [8, 128], strides = [1, 1]} : vector<16x128xf32> to vector<8x128xf32>
    %53 = vector.extract_strided_slice %51 {offsets = [8, 0], sizes = [8, 128], strides = [1, 1]} : vector<16x128xf32> to vector<8x128xf32>
    %54 = arith.maximumf %52, %53 : vector<8x128xf32>
    %55 = vector.extract_strided_slice %54 {offsets = [0, 0], sizes = [7, 128], strides = [1, 1]} : vector<8x128xf32> to vector<7x128xf32>
    %56 = vector.extract_strided_slice %54 {offsets = [1, 0], sizes = [7, 128], strides = [1, 1]} : vector<8x128xf32> to vector<7x128xf32>
    %57 = arith.maximumf %55, %56 : vector<7x128xf32>
    %58 = arith.truncf %57 : vector<7x128xf32> to vector<7x128xbf16>
    %c0_34 = arith.constant 0 : index
    %c0_35 = arith.constant 0 : index
    %59 = vector.load %arg2[%c0_34, %c0_35] : memref<4x7xbf16, #tpu.memory_space<vmem>>, vector<4x7xbf16>
    %cst_36 = arith.constant dense<0.000000e+00> : vector<4x128xf32>
    %60 = tpu.matmul %59, %58, %cst_36 {dimension_numbers = #tpu.dot_dimension_numbers<[1], [0], [0], [1], [0, 0, 1, 1], [], []>} : vector<4x7xbf16>, vector<7x128xbf16>, vector<4x128xf32> -> vector<4x128xf32>
    %61 = arith.truncf %60 : vector<4x128xf32> to vector<4x128xbf16>
    %c0_37 = arith.constant 0 : index
    %c0_38 = arith.constant 0 : index
    %62 = vector.load %arg3[%c0_37, %c0_38] : memref<128x64xbf16, #tpu.memory_space<vmem>>, vector<128x64xbf16>
    %cst_39 = arith.constant dense<0.000000e+00> : vector<4x64xf32>
    %63 = tpu.matmul %61, %62, %cst_39 {dimension_numbers = #tpu.dot_dimension_numbers<[1], [0], [0], [1], [0, 0, 1, 1], [], []>} : vector<4x128xbf16>, vector<128x64xbf16>, vector<4x64xf32> -> vector<4x64xf32>
    %c0_40 = arith.constant 0 : index
    %c0_41 = arith.constant 0 : index
    %64 = vector.load %arg4[%c0_40, %c0_41] : memref<128x64xbf16, #tpu.memory_space<vmem>>, vector<128x64xbf16>
    %cst_42 = arith.constant dense<0.000000e+00> : vector<4x64xf32>
    %65 = tpu.matmul %61, %64, %cst_42 {dimension_numbers = #tpu.dot_dimension_numbers<[1], [0], [0], [1], [0, 0, 1, 1], [], []>} : vector<4x128xbf16>, vector<128x64xbf16>, vector<4x64xf32> -> vector<4x64xf32>
    %66 = arith.maximumf %63, %65 : vector<4x64xf32>
    %c12 = arith.constant 12 : index
    %c0_43 = arith.constant 0 : index
    %67 = vector.load %arg5[%c12, %c0_43] : memref<16x64xf32, #tpu.memory_space<vmem>>, vector<4x64xf32>
    tpu.vector_store %arg5[%c12, %c0_43], %66 {strides = array<i32>} : memref<16x64xf32, #tpu.memory_space<vmem>>, vector<4x64xf32>,
    return
  }
  func.func @transform_0(%arg0: i32) -> (i32, i32) {
    %c0_i32 = arith.constant 0 : i32
    %c0_i32_0 = arith.constant 0 : i32
    return %arg0, %c0_i32 : i32, i32
  }
  func.func @transform_1(%arg0: i32) -> (i32, i32) {
    %c0_i32 = arith.constant 0 : i32
    %c0_i32_0 = arith.constant 0 : i32
    %c0_i32_1 = arith.constant 0 : i32
    return %c0_i32, %c0_i32_0 : i32, i32
  }
  func.func @transform_2(%arg0: i32) -> (i32, i32) {
    %c0_i32 = arith.constant 0 : i32
    %c0_i32_0 = arith.constant 0 : i32
    %c0_i32_1 = arith.constant 0 : i32
    return %c0_i32, %c0_i32_0 : i32, i32
  }
  func.func @transform_3(%arg0: i32) -> (i32, i32) {
    %c0_i32 = arith.constant 0 : i32
    %c0_i32_0 = arith.constant 0 : i32
    %c0_i32_1 = arith.constant 0 : i32
    return %c0_i32, %c0_i32_0 : i32, i32
  }
  func.func @transform_4(%arg0: i32) -> (i32, i32) {
    %c0_i32 = arith.constant 0 : i32
    %c0_i32_0 = arith.constant 0 : i32
    return %arg0, %c0_i32 : i32, i32
  }
}

module attributes {stable_mosaic.version = 11 : i64} {
  func.func @_kernel_c(%arg0: i32, %arg1: memref<64x32xf32, #tpu.memory_space<vmem>>, %arg2: memref<1x32xf32, #tpu.memory_space<vmem>>, %arg3: memref<1x32xf32, #tpu.memory_space<vmem>>, %arg4: memref<32x128xbf16, #tpu.memory_space<vmem>>, %arg5: memref<64x128xf32, #tpu.memory_space<vmem>>, %arg6: memref<64x128xf32, #tpu.memory_space<vmem>>, %arg7: memref<1x2x128xf32, #tpu.memory_space<vmem>>) attributes {dimension_semantics = [#tpu.dimension_semantics<parallel>], iteration_bounds = array<i64: 2>, scalar_prefetch = 0 : i64, scratch_operands = 0 : i64, tpu.core_type = #tpu.core_type<tc>, window_params = [{transform_indices = @transform_0, window_bounds = array<i64: 64, 32>}, {pipeline_mode = #tpu.pipeline_mode<synchronous>, transform_indices = @transform_1, window_bounds = array<i64: 1, 32>}, {pipeline_mode = #tpu.pipeline_mode<synchronous>, transform_indices = @transform_2, window_bounds = array<i64: 1, 32>}, {pipeline_mode = #tpu.pipeline_mode<synchronous>, transform_indices = @transform_3, window_bounds = array<i64: 32, 128>}, {transform_indices = @transform_4, window_bounds = array<i64: 64, 128>}, {transform_indices = @transform_5, window_bounds = array<i64: 64, 128>}, {transform_indices = @transform_6, window_bounds = array<i64: 1, 2, 128>}]} {
    %c0 = arith.constant 0 : index
    %c0_0 = arith.constant 0 : index
    %0 = vector.load %arg1[%c0, %c0_0] : memref<64x32xf32, #tpu.memory_space<vmem>>, vector<64x32xf32>
    %c0_1 = arith.constant 0 : index
    %c0_2 = arith.constant 0 : index
    %1 = vector.load %arg2[%c0_1, %c0_2] : memref<1x32xf32, #tpu.memory_space<vmem>>, vector<1x32xf32>
    %2 = vector.broadcast %1 : vector<1x32xf32> to vector<64x32xf32>
    %3 = arith.mulf %0, %2 : vector<64x32xf32>
    %c0_3 = arith.constant 0 : index
    %c0_4 = arith.constant 0 : index
    %4 = vector.load %arg3[%c0_3, %c0_4] : memref<1x32xf32, #tpu.memory_space<vmem>>, vector<1x32xf32>
    %5 = vector.broadcast %4 : vector<1x32xf32> to vector<64x32xf32>
    %6 = arith.addf %3, %5 : vector<64x32xf32>
    %cst = arith.constant 0.000000e+00 : f32
    %7 = vector.broadcast %cst : f32 to vector<64x32xf32>
    %8 = arith.maximumf %6, %7 : vector<64x32xf32>
    %9 = arith.truncf %8 : vector<64x32xf32> to vector<64x32xbf16>
    %c0_5 = arith.constant 0 : index
    %c0_6 = arith.constant 0 : index
    %10 = vector.load %arg4[%c0_5, %c0_6] : memref<32x128xbf16, #tpu.memory_space<vmem>>, vector<32x128xbf16>
    %cst_7 = arith.constant dense<0.000000e+00> : vector<64x128xf32>
    %11 = tpu.matmul %9, %10, %cst_7 {dimension_numbers = #tpu.dot_dimension_numbers<[1], [0], [0], [1], [0, 0, 1, 1], [], []>} : vector<64x32xbf16>, vector<32x128xbf16>, vector<64x128xf32> -> vector<64x128xf32>
    %c0_8 = arith.constant 0 : index
    %c0_9 = arith.constant 0 : index
    %12 = vector.load %arg5[%c0_8, %c0_9] : memref<64x128xf32, #tpu.memory_space<vmem>>, vector<64x128xf32>
    %13 = arith.addf %11, %12 : vector<64x128xf32>
    %c0_10 = arith.constant 0 : index
    %c0_11 = arith.constant 0 : index
    %14 = vector.load %arg6[%c0_10, %c0_11] : memref<64x128xf32, #tpu.memory_space<vmem>>, vector<64x128xf32>
    tpu.vector_store %arg6[%c0_10, %c0_11], %13 {strides = array<i32>} : memref<64x128xf32, #tpu.memory_space<vmem>>, vector<64x128xf32>,
    %cst_12 = arith.constant dense<0.000000e+00> : vector<128xf32>
    %15 = vector.multi_reduction <add>, %13, %cst_12 [0] : vector<64x128xf32> to vector<128xf32>
    %16 = vector.shape_cast %15 : vector<128xf32> to vector<1x128xf32>
    %c0_13 = arith.constant 0 : index
    %c0_14 = arith.constant 0 : index
    %c0_15 = arith.constant 0 : index
    %17 = vector.load %arg7[%c0_13, %c0_14, %c0_15] : memref<1x2x128xf32, #tpu.memory_space<vmem>>, vector<1x1x128xf32>
    %18 = vector.shape_cast %17 : vector<1x1x128xf32> to vector<1x128xf32>
    %19 = vector.shape_cast %16 : vector<1x128xf32> to vector<1x1x128xf32>
    tpu.vector_store %arg7[%c0_13, %c0_14, %c0_15], %19 {strides = array<i32>} : memref<1x2x128xf32, #tpu.memory_space<vmem>>, vector<1x1x128xf32>,
    %20 = arith.mulf %13, %13 : vector<64x128xf32>
    %cst_16 = arith.constant dense<0.000000e+00> : vector<128xf32>
    %21 = vector.multi_reduction <add>, %20, %cst_16 [0] : vector<64x128xf32> to vector<128xf32>
    %22 = vector.shape_cast %21 : vector<128xf32> to vector<1x128xf32>
    %c0_17 = arith.constant 0 : index
    %c1 = arith.constant 1 : index
    %c0_18 = arith.constant 0 : index
    %23 = vector.load %arg7[%c0_17, %c1, %c0_18] : memref<1x2x128xf32, #tpu.memory_space<vmem>>, vector<1x1x128xf32>
    %24 = vector.shape_cast %23 : vector<1x1x128xf32> to vector<1x128xf32>
    %25 = vector.shape_cast %22 : vector<1x128xf32> to vector<1x1x128xf32>
    tpu.vector_store %arg7[%c0_17, %c1, %c0_18], %25 {strides = array<i32>} : memref<1x2x128xf32, #tpu.memory_space<vmem>>, vector<1x1x128xf32>,
    return
  }
  func.func @transform_0(%arg0: i32) -> (i32, i32) {
    %c0_i32 = arith.constant 0 : i32
    %c0_i32_0 = arith.constant 0 : i32
    return %arg0, %c0_i32 : i32, i32
  }
  func.func @transform_1(%arg0: i32) -> (i32, i32) {
    %c0_i32 = arith.constant 0 : i32
    %c0_i32_0 = arith.constant 0 : i32
    %c0_i32_1 = arith.constant 0 : i32
    return %c0_i32, %c0_i32_0 : i32, i32
  }
  func.func @transform_2(%arg0: i32) -> (i32, i32) {
    %c0_i32 = arith.constant 0 : i32
    %c0_i32_0 = arith.constant 0 : i32
    %c0_i32_1 = arith.constant 0 : i32
    return %c0_i32, %c0_i32_0 : i32, i32
  }
  func.func @transform_3(%arg0: i32) -> (i32, i32) {
    %c0_i32 = arith.constant 0 : i32
    %c0_i32_0 = arith.constant 0 : i32
    %c0_i32_1 = arith.constant 0 : i32
    return %c0_i32, %c0_i32_0 : i32, i32
  }
  func.func @transform_4(%arg0: i32) -> (i32, i32) {
    %c0_i32 = arith.constant 0 : i32
    %c0_i32_0 = arith.constant 0 : i32
    return %arg0, %c0_i32 : i32, i32
  }
  func.func @transform_5(%arg0: i32) -> (i32, i32) {
    %c0_i32 = arith.constant 0 : i32
    %c0_i32_0 = arith.constant 0 : i32
    return %arg0, %c0_i32 : i32, i32
  }
  func.func @transform_6(%arg0: i32) -> (i32, i32, i32) {
    %c0_i32 = arith.constant 0 : i32
    %c0_i32_0 = arith.constant 0 : i32
    %c0_i32_1 = arith.constant 0 : i32
    return %arg0, %c0_i32, %c0_i32_0 : i32, i32, i32
  }
}

</mosaic_0001>

<bundles_post_ra>
// kernel: tile.73
= control target key start
LH: loop header
LB: loop body
LE: loop exit
PB: predicated region body
PF: predicated region fallthrough
CT: control target
= control target key end

     0   :  { %s22_s0 = inlined_call_operand.vmem [shape: f32[4], index: 0, kind: input, shape index: {}]   ;;  %s23_s1 = inlined_call_operand.vmem [shape: f32[8,4], index: 1, kind: output, shape index: {}]  }
   0x1   :  { %v4_v0 = vld [vmem:[%s22_s0] ss:$0 sm:$0xff] }
   0x2   :  { %5 = vst [vmem:[%s23_s1] sm:$0xff] %v4_v0 }

// kernel: tile.74
= control target key start
LH: loop header
LB: loop body
LE: loop exit
PB: predicated region body
PF: predicated region fallthrough
CT: control target
= control target key end

     0   :  { %s67_s10 = smov 28   ;;  %s68_s11 = smov 20   ;;  %vm3_vm0 = vcmask 31744   ;;  %vm9_vm1 = vcmask 261344   ;;  %vm15_vm2 = vcmask 228544   ;;  %vm21_vm3 = vcmask 195744   ;;  %s111_s0 = inlined_call_operand.vmem [shape: f32[8,4], index: 0, kind: input, shape index: {}]   ;;  %s112_s1 = inlined_call_operand.vmem [shape: f32[1,32], index: 1, kind: output, shape index: {}]  }
   0x1   :  { %v53_v0 = vld [vmem:[%s111_s0 + $0x7] sm:$0x1]   ;;  %v55_v1 = vld [vmem:[%s111_s0 + $0x5] sm:$0x1]   ;;  %v54_v2 = vld [vmem:[%s111_s0 + $0x6] sm:$0x1]  }
   0x2   :  { %7 = vrot.lane.b32.xlu0 %v53_v0, %s67_s10  ;;  %19 = vrot.lane.b32.xlu1 %v55_v1, %s68_s11  ;;  %v56_v3 = vld [vmem:[%s111_s0 + $0x4] sm:$0x1]   ;;  %v2_v4 = vld [vmem:[%s111_s0] sm:$0x1]   ;;  %s69_s18 = smov 24   ;;  %s70_s19 = smov 16  }
   0x3   :  { %4 = vst.msk [vmem:[#allocation0] sm:$0x1] %vm3_vm0, %v2_v4   ;;  %v57_v5 = vld [vmem:[%s111_s0 + $0x3] sm:$0x1]   ;;  %v58_v6 = vld [vmem:[%s111_s0 + $0x2] sm:$0x1]  }
   0x4   :  { %s71_s24 = smov 12   ;;  %s72_s25 = smov 8   ;;  %v59_v7 = vld [vmem:[%s111_s0 + $0x1] sm:$0x1]   ;;  %vm27_vm4 = vcmask 162944   ;;  %vm33_vm5 = vcmask 130144  }
   0x5   :  { %s73_s0 = smov 4   ;;  %vm39_vm6 = vcmask 97344   ;;  %vm45_vm7 = vcmask 64544  }
   0x6   :  { %13 = vrot.lane.b32.xlu0 %v54_v2, %s69_s18  ;;  %25 = vrot.lane.b32.xlu1 %v56_v3, %s70_s19 }
   0xa   :  { %31 = vrot.lane.b32.xlu0 %v57_v5, %s71_s24  ;;  %37 = vrot.lane.b32.xlu1 %v58_v6, %s72_s25 }
   0xe   :  { %43 = vrot.lane.b32.xlu0 %v59_v7, %s73_s0 }
  0x74   :  { %v8_v8 = vpop.permute.xlu0 %7   ;;  %v20_v9 = vpop.permute.xlu1 %19  }
  0x75   :  { %10 = vst.msk [vmem:[#allocation0] sm:$0x1] %vm9_vm1, %v8_v8  }
  0x78   :  { %v14_v10 = vpop.permute.xlu0 %13   ;;  %v26_v11 = vpop.permute.xlu1 %25  }
  0x79   :  { %16 = vst.msk [vmem:[#allocation0] sm:$0x1] %vm15_vm2, %v14_v10  }
  0x7a   :  { %22 = vst.msk [vmem:[#allocation0] sm:$0x1] %vm21_vm3, %v20_v9  }
  0x7b   :  { %28 = vst.msk [vmem:[#allocation0] sm:$0x1] %vm27_vm4, %v26_v11  }
  0x7c   :  { %v32_v12 = vpop.permute.xlu0 %31   ;;  %v38_v13 = vpop.permute.xlu1 %37  }
  0x7d   :  { %34 = vst.msk [vmem:[#allocation0] sm:$0x1] %vm33_vm5, %v32_v12  }
  0x7e   :  { %40 = vst.msk [vmem:[#allocation0] sm:$0x1] %vm39_vm6, %v38_v13  }
  0x80   :  { %v44_v14 = vpop.permute.xlu0 %43  }
  0x81   :  { %46 = vst.msk [vmem:[#allocation0] sm:$0x1] %vm45_vm7, %v44_v14  }
  0x88   :  { %v50_v15 = vld [vmem:[#allocation0] sm:$0x1] }
  0x89   :  { %52 = vst [vmem:[%s112_s1] sm:$0x1] %v50_v15 }

// kernel: down_refinement_block.8
= control target key start
LH: loop header
LB: loop body
LE: loop exit
PB: predicated region body
PF: predicated region fallthrough
CT: control target
= control target key end

     0   :  { %s268_s6 = smov 0   ;;  %s306_s0 = inlined_call_operand.vmem [shape: f32[128,32], index: 0, kind: input, shape index: {}]   ;;  %s307_s1 = inlined_call_operand.vmem [shape: f32[2,2,32], index: 1, kind: output, shape index: {}]  }
   0x1 LB: > { %s274_s7 = sadd.s32 4294967295, %s256_s6   ;;  %p236_p0 = scmp.ge.s32.totalorder %s256_s6, 1  ;;  %s256_s6 = sphi %s268_s6, %s11_s6  }
   0x2   : > { %p88_p1 = scmp.lt.s32.totalorder %s256_s6, 3 }
   0x4   : > { %p89_p2 = pnand %p236_p0, %p88_p1 }
   0x5   : > { %s237_s8 = sshll.u32 (!%p89_p2), %s274_s7, 3  ;;  %vm125_vm0 = vcmask (!%p89_p2), 261120   ;;  %p113_p4 = scmp.lt.s32.totalorder (!%p89_p2), %s274_s7, 1  ;;  %vm147_vm1 = vcmask (!%p89_p2), 253952  }
   0x6   : > { %92 = sbr.rel (%p89_p2) target bundleno = 48 (0x30), region = 24  ;;  %p108_p3 = scmp.lt.s32.totalorder (!%p89_p2), %s237_s8, 15 }
   0xd   : > { %s309_s8 = smov (!%p108_p3, %s237_s8), 15  ;;  %s311_s7 = smov (!%p113_p4, %s274_s7), 1 }
   0xe   : > { %s238_s9 = sshll.u32 %s309_s8, 3  ;;  %s239_s13 = sshll.u32 %s311_s7, 1 }
   0xf   : > { %s111_s12 = scalar_lea.vmem %s306_s0, %s238_s9  ;;  %s116_s16 = scalar_lea.vmem %s307_s1, %s239_s13 }
  0x10   : > { %v117_v0 = vld [vmem:[%s111_s12] sm:$0xff]  ;;  %v118_v1 = vld [vmem:[%s111_s12 + $0x8] sm:$0xff]  ;;  %v119_v2 = vld [vmem:[%s111_s12 + $0x10] sm:$0xff] }
  0x11   : > { %v120_v3 = vld [vmem:[%s111_s12 + $0x18] sm:$0xff]  ;;  %v126_v4 = vsel %vm125_vm0, %v117_v0, 0.0  ;;  %v127_v5 = vsel %vm125_vm0, %v118_v1, 0.0  ;;  %v129_v6 = vsel %vm125_vm0, %v119_v2, 0.0  ;;  %v149_v7 = vmul.f32 %v117_v0, %v117_v0  ;;  %v121_v8 = vld [vmem:[%s111_s12 + $0x20] sm:$0xff]  ;;  %v122_v13 = vld [vmem:[%s111_s12 + $0x28] sm:$0xff] }
  0x12   : > { %v128_v9 = vadd.f32 %v127_v5, %v126_v4  ;;  %v131_v10 = vsel %vm125_vm0, %v120_v3, 0.0  ;;  %v150_v11 = vmul.f32 %v118_v1, %v118_v1  ;;  %v151_v12 = vmul.f32 %v119_v2, %v119_v2  ;;  %v123_v20 = vld [vmem:[%s111_s12 + $0x30] sm:$0xff]  ;;  %v124_v27 = vld [vmem:[%s111_s12 + $0x38] sm:$0xff] }
  0x13   : > { %v152_v15 = vmul.f32 %v120_v3, %v120_v3  ;;  %v133_v16 = vsel %vm125_vm0, %v121_v8, 0.0  ;;  %v153_v17 = vmul.f32 %v121_v8, %v121_v8  ;;  %v157_v18 = vsel %vm125_vm0, %v149_v7, 0.0 }
  0x14   : > { %v130_v14 = vadd.f32 %v129_v6, %v128_v9  ;;  %v158_v19 = vsel %vm125_vm0, %v150_v11, 0.0  ;;  %v160_v23 = vsel %vm125_vm0, %v151_v12, 0.0  ;;  %v135_v24 = vsel %vm125_vm0, %v122_v13, 0.0 }
  0x15   : > { %v159_v22 = vadd.f32 %v158_v19, %v157_v18  ;;  %v154_v25 = vmul.f32 %v122_v13, %v122_v13  ;;  %v162_v26 = vsel %vm125_vm0, %v152_v15, 0.0  ;;  %v137_v30 = vsel %vm125_vm0, %v123_v20, 0.0 }
  0x16   : > { %v132_v21 = vadd.f32 %v131_v10, %v130_v14  ;;  %v155_v31 = vmul.f32 %v123_v20, %v123_v20  ;;  %v164_v32 = vsel %vm125_vm0, %v153_v17, 0.0  ;;  %v139_v35 = vsel %vm125_vm0, %v124_v27, 0.0 }
  0x17   : > { %v161_v29 = vadd.f32 %v160_v23, %v159_v22  ;;  %v156_v36 = vmul.f32 %v124_v27, %v124_v27  ;;  %v166_v37 = vsel %vm125_vm0, %v154_v25, 0.0 }
  0x18   : > { %v134_v28 = vadd.f32 %v133_v16, %v132_v21  ;;  %v168_v40 = vsel %vm125_vm0, %v155_v31, 0.0 }
  0x19   : > { %v163_v34 = vadd.f32 %v162_v26, %v161_v29  ;;  %v170_v43 = vsel %vm125_vm0, %v156_v36, 0.0 }
  0x1a   : > { %v136_v33 = vadd.f32 %v135_v24, %v134_v28 }
  0x1b   : > { %v165_v39 = vadd.f32 %v164_v32, %v163_v34 }
  0x1c   : > { %v138_v38 = vadd.f32 %v137_v30, %v136_v33 }
  0x1d   : > { %v167_v42 = vadd.f32 %v166_v37, %v165_v39 }
  0x1e   : > { %v140_v41 = vadd.f32 %v139_v35, %v138_v38 }
  0x1f   : > { %v169_v45 = vadd.f32 %v168_v40, %v167_v42 }
  0x20   : > { %v141_v44 = vrot.slane %v140_v41, 4 }
  0x21   : > { %v171_v47 = vadd.f32 %v170_v43, %v169_v45 }
  0x22   : > { %v142_v46 = vadd.f32 %v141_v44, %v140_v41 }
  0x23   : > { %v172_v49 = vrot.slane %v171_v47, 4 }
  0x24   : > { %v143_v48 = vrot.slane %v142_v46, 2 }
  0x25   : > { %v173_v51 = vadd.f32 %v172_v49, %v171_v47 }
  0x26   : > { %v144_v50 = vadd.f32 %v143_v48, %v142_v46 }
  0x27   : > { %v174_v53 = vrot.slane %v173_v51, 2 }
  0x28   : > { %v145_v52 = vrot.slane %v144_v50, 1 }
  0x29   : > { %v175_v55 = vadd.f32 %v174_v53, %v173_v51 }
  0x2a   : > { %v146_v54 = vadd.f32 %v145_v52, %v144_v50 }
  0x2b   : > { %v176_v56 = vrot.slane %v175_v55, 1 }
  0x2c   : > { %148 = vst.msk [vmem:[%s116_s16] sm:$0x1] %vm147_vm1, %v146_v54 }
  0x2d   : > { %v177_v57 = vadd.f32 %v176_v56, %v175_v55 }
  0x2f   : > { %178 = vst.msk [vmem:[%s116_s16 + $0x1] sm:$0x1] %vm147_vm1, %v177_v57 }
  0x30 PF: > { %s11_s6 = sadd.s32 1, %s256_s6  }
  0x31   : > { %p8_p5 = scmp.ge.s32.totalorder %s11_s6, 4  }
  0x33   :  { %10 = sbr.rel (!%p8_p5) target bundleno = 1 (0x1), region = 54 }

// kernel: tile.113
= control target key start
LH: loop header
LB: loop body
LE: loop exit
PB: predicated region body
PF: predicated region fallthrough
CT: control target
= control target key end

     0   :  { %s22_s0 = inlined_call_operand.vmem [shape: f32[16], index: 0, kind: input, shape index: {}]   ;;  %s23_s1 = inlined_call_operand.vmem [shape: f32[8,16], index: 1, kind: output, shape index: {}]  }
   0x1   :  { %v4_v0 = vld [vmem:[%s22_s0] ss:$0 sm:$0xff] }
   0x2   :  { %5 = vst [vmem:[%s23_s1] sm:$0xff] %v4_v0 }

// kernel: tile.114
= control target key start
LH: loop header
LB: loop body
LE: loop exit
PB: predicated region body
PF: predicated region fallthrough
CT: control target
= control target key end

     0   :  { %s67_s10 = smov 112   ;;  %s68_s11 = smov 80   ;;  %vm3_vm0 = vcmask 130048   ;;  %vm9_vm1 = vcmask 1048448   ;;  %vm15_vm2 = vcmask 917248   ;;  %vm21_vm3 = vcmask 786048   ;;  %s111_s0 = inlined_call_operand.vmem [shape: f32[8,16], index: 0, kind: input, shape index: {}]   ;;  %s112_s1 = inlined_call_operand.vmem [shape: f32[1,128], index: 1, kind: output, shape index: {}]  }
   0x1   :  { %v53_v0 = vld [vmem:[%s111_s0 + $0x7] sm:$0x1]   ;;  %v55_v1 = vld [vmem:[%s111_s0 + $0x5] sm:$0x1]   ;;  %v54_v2 = vld [vmem:[%s111_s0 + $0x6] sm:$0x1]  }
   0x2   :  { %7 = vrot.lane.b32.xlu0 %v53_v0, %s67_s10  ;;  %19 = vrot.lane.b32.xlu1 %v55_v1, %s68_s11  ;;  %v56_v3 = vld [vmem:[%s111_s0 + $0x4] sm:$0x1]   ;;  %v2_v4 = vld [vmem:[%s111_s0] sm:$0x1]   ;;  %s69_s18 = smov 96   ;;  %s70_s19 = smov 64  }
   0x3   :  { %4 = vst.msk [vmem:[#allocation0] sm:$0x1] %vm3_vm0, %v2_v4   ;;  %v57_v5 = vld [vmem:[%s111_s0 + $0x3] sm:$0x1]   ;;  %v58_v6 = vld [vmem:[%s111_s0 + $0x2] sm:$0x1]  }
   0x4   :  { %s71_s24 = smov 48   ;;  %s72_s25 = smov 32   ;;  %v59_v7 = vld [vmem:[%s111_s0 + $0x1] sm:$0x1]   ;;  %vm27_vm4 = vcmask 654848   ;;  %vm33_vm5 = vcmask 523648  }
   0x5   :  { %s73_s0 = smov 16   ;;  %vm39_vm6 = vcmask 392448   ;;  %vm45_vm7 = vcmask 261248  }
   0x6   :  { %13 = vrot.lane.b32.xlu0 %v54_v2, %s69_s18  ;;  %25 = vrot.lane.b32.xlu1 %v56_v3, %s70_s19 }
   0xa   :  { %31 = vrot.lane.b32.xlu0 %v57_v5, %s71_s24  ;;  %37 = vrot.lane.b32.xlu1 %v58_v6, %s72_s25 }
   0xe   :  { %43 = vrot.lane.b32.xlu0 %v59_v7, %s73_s0 }
  0x74   :  { %v8_v8 = vpop.permute.xlu0 %7   ;;  %v20_v9 = vpop.permute.xlu1 %19  }
  0x75   :  { %10 = vst.msk [vmem:[#allocation0] sm:$0x1] %vm9_vm1, %v8_v8  }
  0x78   :  { %v14_v10 = vpop.permute.xlu0 %13   ;;  %v26_v11 = vpop.permute.xlu1 %25  }
  0x79   :  { %16 = vst.msk [vmem:[#allocation0] sm:$0x1] %vm15_vm2, %v14_v10  }
  0x7a   :  { %22 = vst.msk [vmem:[#allocation0] sm:$0x1] %vm21_vm3, %v20_v9  }
  0x7b   :  { %28 = vst.msk [vmem:[#allocation0] sm:$0x1] %vm27_vm4, %v26_v11  }
  0x7c   :  { %v32_v12 = vpop.permute.xlu0 %31   ;;  %v38_v13 = vpop.permute.xlu1 %37  }
  0x7d   :  { %34 = vst.msk [vmem:[#allocation0] sm:$0x1] %vm33_vm5, %v32_v12  }
  0x7e   :  { %40 = vst.msk [vmem:[#allocation0] sm:$0x1] %vm39_vm6, %v38_v13  }
  0x80   :  { %v44_v14 = vpop.permute.xlu0 %43  }
  0x81   :  { %46 = vst.msk [vmem:[#allocation0] sm:$0x1] %vm45_vm7, %v44_v14  }
  0x88   :  { %v50_v15 = vld [vmem:[#allocation0] sm:$0x1] }
  0x89   :  { %52 = vst [vmem:[%s112_s1] sm:$0x1] %v50_v15 }

// kernel: down_refinement_block.11
= control target key start
LH: loop header
LB: loop body
LE: loop exit
PB: predicated region body
PF: predicated region fallthrough
CT: control target
= control target key end

     0   :  { %s681_s21 = smov 0   ;;  %s740_s0 = inlined_call_operand.vmem [shape: f32[128,32], index: 0, kind: input, shape index: {}]   ;;  %s741_s1 = inlined_call_operand.vmem [shape: f32[1,32], index: 1, kind: input, shape index: {}]   ;;  %s742_s2 = inlined_call_operand.vmem [shape: f32[1,32], index: 2, kind: input, shape index: {}]   ;;  %s743_s3 = inlined_call_operand.vmem [shape: bf16[32,128], index: 3, kind: input, shape index: {}]   ;;  %s744_s4 = inlined_call_operand.vmem [shape: f32[128,128], index: 4, kind: input, shape index: {}]   ;;  %s745_s5 = inlined_call_operand.vmem [shape: f32[128,128], index: 5, kind: output, shape index: {0}]   ;;  %s746_s6 = inlined_call_operand.vmem [shape: f32[2,2,128], index: 6, kind: output, shape index: {1}]  }
   0x1 LB: > { %s687_s22 = sadd.s32 4294967295, %s644_s21   ;;  %p588_p0 = scmp.ge.s32.totalorder %s644_s21, 1  ;;  %s644_s21 = sphi %s681_s21, %s17_s21  }
   0x2   : > { %p227_p1 = scmp.lt.s32.totalorder %s644_s21, 3 }
   0x4   : > { %p228_p2 = pnand %p588_p0, %p227_p1 }
   0x5   : > { %v636_v0 = vld [vmem:[%s743_s3] sm:$0xff] (!%p228_p2)   ;;  %s589_s25 = sshll.u32 (!%p228_p2), %s687_s22, 3  ;;  %v637_v1 = vld [vmem:[%s743_s3 + $0x8] sm:$0xff] (!%p228_p2)   ;;  %vm363_vm0 = vcmask (!%p228_p2), 261120   ;;  %p284_p4 = scmp.lt.s32.totalorder (!%p228_p2), %s687_s22, 1 }
   0x6   : > { %231 = sbr.rel (%p228_p2) target bundleno = 272 (0x110), region = 40  ;;  %p267_p3 = scmp.lt.s32.totalorder (!%p228_p2), %s589_s25, 15  ;;  %612 = vmatprep.subr.bf16.mxu0 (!%p228_p2), %v636_v0  ;;  %624 = vmatprep.subr.bf16.mxu1 (!%p228_p2), %v636_v0  ;;  %v596_v2 = vld [vmem:[%s741_s1] ss:$0 sm:$0xff] (!%p228_p2) }
   0x7   : > { %613 = vmatpush3.bf16.msra.mxu0 (!%p228_p2), %v636_v0  ;;  %626 = vmatpush3.bf16.msra.mxu1 (!%p228_p2), %v636_v0  ;;  %v597_v3 = vld [vmem:[%s742_s2] ss:$0 sm:$0xff] (!%p228_p2) }
   0x8   : > { %614 = vmatprep.subr.bf16.mxu0 (!%p228_p2), %v637_v1  ;;  %625 = vmatprep.subr.bf16.mxu1 (!%p228_p2), %v637_v1 }
   0xb   : > { %615 = vmatpush3.bf16.msra.mxu0 (!%p228_p2), %v637_v1  ;;  %627 = vmatpush3.bf16.msra.mxu1 (!%p228_p2), %v637_v1 }
   0xd   : > { %s748_s25 = smov (!%p267_p3, %s589_s25), 15  ;;  %s750_s22 = smov (!%p284_p4, %s687_s22), 1 }
   0xe   : > { %s698_s28 = sshll.u32 %s748_s25, 3  ;;  %s595_s18 = sshll.u32 %s750_s22, 1 }
   0xf   : > { %s270_s9 = scalar_lea.vmem %s740_s0, %s698_s28  ;;  %s276_s14 = scalar_lea.vmem %s744_s4, %s698_s28 }
  0x10   : > { %v289_v4 = vld [vmem:[%s270_s9] sm:$0xff]  ;;  %v290_v5 = vld [vmem:[%s270_s9 + $0x8] sm:$0xff]  ;;  %v291_v6 = vld [vmem:[%s270_s9 + $0x10] sm:$0xff]  ;;  %s722_s17 = scalar_lea.vmem %s745_s5, %s698_s28  ;;  %s287_s23 = scalar_lea.vmem %s746_s6, %s595_s18 }
  0x11   : > { %v304_v7 = vmul.f32 %v596_v2, %v289_v4  ;;  %v305_v8 = vmul.f32 %v596_v2, %v290_v5  ;;  %v292_v9 = vld [vmem:[%s270_s9 + $0x18] sm:$0xff]  ;;  %v306_v10 = vmul.f32 %v596_v2, %v291_v6  ;;  %v293_v11 = vld [vmem:[%s270_s9 + $0x20] sm:$0xff]  ;;  %v294_v12 = vld [vmem:[%s270_s9 + $0x28] sm:$0xff] }
  0x12   : > { %v307_v13 = vmul.f32 %v596_v2, %v292_v9  ;;  %v308_v14 = vmul.f32 %v596_v2, %v293_v11  ;;  %v309_v15 = vmul.f32 %v596_v2, %v294_v12  ;;  %v295_v16 = vld [vmem:[%s270_s9 + $0x30] sm:$0xff]  ;;  %v296_v17 = vld [vmem:[%s270_s9 + $0x38] sm:$0xff]  ;;  %v343_v41 = vld [vmem:[%s276_s14] sm:$0xff] }
  0x13   : > { %v319_v18 = vadd.f32 %v597_v3, %v304_v7  ;;  %v320_v19 = vadd.f32 %v597_v3, %v305_v8  ;;  %v321_v20 = vadd.f32 %v597_v3, %v306_v10  ;;  %v310_v21 = vmul.f32 %v596_v2, %v295_v16  ;;  %v345_v40 = vld [vmem:[%s276_s14 + $0x10] sm:$0xff]  ;;  %v346_v43 = vld [vmem:[%s276_s14 + $0x18] sm:$0xff]  ;;  %v344_v47 = vld [vmem:[%s276_s14 + $0x8] sm:$0xff] }
  0x14   : > { %v322_v22 = vadd.f32 %v597_v3, %v307_v13  ;;  %v323_v23 = vadd.f32 %v597_v3, %v308_v14  ;;  %v324_v24 = vadd.f32 %v597_v3, %v309_v15  ;;  %v311_v25 = vmul.f32 %v596_v2, %v296_v17  ;;  %v349_v44 = vld [vmem:[%s276_s14 + $0x30] sm:$0xff]  ;;  %v347_v48 = vld [vmem:[%s276_s14 + $0x20] sm:$0xff]  ;;  %v350_v52 = vld [vmem:[%s276_s14 + $0x38] sm:$0xff] }
  0x15   : > { %v327_v26 = vmax.f32 %v319_v18, 0.0  ;;  %v328_v27 = vmax.f32 %v320_v19, 0.0  ;;  %v329_v28 = vmax.f32 %v321_v20, 0.0  ;;  %v325_v29 = vadd.f32 %v597_v3, %v310_v21  ;;  %v348_v57 = vld [vmem:[%s276_s14 + $0x28] sm:$0xff] }
  0x16   : > { %v330_v30 = vmax.f32 %v322_v22, 0.0  ;;  %v331_v31 = vmax.f32 %v323_v23, 0.0  ;;  %v332_v32 = vmax.f32 %v324_v24, 0.0  ;;  %v326_v33 = vadd.f32 %v597_v3, %v311_v25 }
  0x17   : > { %v335_v34 = vpack.c.bf16 %v328_v27, %v327_v26  ;;  %v333_v35 = vmax.f32 %v325_v29, 0.0 }
  0x18   : > { %v336_v36 = vpack.c.bf16 %v330_v30, %v329_v28  ;;  %v337_v37 = vpack.c.bf16 %v332_v32, %v331_v31  ;;  %v334_v38 = vmax.f32 %v326_v33, 0.0 }
  0x19   : > { %616 = vmatprep.mubr.msk.bf16.mxu0 %vm363_vm0, %v335_v34 }
  0x1a   : > { %617 = vmatmul.mubr.msk.bf16.vlgmr.msra.gmra.mrb[0].mxu0 %vm363_vm0, %v336_v36  ;;  %620 = vmatprep.mubr.msk.bf16.mxu1 %vm363_vm0, %v337_v37  ;;  %v338_v39 = vpack.c.bf16 %v334_v38, %v333_v35 }
  0x1c   : > { %621 = vmatmul.mubr.msk.bf16.vlgmr.msra.gmra.mrb[0].mxu1 %vm363_vm0, %v338_v39 }
  0xed   : > { %v618_v42 = vpop.f32.mrb[0].mxu0 }
  0xee   : > { %v419_v45 = vadd.f32 %v618_v42, %v345_v40  ;;  %v410_v46 = vpop.f32.mrb[1].mxu0 }
  0xef   : > { %v411_v49 = vadd.f32 %v410_v46, %v343_v41  ;;  %v619_v50 = vpop.f32.mrb[2].mxu0  ;;  %v622_v51 = vpop.f32.mrb[0].mxu1 }
  0xf0   : > { %443 = vst [vmem:[%s722_s17 + $0x10] sm:$0xff] %v419_v45  ;;  %v422_v53 = vadd.f32 %v619_v50, %v346_v43  ;;  %v413_v54 = vpop.f32.mrb[3].mxu0  ;;  %v435_v55 = vadd.f32 %v622_v51, %v349_v44  ;;  %v426_v56 = vpop.f32.mrb[1].mxu1  ;;  %v465_v3 = vmul.f32 %v419_v45, %v419_v45 }
  0xf1   : > { %441 = vst [vmem:[%s722_s17] sm:$0xff] %v411_v49  ;;  %v414_v58 = vadd.f32 %v413_v54, %v344_v47  ;;  %v427_v59 = vadd.f32 %v426_v56, %v347_v48  ;;  %v623_v60 = vpop.f32.mrb[2].mxu1  ;;  %v463_v63 = vmul.f32 %v411_v49, %v411_v49 }
  0xf2   : > { %444 = vst [vmem:[%s722_s17 + $0x18] sm:$0xff] %v422_v53  ;;  %447 = vst [vmem:[%s722_s17 + $0x30] sm:$0xff] %v435_v55  ;;  %v438_v61 = vadd.f32 %v623_v60, %v350_v52  ;;  %v429_v62 = vpop.f32.mrb[3].mxu1  ;;  %v466_v6 = vmul.f32 %v422_v53, %v422_v53  ;;  %v469_v15 = vmul.f32 %v435_v55, %v435_v55 }
  0xf3   : > { %442 = vst [vmem:[%s722_s17 + $0x8] sm:$0xff] %v414_v58  ;;  %v449_v0 = vadd.f32 %v414_v58, %v411_v49  ;;  %v464_v1 = vmul.f32 %v414_v58, %v414_v58  ;;  %445 = vst [vmem:[%s722_s17 + $0x20] sm:$0xff] %v427_v59  ;;  %v430_v2 = vadd.f32 %v429_v62, %v348_v57 }
  0xf4   : > { %448 = vst [vmem:[%s722_s17 + $0x38] sm:$0xff] %v438_v61  ;;  %v467_v9 = vmul.f32 %v427_v59, %v427_v59  ;;  %v470_v18 = vmul.f32 %v438_v61, %v438_v61 }
  0xf5   : > { %v450_v4 = vadd.f32 %v449_v0, %v419_v45  ;;  %v471_v5 = vadd.f32 %v464_v1, %v463_v63  ;;  %446 = vst [vmem:[%s722_s17 + $0x28] sm:$0xff] %v430_v2  ;;  %v468_v14 = vmul.f32 %v430_v2, %v430_v2 }
  0xf7   : > { %v472_v7 = vadd.f32 %v471_v5, %v465_v3  ;;  %v451_v8 = vadd.f32 %v450_v4, %v422_v53 }
  0xf9   : > { %v452_v10 = vadd.f32 %v451_v8, %v427_v59  ;;  %v473_v11 = vadd.f32 %v472_v7, %v466_v6 }
  0xfb   : > { %v474_v12 = vadd.f32 %v473_v11, %v467_v9  ;;  %v453_v13 = vadd.f32 %v452_v10, %v430_v2 }
  0xfd   : > { %v454_v16 = vadd.f32 %v453_v13, %v435_v55  ;;  %v475_v17 = vadd.f32 %v474_v12, %v468_v14 }
  0xff   : > { %v455_v19 = vadd.f32 %v454_v16, %v438_v61  ;;  %v476_v20 = vadd.f32 %v475_v17, %v469_v15 }
 0x101   : > { %v456_v21 = vrot.slane %v455_v19, 4  ;;  %v477_v22 = vadd.f32 %v476_v20, %v470_v18 }
 0x103   : > { %v457_v23 = vadd.f32 %v456_v21, %v455_v19  ;;  %v478_v24 = vrot.slane %v477_v22, 4 }
 0x105   : > { %v458_v25 = vrot.slane %v457_v23, 2  ;;  %v479_v26 = vadd.f32 %v478_v24, %v477_v22 }
 0x107   : > { %v459_v27 = vadd.f32 %v458_v25, %v457_v23  ;;  %v480_v28 = vrot.slane %v479_v26, 2 }
 0x109   : > { %v460_v29 = vrot.slane %v459_v27, 1  ;;  %v481_v30 = vadd.f32 %v480_v28, %v479_v26 }
 0x10b   : > { %v461_v31 = vadd.f32 %v460_v29, %v459_v27  ;;  %v482_v32 = vrot.slane %v481_v30, 1 }
 0x10d   : > { %462 = vst [vmem:[%s287_s23] sm:$0x1] %v461_v31  ;;  %v483_v33 = vadd.f32 %v482_v32, %v481_v30 }
 0x10f   : > { %484 = vst [vmem:[%s287_s23 + $0x1] sm:$0x1] %v483_v33 }
 0x110 PF: > { %s17_s21 = sadd.s32 1, %s644_s21  }
 0x111   : > { %p14_p5 = scmp.ge.s32.totalorder %s17_s21, 4  }
 0x113   :  { %16 = sbr.rel (!%p14_p5) target bundleno = 1 (0x1), region = 85 }

// kernel: down_refinement_block.9
= control target key start
LH: loop header
LB: loop body
LE: loop exit
PB: predicated region body
PF: predicated region fallthrough
CT: control target
= control target key end

     0   :  { %s966_s30 = smov 0   ;;  %s1075_s0 = inlined_call_operand.vmem [shape: f32[128,32], index: 0, kind: input, shape index: {}]   ;;  %s1076_s1 = inlined_call_operand.vmem [shape: f32[1,32], index: 1, kind: input, shape index: {}]   ;;  %s1077_s2 = inlined_call_operand.vmem [shape: f32[1,32], index: 2, kind: input, shape index: {}]   ;;  %s1078_s3 = inlined_call_operand.vmem [shape: bf16[32,32], index: 3, kind: input, shape index: {}]   ;;  %s1079_s4 = inlined_call_operand.vmem [shape: f32[1,32], index: 4, kind: input, shape index: {}]   ;;  %s1080_s5 = inlined_call_operand.vmem [shape: f32[1,32], index: 5, kind: input, shape index: {}]   ;;  %s1081_s6 = inlined_call_operand.vmem [shape: bf16[32,128], index: 6, kind: input, shape index: {}]   ;;  %s1082_s7 = inlined_call_operand.vmem [shape: f32[128,32], index: 7, kind: output, shape index: {0}]   ;;  %s1083_s8 = inlined_call_operand.vmem [shape: f32[128,128], index: 8, kind: output, shape index: {1}]   ;;  %s1084_s9 = inlined_call_operand.vmem [shape: f32[2,2,32], index: 9, kind: output, shape index: {2}]  }
   0x1 LB: > { %s972_s10 = sadd.s32 4294967295, %s914_s30   ;;  %p834_p0 = scmp.ge.s32.totalorder %s914_s30, 1  ;;  %s914_s30 = sphi %s966_s30, %s20_s30  }
   0x2   : > { %p293_p1 = scmp.lt.s32.totalorder %s914_s30, 3 }
   0x4   : > { %p294_p2 = pnand %p834_p0, %p293_p1 }
   0x5   : > { %v904_v0 = vld [vmem:[%s1078_s3] sm:$0xff] (!%p294_p2)   ;;  %s835_s13 = sshll.u32 (!%p294_p2), %s972_s10, 3  ;;  %v905_v1 = vld [vmem:[%s1078_s3 + $0x8] sm:$0xff] (!%p294_p2)   ;;  %vm427_vm0 = vcmask (!%p294_p2), 261120   ;;  %p356_p4 = scmp.lt.s32.totalorder (!%p294_p2), %s972_s10, 1  ;;  %vm534_vm1 = vcmask (!%p294_p2), 253952  }
   0x6   : > { %297 = sbr.rel (%p294_p2) target bundleno = 271 (0x10f), region = 48  ;;  %p339_p3 = scmp.lt.s32.totalorder (!%p294_p2), %s835_s13, 15  ;;  %872 = vmatprep.subr.bf16.mxu0 (!%p294_p2), %v904_v0  ;;  %v906_v2 = vld [vmem:[%s1081_s6] sm:$0xff] (!%p294_p2)   ;;  %v907_v3 = vld [vmem:[%s1081_s6 + $0x8] sm:$0xff] (!%p294_p2)  }
   0x7   : > { %873 = vmatpush3.bf16.msra.mxu0 (!%p294_p2), %v904_v0  ;;  %884 = vmatprep.subr.bf16.mxu1 (!%p294_p2), %v906_v2  ;;  %v842_v4 = vld [vmem:[%s1076_s1] ss:$0 sm:$0xff] (!%p294_p2) }
   0x8   : > { %874 = vmatprep.subr.bf16.mxu0 (!%p294_p2), %v905_v1  ;;  %885 = vmatpush3.bf16.msra.mxu1 (!%p294_p2), %v906_v2  ;;  %v850_v5 = vld [vmem:[%s1079_s4] ss:$0 sm:$0xff] (!%p294_p2) }
   0x9   : > { %v843_v6 = vld [vmem:[%s1077_s2] ss:$0 sm:$0xff] (!%p294_p2)  ;;  %886 = vmatprep.subr.bf16.mxu1 (!%p294_p2), %v907_v3 }
   0xa   : > { %v851_v31 = vld [vmem:[%s1080_s5] ss:$0 sm:$0xff] (!%p294_p2) }
   0xb   : > { %875 = vmatpush3.bf16.msra.mxu0 (!%p294_p2), %v905_v1 }
   0xc   : > { %887 = vmatpush3.bf16.msra.mxu1 (!%p294_p2), %v907_v3 }
   0xd   : > { %s1086_s13 = smov (!%p339_p3, %s835_s13), 15  ;;  %s1088_s10 = smov (!%p356_p4, %s972_s10), 1 }
   0xe   : > { %s989_s20 = sshll.u32 %s1086_s13, 3  ;;  %s841_s19 = sshll.u32 %s1088_s10, 1 }
   0xf   : > { %s342_s27 = scalar_lea.vmem %s1075_s0, %s989_s20  ;;  %s1019_s15 = scalar_lea.vmem %s1082_s7, %s989_s20 }
  0x10   : > { %v361_v7 = vld [vmem:[%s342_s27] sm:$0xff]  ;;  %v362_v8 = vld [vmem:[%s342_s27 + $0x8] sm:$0xff]  ;;  %v363_v9 = vld [vmem:[%s342_s27 + $0x10] sm:$0xff]  ;;  %s1035_s18 = scalar_lea.vmem %s1083_s8, %s989_s20  ;;  %s359_s22 = scalar_lea.vmem %s1084_s9, %s841_s19 }
  0x11   : > { %v376_v10 = vmul.f32 %v842_v4, %v361_v7  ;;  %v377_v11 = vmul.f32 %v842_v4, %v362_v8  ;;  %v364_v12 = vld [vmem:[%s342_s27 + $0x18] sm:$0xff]  ;;  %v378_v13 = vmul.f32 %v842_v4, %v363_v9  ;;  %v365_v14 = vld [vmem:[%s342_s27 + $0x20] sm:$0xff]  ;;  %v366_v15 = vld [vmem:[%s342_s27 + $0x28] sm:$0xff]  ;;  %v573_v16 = vmul.f32 %v850_v5, %v361_v7 }
  0x12   : > { %v379_v17 = vmul.f32 %v842_v4, %v364_v12  ;;  %v380_v18 = vmul.f32 %v842_v4, %v365_v14  ;;  %v381_v19 = vmul.f32 %v842_v4, %v366_v15  ;;  %v367_v20 = vld [vmem:[%s342_s27 + $0x30] sm:$0xff]  ;;  %v368_v21 = vld [vmem:[%s342_s27 + $0x38] sm:$0xff]  ;;  %v574_v22 = vmul.f32 %v850_v5, %v362_v8 }
  0x13   : > { %v391_v23 = vadd.f32 %v843_v6, %v376_v10  ;;  %v392_v24 = vadd.f32 %v843_v6, %v377_v11  ;;  %v393_v25 = vadd.f32 %v843_v6, %v378_v13  ;;  %v382_v26 = vmul.f32 %v842_v4, %v367_v20 }
  0x14   : > { %v394_v27 = vadd.f32 %v843_v6, %v379_v17  ;;  %v395_v28 = vadd.f32 %v843_v6, %v380_v18  ;;  %v396_v29 = vadd.f32 %v843_v6, %v381_v19  ;;  %v383_v30 = vmul.f32 %v842_v4, %v368_v21 }
  0x15   : > { %v399_v32 = vmax.f32 %v391_v23, 0.0  ;;  %v400_v33 = vmax.f32 %v392_v24, 0.0  ;;  %v401_v34 = vmax.f32 %v393_v25, 0.0  ;;  %v397_v35 = vadd.f32 %v843_v6, %v382_v26 }
  0x16   : > { %v402_v36 = vmax.f32 %v394_v27, 0.0  ;;  %v403_v37 = vmax.f32 %v395_v28, 0.0  ;;  %v404_v38 = vmax.f32 %v396_v29, 0.0  ;;  %v398_v39 = vadd.f32 %v843_v6, %v383_v30 }
  0x17   : > { %v407_v40 = vpack.c.bf16 %v400_v33, %v399_v32  ;;  %v588_v41 = vadd.f32 %v851_v31, %v573_v16  ;;  %v589_v42 = vadd.f32 %v851_v31, %v574_v22  ;;  %v405_v45 = vmax.f32 %v397_v35, 0.0 }
  0x18   : > { %v408_v43 = vpack.c.bf16 %v402_v36, %v401_v34  ;;  %v409_v44 = vpack.c.bf16 %v404_v38, %v403_v37  ;;  %v575_v46 = vmul.f32 %v850_v5, %v363_v9  ;;  %v576_v49 = vmul.f32 %v850_v5, %v364_v12 }
  0x19   : > { %876 = vmatprep.mubr.msk.bf16.mxu0 %vm427_vm0, %v407_v40  ;;  %v596_v47 = vmax.f32 %v588_v41, 0.0  ;;  %v597_v48 = vmax.f32 %v589_v42, 0.0  ;;  %v577_v50 = vmul.f32 %v850_v5, %v365_v14  ;;  %v406_v51 = vmax.f32 %v398_v39, 0.0 }
  0x1a   : > { %877 = vmatmul.mubr.msk.bf16.vlgmr.msra.gmra.mrb[0].mxu0 %vm427_vm0, %v408_v43  ;;  %v590_v52 = vadd.f32 %v851_v31, %v575_v46  ;;  %v578_v53 = vmul.f32 %v850_v5, %v366_v15  ;;  %v579_v54 = vmul.f32 %v850_v5, %v367_v20  ;;  %v591_v56 = vadd.f32 %v851_v31, %v576_v49 }
  0x1b   : > { %880 = vmatprep.mubr.msk.bf16.mxu0 %vm427_vm0, %v409_v44  ;;  %v604_v55 = vpack.c.bf16 %v597_v48, %v596_v47  ;;  %v592_v57 = vadd.f32 %v851_v31, %v577_v50  ;;  %v580_v58 = vmul.f32 %v850_v5, %v368_v21  ;;  %v410_v1 = vpack.c.bf16 %v406_v51, %v405_v45 }
  0x1c   : > { %v598_v59 = vmax.f32 %v590_v52, 0.0  ;;  %v593_v60 = vadd.f32 %v851_v31, %v578_v53  ;;  %v599_v61 = vmax.f32 %v591_v56, 0.0  ;;  %v594_v63 = vadd.f32 %v851_v31, %v579_v54 }
  0x1d   : > { %888 = vmatprep.mubr.msk.bf16.mxu1 %vm427_vm0, %v604_v55  ;;  %v600_v62 = vmax.f32 %v592_v57, 0.0  ;;  %v595_v0 = vadd.f32 %v851_v31, %v580_v58 }
  0x1e   : > { %v601_v2 = vmax.f32 %v593_v60, 0.0  ;;  %v605_v3 = vpack.c.bf16 %v599_v61, %v598_v59  ;;  %v602_v6 = vmax.f32 %v594_v63, 0.0 }
  0x1f   : > { %v603_v7 = vmax.f32 %v595_v0, 0.0 }
  0x20   : > { %v606_v4 = vpack.c.bf16 %v601_v2, %v600_v62  ;;  %889 = vmatmul.mubr.msk.bf16.vlgmr.msra.gmra.mrb[0].mxu1 %vm427_vm0, %v605_v3 }
  0x21   : > { %v607_v5 = vpack.c.bf16 %v603_v7, %v602_v6 }
  0x22   : > { %881 = vmatmul.mubr.msk.bf16.gmra.mrb[4].mxu0 %vm427_vm0, %v410_v1  ;;  %892 = vmatprep.mubr.msk.bf16.mxu1 %vm427_vm0, %v606_v4 }
  0x28   : > { %893 = vmatmul.mubr.msk.bf16.gmra.mrb[4].mxu1 %vm427_vm0, %v607_v5 }
  0xed   : > { %v878_v8 = vpop.f32.mrb[0].mxu0 }
  0xee   : > { %507 = vst.msk [vmem:[%s1019_s15 + $0x10] sm:$0xff] %vm427_vm0, %v878_v8  ;;  %v474_v9 = vpop.f32.mrb[1].mxu0  ;;  %v538_v13 = vmul.f32 %v878_v8, %v878_v8  ;;  %v516_v18 = vsel %vm427_vm0, %v878_v8, 0.0 }
  0xef   : > { %505 = vst.msk [vmem:[%s1019_s15] sm:$0xff] %vm427_vm0, %v474_v9  ;;  %v536_v10 = vmul.f32 %v474_v9, %v474_v9  ;;  %v879_v11 = vpop.f32.mrb[2].mxu0  ;;  %v513_v14 = vsel %vm427_vm0, %v474_v9, 0.0 }
  0xf0   : > { %508 = vst.msk [vmem:[%s1019_s15 + $0x18] sm:$0xff] %vm427_vm0, %v879_v11  ;;  %v477_v12 = vpop.f32.mrb[3].mxu0  ;;  %v539_v20 = vmul.f32 %v879_v11, %v879_v11  ;;  %v547_v25 = vsel %vm427_vm0, %v538_v13, 0.0  ;;  %v518_v26 = vsel %vm427_vm0, %v879_v11, 0.0 }
  0xf1   : > { %506 = vst.msk [vmem:[%s1019_s15 + $0x8] sm:$0xff] %vm427_vm0, %v477_v12  ;;  %v514_v15 = vsel %vm427_vm0, %v477_v12, 0.0  ;;  %v537_v16 = vmul.f32 %v477_v12, %v477_v12  ;;  %v544_v19 = vsel %vm427_vm0, %v536_v10, 0.0 }
  0xf2   : > { %v515_v17 = vadd.f32 %v514_v15, %v513_v14  ;;  %v549_v33 = vsel %vm427_vm0, %v539_v20, 0.0 }
  0xf3   : > { %v545_v21 = vsel %vm427_vm0, %v537_v16, 0.0  ;;  %v890_v24 = vpop.f32.mrb[0].mxu1 }
  0xf4   : > { %v517_v22 = vadd.f32 %v516_v18, %v515_v17  ;;  %v546_v23 = vadd.f32 %v545_v21, %v544_v19  ;;  %703 = vst [vmem:[%s1035_s18 + $0x10] sm:$0xff] %v890_v24  ;;  %v670_v28 = vpop.f32.mrb[1].mxu1 }
  0xf5   : > { %v882_v27 = vpop.f32.mrb[4].mxu0  ;;  %701 = vst [vmem:[%s1035_s18] sm:$0xff] %v670_v28  ;;  %v891_v32 = vpop.f32.mrb[2].mxu1 }
  0xf6   : > { %v548_v29 = vadd.f32 %v547_v25, %v546_v23  ;;  %511 = vst.msk [vmem:[%s1019_s15 + $0x30] sm:$0xff] %vm427_vm0, %v882_v27  ;;  %v490_v30 = vpop.f32.mrb[5].mxu0  ;;  %v519_v31 = vadd.f32 %v518_v26, %v517_v22  ;;  %704 = vst [vmem:[%s1035_s18 + $0x18] sm:$0xff] %v891_v32  ;;  %v673_v37 = vpop.f32.mrb[3].mxu1  ;;  %v542_v41 = vmul.f32 %v882_v27, %v882_v27  ;;  %v524_v47 = vsel %vm427_vm0, %v882_v27, 0.0 }
  0xf7   : > { %509 = vst.msk [vmem:[%s1019_s15 + $0x20] sm:$0xff] %vm427_vm0, %v490_v30  ;;  %v520_v34 = vsel %vm427_vm0, %v490_v30, 0.0  ;;  %v540_v35 = vmul.f32 %v490_v30, %v490_v30  ;;  %v883_v36 = vpop.f32.mrb[6].mxu0  ;;  %702 = vst [vmem:[%s1035_s18 + $0x8] sm:$0xff] %v673_v37 }
  0xf8   : > { %v521_v38 = vadd.f32 %v520_v34, %v519_v31  ;;  %v550_v39 = vadd.f32 %v549_v33, %v548_v29  ;;  %512 = vst.msk [vmem:[%s1019_s15 + $0x38] sm:$0xff] %vm427_vm0, %v883_v36  ;;  %v493_v40 = vpop.f32.mrb[7].mxu0  ;;  %v543_v48 = vmul.f32 %v883_v36, %v883_v36  ;;  %v555_v53 = vsel %vm427_vm0, %v542_v41, 0.0 }
  0xf9   : > { %v551_v42 = vsel %vm427_vm0, %v540_v35, 0.0  ;;  %510 = vst.msk [vmem:[%s1019_s15 + $0x28] sm:$0xff] %vm427_vm0, %v493_v40  ;;  %v522_v43 = vsel %vm427_vm0, %v493_v40, 0.0  ;;  %v541_v44 = vmul.f32 %v493_v40, %v493_v40  ;;  %v526_v54 = vsel %vm427_vm0, %v883_v36, 0.0 }
  0xfa   : > { %v552_v45 = vadd.f32 %v551_v42, %v550_v39  ;;  %v523_v46 = vadd.f32 %v522_v43, %v521_v38  ;;  %v557_v59 = vsel %vm427_vm0, %v543_v48, 0.0 }
  0xfb   : > { %v553_v49 = vsel %vm427_vm0, %v541_v44, 0.0  ;;  %v894_v52 = vpop.f32.mrb[4].mxu1 }
  0xfc   : > { %v525_v50 = vadd.f32 %v524_v47, %v523_v46  ;;  %v554_v51 = vadd.f32 %v553_v49, %v552_v45  ;;  %707 = vst [vmem:[%s1035_s18 + $0x30] sm:$0xff] %v894_v52  ;;  %v686_v55 = vpop.f32.mrb[5].mxu1 }
  0xfd   : > { %705 = vst [vmem:[%s1035_s18 + $0x20] sm:$0xff] %v686_v55  ;;  %v895_v58 = vpop.f32.mrb[6].mxu1 }
  0xfe   : > { %v527_v56 = vadd.f32 %v526_v54, %v525_v50  ;;  %v556_v57 = vadd.f32 %v555_v53, %v554_v51  ;;  %708 = vst [vmem:[%s1035_s18 + $0x38] sm:$0xff] %v895_v58  ;;  %v689_v60 = vpop.f32.mrb[7].mxu1 }
  0xff   : > { %706 = vst [vmem:[%s1035_s18 + $0x28] sm:$0xff] %v689_v60 }
 0x100   : > { %v528_v61 = vrot.slane %v527_v56, 4  ;;  %v558_v62 = vadd.f32 %v557_v59, %v556_v57 }
 0x102   : > { %v529_v63 = vadd.f32 %v528_v61, %v527_v56  ;;  %v559_v0 = vrot.slane %v558_v62, 4 }
 0x104   : > { %v530_v1 = vrot.slane %v529_v63, 2  ;;  %v560_v2 = vadd.f32 %v559_v0, %v558_v62 }
 0x106   : > { %v531_v3 = vadd.f32 %v530_v1, %v529_v63  ;;  %v561_v4 = vrot.slane %v560_v2, 2 }
 0x108   : > { %v532_v6 = vrot.slane %v531_v3, 1  ;;  %v562_v7 = vadd.f32 %v561_v4, %v560_v2 }
 0x10a   : > { %v533_v5 = vadd.f32 %v532_v6, %v531_v3  ;;  %v563_v8 = vrot.slane %v562_v7, 1 }
 0x10c   : > { %535 = vst.msk [vmem:[%s359_s22] sm:$0x1] %vm534_vm1, %v533_v5  ;;  %v564_v9 = vadd.f32 %v563_v8, %v562_v7 }
 0x10e   : > { %565 = vst.msk [vmem:[%s359_s22 + $0x1] sm:$0x1] %vm534_vm1, %v564_v9 }
 0x10f PF: > { %s20_s30 = sadd.s32 1, %s914_s30  }
 0x110   : > { %p17_p5 = scmp.ge.s32.totalorder %s20_s30, 4  }
 0x112   :  { %19 = sbr.rel (!%p17_p5) target bundleno = 1 (0x1), region = 102 }

// kernel: down_refinement_block.10
= control target key start
LH: loop header
LB: loop body
LE: loop exit
PB: predicated region body
PF: predicated region fallthrough
CT: control target
= control target key end

     0   :  { %s2040_s24 = smov 0   ;;  %s2490_s0 = inlined_call_operand.vmem [shape: f32[128,32], index: 0, kind: input, shape index: {}]   ;;  %s2491_s1 = inlined_call_operand.vmem [shape: f32[1,32], index: 1, kind: input, shape index: {}]   ;;  %s2492_s2 = inlined_call_operand.vmem [shape: f32[1,32], index: 2, kind: input, shape index: {}]   ;;  %s2493_s3 = inlined_call_operand.vmem [shape: f32[64,1], index: 3, kind: input, shape index: {}]   ;;  %s2494_s4 = inlined_call_operand.vmem [shape: f32[64,1], index: 4, kind: input, shape index: {}]   ;;  %s2495_s5 = inlined_call_operand.vmem [shape: bf16[288,32], index: 5, kind: input, shape index: {}]   ;;  %s2496_s6 = inlined_call_operand.vmem [shape: f32[128,32], index: 6, kind: output, shape index: {0}]   ;;  %s2497_s7 = inlined_call_operand.vmem [shape: f32[2,2,32], index: 7, kind: output, shape index: {1}]  }
   0x1 LB: > { %s2046_s25 = sadd.s32 4294967295, %s1996_s24   ;;  %p1674_p0 = scmp.ge.s32.totalorder %s1996_s24, 1  ;;  %s1996_s24 = sphi %s2040_s24, %s18_s24  }
   0x2   : > { %p241_p1 = scmp.lt.s32.totalorder %s1996_s24, 3 }
   0x4   : > { %p242_p2 = pnand %p1674_p0, %p241_p1 }
   0x5   : > { %v1972_v0 = vld [vmem:[%s2495_s5] sm:$0xff] (!%p242_p2)   ;;  %s1675_s28 = sshll.u32 (!%p242_p2), %s2046_s25, 3  ;;  %v1973_v1 = vld [vmem:[%s2495_s5 + $0x8] sm:$0xff] (!%p242_p2)   ;;  %vm340_vm0 = vcmask (!%p242_p2), 261120   ;;  %v1998_v3 = vmov (!%p242_p2), 0.0   ;;  %v2079_v4 = vld [vmem:[%s2495_s5 + $0x10] sm:$0xff] (!%p242_p2)  }
   0x6   : > { %245 = sbr.rel (%p242_p2) target bundleno = 341 (0x155), region = 44  ;;  %p278_p3 = scmp.lt.s32.totalorder (!%p242_p2), %s1675_s28, 15  ;;  %1792 = vmatprep.subr.bf16.mxu0 (!%p242_p2), %v1972_v0  ;;  %1900 = vmatprep.subr.bf16.mxu1 (!%p242_p2), %v1972_v0  ;;  %v2062_v2 = vld [vmem:[%s2491_s1] ss:$0 sm:$0xff] (!%p242_p2)  ;;  %341 = vst.msk [vmem:[#allocation2] sm:$0xff] (!%p242_p2), %vm340_vm0, %v1998_v3  ;;  %342 = vst.msk [vmem:[#allocation2 + $0x8] sm:$0xff] (!%p242_p2), %vm340_vm0, %v1998_v3 }
   0x7   : > { %1793 = vmatpush3.bf16.msra.mxu0 (!%p242_p2), %v1972_v0  ;;  %1902 = vmatpush3.bf16.msra.mxu1 (!%p242_p2), %v1972_v0  ;;  %343 = vst.msk [vmem:[#allocation2 + $0x10] sm:$0xff] (!%p242_p2), %vm340_vm0, %v1998_v3  ;;  %344 = vst.msk [vmem:[#allocation2 + $0x18] sm:$0xff] (!%p242_p2), %vm340_vm0, %v1998_v3  ;;  %v2084_v5 = vld [vmem:[%s2495_s5 + $0x20] sm:$0xff] (!%p242_p2)   ;;  %v1999_v6 = vmov (!%p242_p2), 0   ;;  %v1977_v44 = vld [vmem:[%s2495_s5 + $0x28] sm:$0xff] (!%p242_p2)   ;;  %p289_p4 = scmp.lt.s32.totalorder (!%p242_p2), %s2046_s25, 1 }
   0x8   : > { %345 = vst.msk [vmem:[#allocation2 + $0x20] sm:$0xff] (!%p242_p2), %vm340_vm0, %v1998_v3  ;;  %346 = vst.msk [vmem:[#allocation2 + $0x28] sm:$0xff] (!%p242_p2), %vm340_vm0, %v1998_v3  ;;  %1794 = vmatprep.subr.bf16.mxu0 (!%p242_p2), %v1973_v1  ;;  %1901 = vmatprep.subr.bf16.mxu1 (!%p242_p2), %v1973_v1  ;;  %v1681_v7 = vld [vmem:[%s2492_s2] ss:$0 sm:$0xff] (!%p242_p2)  ;;  %v1976_v56 = vld [vmem:[%s2495_s5 + $0x18] sm:$0xff] (!%p242_p2)   ;;  %vm1551_vm1 = vcmask (!%p242_p2), 253952  }
   0x9   : > { %347 = vst.msk [vmem:[#allocation2 + $0x30] sm:$0xff] (!%p242_p2), %vm340_vm0, %v1998_v3  ;;  %348 = vst.msk [vmem:[#allocation2 + $0x38] sm:$0xff] (!%p242_p2), %vm340_vm0, %v1998_v3  ;;  %1970 = vset.pattern.permute.xlu0 (!%p242_p2), %v1999_v6  ;;  %1971 = vset.pattern.permute.xlu1 (!%p242_p2), %v1999_v6  ;;  %v1978_v60 = vld [vmem:[%s2495_s5 + $0x30] sm:$0xff] (!%p242_p2)  }
   0xa   : > { %349 = vst.msk [vmem:[#allocation2 + $0x40] sm:$0xff] (!%p242_p2), %vm340_vm0, %v1998_v3  ;;  %350 = vst.msk [vmem:[#allocation2 + $0x48] sm:$0xff] (!%p242_p2), %vm340_vm0, %v1998_v3  ;;  %v1979_v63 = vld [vmem:[%s2495_s5 + $0x50] sm:$0xff] (!%p242_p2)  }
   0xb   : > { %351 = vst.msk [vmem:[#allocation2 + $0x50] sm:$0xff] (!%p242_p2), %vm340_vm0, %v1998_v3  ;;  %352 = vst.msk [vmem:[#allocation2 + $0x58] sm:$0xff] (!%p242_p2), %vm340_vm0, %v1998_v3  ;;  %1795 = vmatpush3.bf16.msra.mxu0 (!%p242_p2), %v1973_v1  ;;  %1903 = vmatpush3.bf16.msra.mxu1 (!%p242_p2), %v1973_v1 }
   0xc   : > { %1804 = vmatprep.subr.bf16.mxu1 (!%p242_p2), %v2079_v4  ;;  %1816 = vmatprep.subr.bf16.mxu0 (!%p242_p2), %v2084_v5 }
   0xd   : > { %s2499_s28 = smov (!%p278_p3, %s1675_s28), 15  ;;  %v361_v39 = vld [vmem:[#allocation2 + $0x7] sm:$0xff]  ;;  %s2501_s25 = smov (!%p289_p4, %s2046_s25), 1 }
   0xe   : > { %s1676_s14 = sshll.u32 %s2499_s28, 3  ;;  %v530_v41 = vld [vmem:[#allocation2 + $0x8] sm:$0xff]  ;;  %s1679_s28 = sshll.u32 %s2501_s25, 1 }
   0xf   : > { %s2092_s17 = scalar_lea.vmem %s2490_s0, %s1676_s14  ;;  %s2442_s27 = scalar_lea.vmem %s2496_s6, %s1676_s14 }
  0x10   : > { %v294_v8 = vld [vmem:[%s2092_s17] sm:$0xff]  ;;  %v296_v9 = vld [vmem:[%s2092_s17 + $0x10] sm:$0xff]  ;;  %v297_v10 = vld [vmem:[%s2092_s17 + $0x18] sm:$0xff]  ;;  %s292_s30 = scalar_lea.vmem %s2497_s7, %s1679_s28 }
  0x11   : > { %v309_v11 = vmul.f32 %v2062_v2, %v294_v8  ;;  %v298_v12 = vld [vmem:[%s2092_s17 + $0x20] sm:$0xff]  ;;  %v311_v13 = vmul.f32 %v2062_v2, %v296_v9  ;;  %v312_v14 = vmul.f32 %v2062_v2, %v297_v10  ;;  %v295_v15 = vld [vmem:[%s2092_s17 + $0x8] sm:$0xff]  ;;  %v300_v19 = vld [vmem:[%s2092_s17 + $0x30] sm:$0xff] }
  0x12   : > { %v299_v16 = vld [vmem:[%s2092_s17 + $0x28] sm:$0xff]  ;;  %v313_v17 = vmul.f32 %v2062_v2, %v298_v12  ;;  %v310_v18 = vmul.f32 %v2062_v2, %v295_v15  ;;  %v315_v24 = vmul.f32 %v2062_v2, %v300_v19  ;;  %v301_v36 = vld [vmem:[%s2092_s17 + $0x38] sm:$0xff]  ;;  %v466_v9 = vld [vmem:[%s2493_s3] sm:$0xff] }
  0x13   : > { %v314_v20 = vmul.f32 %v2062_v2, %v299_v16  ;;  %v324_v21 = vadd.f32 %v1681_v7, %v309_v11  ;;  %v326_v22 = vadd.f32 %v1681_v7, %v311_v13  ;;  %v327_v23 = vadd.f32 %v1681_v7, %v312_v14  ;;  %v1980_v11 = vld [vmem:[%s2495_s5 + $0x38] sm:$0xff]   ;;  %476 = vperm.xlu0 %1970, %v466_v9   ;;  %v1983_v13 = vld [vmem:[%s2495_s5 + $0x60] sm:$0xff]   ;;  %v467_v16 = vld [vmem:[%s2493_s3 + $0x8] sm:$0xff] }
  0x14   : > { %v328_v25 = vadd.f32 %v1681_v7, %v313_v17  ;;  %v325_v26 = vadd.f32 %v1681_v7, %v310_v18  ;;  %v330_v31 = vadd.f32 %v1681_v7, %v315_v24  ;;  %v316_v37 = vmul.f32 %v2062_v2, %v301_v36  ;;  %v1981_v12 = vld [vmem:[%s2495_s5 + $0x58] sm:$0xff]   ;;  %v748_v19 = vld [vmem:[%s2494_s4] sm:$0xff]  ;;  %v468_v24 = vld [vmem:[%s2493_s3 + $0x10] sm:$0xff] }
  0x15   : > { %v329_v27 = vadd.f32 %v1681_v7, %v314_v20  ;;  %v332_v28 = vmax.f32 %v324_v21, 0.0  ;;  %v334_v29 = vmax.f32 %v326_v22, 0.0  ;;  %v335_v30 = vmax.f32 %v327_v23, 0.0  ;;  %v1982_v20 = vld [vmem:[%s2495_s5 + $0x40] sm:$0xff]   ;;  %758 = vperm.xlu1 %1971, %v748_v19  }
  0x16   : > { %v336_v32 = vmax.f32 %v328_v25, 0.0  ;;  %v333_v33 = vmax.f32 %v325_v26, 0.0  ;;  %v338_v35 = vmax.f32 %v330_v31, 0.0  ;;  %v331_v38 = vadd.f32 %v1681_v7, %v316_v37  ;;  %v749_v26 = vld [vmem:[%s2494_s4 + $0x8] sm:$0xff]  ;;  %v470_v31 = vld [vmem:[%s2493_s3 + $0x20] sm:$0xff] }
  0x17   : > { %v337_v34 = vmax.f32 %v329_v27, 0.0  ;;  %353 = vst.msk [vmem:[#allocation2 + $0x10] sm:$0xff] %vm340_vm0, %v332_v28  ;;  %355 = vst.msk [vmem:[#allocation2 + $0x20] sm:$0xff] %vm340_vm0, %v334_v29  ;;  %481 = vperm.xlu0 %1970, %v467_v16   ;;  %v469_v27 = vld [vmem:[%s2493_s3 + $0x18] sm:$0xff]  ;;  %v750_v28 = vld [vmem:[%s2494_s4 + $0x10] sm:$0xff] }
  0x18   : > { %356 = vst.msk [vmem:[#allocation2 + $0x28] sm:$0xff] %vm340_vm0, %v335_v30  ;;  %357 = vst.msk [vmem:[#allocation2 + $0x30] sm:$0xff] %vm340_vm0, %v336_v32  ;;  %v339_v40 = vmax.f32 %v331_v38, 0.0  ;;  %v471_v37 = vld [vmem:[%s2493_s3 + $0x28] sm:$0xff] }
  0x19   : > { %354 = vst.msk [vmem:[#allocation2 + $0x18] sm:$0xff] %vm340_vm0, %v333_v33  ;;  %358 = vst.msk [vmem:[#allocation2 + $0x38] sm:$0xff] %vm340_vm0, %v337_v34  ;;  %763 = vperm.xlu1 %1971, %v749_v26   ;;  %v1984_v33 = vld [vmem:[%s2495_s5 + $0x48] sm:$0xff]  }
  0x1a   : > { %359 = vst.msk [vmem:[#allocation2 + $0x40] sm:$0xff] %vm340_vm0, %v338_v35  ;;  %360 = vst.msk [vmem:[#allocation2 + $0x48] sm:$0xff] %vm340_vm0, %v339_v40  ;;  %v1985_v35 = vld [vmem:[%s2495_s5 + $0x68] sm:$0xff]   ;;  %v751_v40 = vld [vmem:[%s2494_s4 + $0x18] sm:$0xff] }
  0x1b   : > { %486 = vperm.xlu0 %1970, %v468_v24  }
  0x1d   : > { %768 = vperm.xlu1 %1971, %v750_v28  }
  0x1e   : > { %v2122_v42 = vld [vmem:[#allocation2 + $0xf] sm:$0xff]  ;;  %v2181_v1 = vld [vmem:[#allocation2 + $0x20] sm:$0xff] }
  0x1f   : > { %v2124_v43 = vld [vmem:[#allocation2 + $0x27] sm:$0xff]  ;;  %v2129_v45 = vld [vmem:[#allocation2 + $0x10] sm:$0xff]  ;;  %v369_v46 = vpack.c.bf16 %v2122_v42, %v361_v39  ;;  %491 = vperm.xlu0 %1970, %v469_v27  }
  0x20   : > { %v2133_v47 = vld [vmem:[#allocation2 + $0x2f] sm:$0xff]  ;;  %v2135_v48 = vld [vmem:[#allocation2 + $0x17] sm:$0xff]  ;;  %v2137_v49 = vld [vmem:[#allocation2 + $0x1f] sm:$0xff]  ;;  %v538_v57 = vpack.c.bf16 %v2129_v45, %v530_v41 }
  0x21   : > { %v2141_v50 = vpack.c.bf16 %v2133_v47, %v2124_v43  ;;  %v2145_v51 = vpack.c.bf16 %v2137_v49, %v2135_v48  ;;  %v2147_v52 = vld [vmem:[#allocation2 + $0x37] sm:$0xff]  ;;  %v2149_v53 = vld [vmem:[#allocation2 + $0x3f] sm:$0xff]  ;;  %v643_v54 = vld [vmem:[#allocation2 + $0x9] sm:$0xff]  ;;  %1796 = vmatprep.mubr.msk.bf16.mxu0 %vm340_vm0, %v369_v46  ;;  %v820_v25 = vpack.c.bf16 %v2135_v48, %v2122_v42  ;;  %v821_v30 = vpack.c.bf16 %v2124_v43, %v2137_v49 }
  0x22   : > { %v2154_v55 = vpack.c.bf16 %v2149_v53, %v2147_v52  ;;  %v2160_v58 = vld [vmem:[#allocation2 + $0x11] sm:$0xff]  ;;  %v645_v61 = vld [vmem:[#allocation2 + $0x19] sm:$0xff]  ;;  %v2173_v62 = vld [vmem:[#allocation2 + $0x21] sm:$0xff]  ;;  %v822_v32 = vpack.c.bf16 %v2147_v52, %v2133_v47  ;;  %773 = vperm.xlu1 %1971, %v751_v40  }
  0x23   : > { %1800 = vmatprep.mubr.msk.bf16.mxu1 %vm340_vm0, %v2141_v50  ;;  %1797 = vmatmul.mubr.msk.bf16.vlgmr.msra.gmra.mrb[0].mxu0 %vm340_vm0, %v2145_v51  ;;  %v651_v59 = vpack.c.bf16 %v2160_v58, %v643_v54  ;;  %v2179_v0 = vld [vmem:[#allocation2 + $0x18] sm:$0xff]  ;;  %v2184_v2 = vld [vmem:[#allocation2 + $0x28] sm:$0xff]  ;;  %v2186_v3 = vld [vmem:[#allocation2 + $0x30] sm:$0xff]  ;;  %v1054_v23 = vpack.c.bf16 %v645_v61, %v2160_v58 }
  0x24   : > { %1801 = vmatmul.mubr.msk.bf16.vlgmr.msra.gmra.mrb[0].mxu1 %vm340_vm0, %v2154_v55  ;;  %1817 = vmatpush3.bf16.msra.mxu0 %v2084_v5  ;;  %v647_v5 = vld [vmem:[#allocation2 + $0x29] sm:$0xff]  ;;  %v2192_v6 = vld [vmem:[#allocation2 + $0x31] sm:$0xff]  ;;  %v2196_v7 = vpack.c.bf16 %v2181_v1, %v2179_v0  ;;  %v2200_v8 = vpack.c.bf16 %v2186_v3, %v2184_v2  ;;  %v649_v14 = vld [vmem:[#allocation2 + $0x39] sm:$0xff]  ;;  %v941_v46 = vpack.c.bf16 %v2179_v0, %v2129_v45 }
  0x25   : > { %1805 = vmatpush3.bf16.msra.mxu1 %v2079_v4  ;;  %1818 = vmatprep.subr.bf16.mxu0 %v1977_v44  ;;  %v2190_v4 = vpack.c.bf16 %v2173_v62, %v645_v61  ;;  %v2206_v10 = vpack.c.bf16 %v2192_v6, %v647_v5  ;;  %v2221_v15 = vld [vmem:[#allocation2 + $0x41] sm:$0xff]  ;;  %v2228_v17 = vld [vmem:[#allocation2 + $0x38] sm:$0xff]  ;;  %v1055_v29 = vpack.c.bf16 %v647_v5, %v2173_v62  ;;  %v2285_v36 = vld [vmem:[#allocation2 + $0x49] sm:$0xff] }
  0x26   : > { %1806 = vmatprep.subr.bf16.mxu1 %v1976_v56  ;;  %1808 = vmatprep.mubr.msk.bf16.mxu1 %vm340_vm0, %v538_v57  ;;  %v2230_v18 = vld [vmem:[#allocation2 + $0x40] sm:$0xff]  ;;  %v2241_v21 = vpack.c.bf16 %v2221_v15, %v649_v14  ;;  %v1056_v34 = vpack.c.bf16 %v649_v14, %v2192_v6  ;;  %v1986_v41 = vld [vmem:[%s2495_s5 + $0x70] sm:$0xff]   ;;  %v1057_v42 = vpack.c.bf16 %v2285_v36, %v2221_v15  ;;  %v473_v48 = vld [vmem:[%s2493_s3 + $0x38] sm:$0xff] }
  0x27   : > { %1820 = vmatprep.mubr.msk.bf16.mxu0 %vm340_vm0, %v651_v59  ;;  %v2245_v22 = vpack.c.bf16 %v2230_v18, %v2228_v17  ;;  %496 = vperm.xlu0 %1970, %v470_v31   ;;  %v819_v38 = vld [vmem:[#allocation2 + $0x47] sm:$0xff]  ;;  %v942_v49 = vpack.c.bf16 %v2184_v2, %v2181_v1  ;;  %v943_v52 = vpack.c.bf16 %v2228_v17, %v2186_v3  ;;  %v1174_v54 = vld [vmem:[#allocation2 + $0x4f] sm:$0xff]  ;;  %v755_v59 = vld [vmem:[%s2494_s4 + $0x38] sm:$0xff] }
  0x28   : > { %1819 = vmatpush3.bf16.msra.mxu0 %v1977_v44  ;;  %v1987_v39 = vld [vmem:[%s2495_s5 + $0x80] sm:$0xff]   ;;  %v823_v43 = vpack.c.bf16 %v819_v38, %v2149_v53  ;;  %v472_v44 = vld [vmem:[%s2493_s3 + $0x30] sm:$0xff]  ;;  %v753_v45 = vld [vmem:[%s2494_s4 + $0x28] sm:$0xff] }
  0x29   : > { %1807 = vmatpush3.bf16.msra.mxu1 %v1976_v56  ;;  %1852 = vmatprep.subr.bf16.mxu0 %v1979_v63  ;;  %v752_v47 = vld [vmem:[%s2494_s4 + $0x20] sm:$0xff]  ;;  %v1989_v53 = vld [vmem:[%s2495_s5 + $0x88] sm:$0xff]   ;;  %v754_v56 = vld [vmem:[%s2494_s4 + $0x30] sm:$0xff] }
  0x2a   : > { %1828 = vmatprep.subr.bf16.mxu1 %v1978_v60  ;;  %778 = vperm.xlu1 %1971, %v752_v47   ;;  %v940_v57 = vld [vmem:[#allocation2 + $0x48] sm:$0xff] }
  0x2b   : > { %1821 = vmatmul.mubr.msk.bf16.vlgmr.msra.gmra.mrb[4].mxu0 %vm340_vm0, %v2190_v4  ;;  %501 = vperm.xlu0 %1970, %v471_v37   ;;  %v944_v58 = vpack.c.bf16 %v940_v57, %v2230_v18 }
  0x2c   : > { %1809 = vmatmul.mubr.msk.bf16.vlgmr.msra.gmra.mrb[4].mxu1 %vm340_vm0, %v2196_v7  ;;  %1853 = vmatpush3.bf16.msra.mxu0 %v1979_v63 }
  0x2d   : > { %1829 = vmatpush3.bf16.msra.mxu1 %v1978_v60  ;;  %1812 = vmatprep.mubr.msk.bf16.mxu1 %vm340_vm0, %v2200_v8  ;;  %v1295_v60 = vld [vmem:[#allocation2 + $0x50] sm:$0xff] }
  0x2e   : > { %1824 = vmatprep.mubr.msk.bf16.mxu0 %vm340_vm0, %v2206_v10  ;;  %1830 = vmatprep.subr.bf16.mxu1 %v1980_v11  ;;  %v1299_v62 = vpack.c.bf16 %v1295_v60, %v940_v57 }
  0x2f   : > { %1854 = vmatprep.subr.bf16.mxu0 %v1981_v12  ;;  %506 = vperm.xlu0 %1970, %v472_v44  }
  0x30   : > { %1855 = vmatpush3.bf16.msra.mxu0 %v1981_v12  ;;  %783 = vperm.xlu1 %1971, %v753_v45  }
  0x31   : > { %1831 = vmatpush3.bf16.msra.mxu1 %v1980_v11  ;;  %1864 = vmatprep.subr.bf16.mxu0 %v1983_v13 }
  0x32   : > { %1840 = vmatprep.subr.bf16.mxu1 %v1982_v20 }
  0x33   : > { %1825 = vmatmul.mubr.msk.bf16.gmra.mrb[8].mxu0 %vm340_vm0, %v2241_v21  ;;  %511 = vperm.xlu0 %1970, %v473_v48  }
  0x34   : > { %1813 = vmatmul.mubr.msk.bf16.gmra.mrb[8].mxu1 %vm340_vm0, %v2245_v22  ;;  %1856 = vmatprep.mubr.msk.bf16.mxu0 %vm340_vm0, %v1054_v23 }
  0x35   : > { %1832 = vmatprep.mubr.msk.bf16.mxu1 %vm340_vm0, %v820_v25  ;;  %788 = vperm.xlu1 %1971, %v754_v56  }
  0x39   : > { %793 = vperm.xlu1 %1971, %v755_v59  }
  0x3b   : > { %1857 = vmatmul.mubr.msk.bf16.vlgmr.msra.gmra.mrb[12].mxu0 %vm340_vm0, %v1055_v29 }
  0x3c   : > { %1833 = vmatmul.mubr.msk.bf16.vlgmr.msra.gmra.mrb[12].mxu1 %vm340_vm0, %v821_v30  ;;  %1865 = vmatpush3.bf16.msra.mxu0 %v1983_v13 }
  0x3d   : > { %1841 = vmatpush3.bf16.msra.mxu1 %v1982_v20  ;;  %1836 = vmatprep.mubr.msk.bf16.mxu1 %vm340_vm0, %v822_v32 }
  0x3e   : > { %1842 = vmatprep.subr.bf16.mxu1 %v1984_v33  ;;  %1860 = vmatprep.mubr.msk.bf16.mxu0 %vm340_vm0, %v1056_v34 }
  0x3f   : > { %1866 = vmatprep.subr.bf16.mxu0 %v1985_v35 }
  0x40   : > { %1867 = vmatpush3.bf16.msra.mxu0 %v1985_v35 }
  0x41   : > { %1843 = vmatpush3.bf16.msra.mxu1 %v1984_v33  ;;  %1888 = vmatprep.subr.bf16.mxu0 %v1987_v39 }
  0x42   : > { %1876 = vmatprep.subr.bf16.mxu1 %v1986_v41 }
  0x43   : > { %1861 = vmatmul.mubr.msk.bf16.gmra.mrb[16].mxu0 %vm340_vm0, %v1057_v42 }
  0x44   : > { %1837 = vmatmul.mubr.msk.bf16.gmra.mrb[16].mxu1 %vm340_vm0, %v823_v43  ;;  %1868 = vmatprep.mubr.msk.bf16.mxu0 %vm340_vm0, %v2145_v51  ;;  %v1988_v51 = vld [vmem:[%s2495_s5 + $0x78] sm:$0xff]  }
  0x45   : > { %1844 = vmatprep.mubr.msk.bf16.mxu1 %vm340_vm0, %v941_v46 }
  0x4b   : > { %1869 = vmatmul.mubr.msk.bf16.vlgmr.msra.gmra.mrb[20].mxu0 %vm340_vm0, %v2141_v50  ;;  %v1178_v50 = vpack.c.bf16 %v1174_v54, %v819_v38 }
  0x4c   : > { %1845 = vmatmul.mubr.msk.bf16.vlgmr.msra.gmra.mrb[4].mxu1 %vm340_vm0, %v942_v49  ;;  %1889 = vmatpush3.bf16.msra.mxu0 %v1987_v39 }
  0x4d   : > { %1877 = vmatpush3.bf16.msra.mxu1 %v1986_v41  ;;  %1848 = vmatprep.mubr.msk.bf16.mxu1 %vm340_vm0, %v943_v52 }
  0x4e   : > { %1872 = vmatprep.mubr.msk.bf16.mxu0 %vm340_vm0, %v2154_v55  ;;  %1878 = vmatprep.subr.bf16.mxu1 %v1988_v51  ;;  %v1408_v55 = vld [vmem:[#allocation2 + $0x51] sm:$0xff] }
  0x4f   : > { %1890 = vmatprep.subr.bf16.mxu0 %v1989_v53  ;;  %v1412_v61 = vpack.c.bf16 %v1408_v55, %v2285_v36 }
  0x50   : > { %1891 = vmatpush3.bf16.msra.mxu0 %v1989_v53 }
  0x51   : > { %1879 = vmatpush3.bf16.msra.mxu1 %v1988_v51 }
  0x53   : > { %1873 = vmatmul.mubr.msk.bf16.gmra.mrb[24].mxu0 %vm340_vm0, %v1178_v50 }
  0x54   : > { %1849 = vmatmul.mubr.msk.bf16.gmra.mrb[8].mxu1 %vm340_vm0, %v944_v58  ;;  %1892 = vmatprep.mubr.msk.bf16.mxu0 %vm340_vm0, %v2190_v4 }
  0x55   : > { %1880 = vmatprep.mubr.msk.bf16.mxu1 %vm340_vm0, %v2196_v7 }
  0x5b   : > { %1893 = vmatmul.mubr.msk.bf16.vlgmr.msra.gmra.mrb[28].mxu0 %vm340_vm0, %v2206_v10 }
  0x5c   : > { %1881 = vmatmul.mubr.msk.bf16.vlgmr.msra.gmra.mrb[4].mxu1 %vm340_vm0, %v2200_v8  ;;  %1896 = vmatprep.mubr.msk.bf16.mxu0 %vm340_vm0, %v2241_v21 }
  0x5d   : > { %1884 = vmatprep.mubr.msk.bf16.mxu1 %vm340_vm0, %v2245_v22 }
  0x63   : > { %1897 = vmatmul.mubr.msk.bf16.gmra.mrb[32].mxu0 %vm340_vm0, %v1412_v61 }
  0x64   : > { %1885 = vmatmul.mubr.msk.bf16.gmra.mrb[8].mxu1 %vm340_vm0, %v1299_v62 }
  0x92   : > { %v2363_v63 = vpop.permute.xlu0 %476 }
  0x94   : > { %v2365_v0 = vpop.permute.xlu1 %758 }
  0x96   : > { %v2367_v1 = vpop.permute.xlu0 %481 }
  0x98   : > { %v2369_v2 = vpop.permute.xlu1 %763 }
  0x9a   : > { %v2371_v3 = vpop.permute.xlu0 %486 }
  0x9c   : > { %v2373_v5 = vpop.permute.xlu1 %768 }
  0x9e   : > { %v2375_v4 = vpop.permute.xlu0 %491 }
  0xa1   : > { %v2377_v6 = vpop.permute.xlu1 %773 }
  0xa6   : > { %v2379_v7 = vpop.permute.xlu0 %496 }
  0xa9   : > { %v2381_v8 = vpop.permute.xlu1 %778 }
  0xaa   : > { %v2383_v9 = vpop.permute.xlu0 %501 }
  0xae   : > { %v2387_v20 = vpop.permute.xlu0 %506 }
  0xaf   : > { %v2385_v18 = vpop.permute.xlu1 %783 }
  0xb2   : > { %v2399_v37 = vpop.permute.xlu0 %511 }
  0xb4   : > { %v2393_v27 = vpop.permute.xlu1 %788 }
  0xb8   : > { %v2401_v39 = vpop.permute.xlu1 %793 }
  0xf6   : > { %v1798_v10 = vpop.f32.mrb[0].mxu0 }
  0xf7   : > { %v1802_v11 = vpop.f32.mrb[0].mxu1  ;;  %v435_v12 = vpop.f32.mrb[1].mxu0  ;;  %v516_v21 = vmul.f32 %v1798_v10, %v2371_v3 }
  0xf8   : > { %v451_v13 = vpop.f32.mrb[1].mxu1  ;;  %v1799_v14 = vpop.f32.mrb[2].mxu0  ;;  %v514_v24 = vmul.f32 %v2363_v63, %v435_v12  ;;  %v520_v40 = vmul.f32 %v1802_v11, %v2387_v20 }
  0xf9   : > { %v1803_v15 = vpop.f32.mrb[2].mxu1  ;;  %v438_v16 = vpop.f32.mrb[3].mxu0  ;;  %v517_v28 = vmul.f32 %v1799_v14, %v2375_v4  ;;  %v518_v43 = vmul.f32 %v2379_v7, %v451_v13 }
  0xfa   : > { %v454_v17 = vpop.f32.mrb[3].mxu1  ;;  %v515_v32 = vmul.f32 %v2367_v1, %v438_v16  ;;  %v521_v47 = vmul.f32 %v1803_v15, %v2399_v37 }
  0xfb   : > { %v519_v52 = vmul.f32 %v2383_v9, %v454_v17 }
  0xfe   : > { %v1822_v19 = vpop.f32.mrb[4].mxu0 }
  0xff   : > { %v798_v22 = vmul.f32 %v1822_v19, %v2373_v5  ;;  %v717_v23 = vpop.f32.mrb[5].mxu0 }
 0x100   : > { %v796_v25 = vmul.f32 %v2365_v0, %v717_v23  ;;  %v1823_v26 = vpop.f32.mrb[6].mxu0 }
 0x101   : > { %v1904_v29 = vadd.f32 %v798_v22, %v516_v21  ;;  %v799_v30 = vmul.f32 %v1823_v26, %v2377_v6  ;;  %v720_v31 = vpop.f32.mrb[7].mxu0 }
 0x102   : > { %v1909_v33 = vadd.f32 %v796_v25, %v514_v24  ;;  %v797_v34 = vmul.f32 %v2369_v2, %v720_v31 }
 0x103   : > { %v1914_v35 = vadd.f32 %v799_v30, %v517_v28 }
 0x104   : > { %v1919_v36 = vadd.f32 %v797_v34, %v515_v32 }
 0x106   : > { %v1826_v38 = vpop.f32.mrb[8].mxu0 }
 0x107   : > { %v802_v41 = vmul.f32 %v1826_v38, %v2393_v27  ;;  %v733_v42 = vpop.f32.mrb[9].mxu0 }
 0x108   : > { %v800_v44 = vmul.f32 %v2381_v8, %v733_v42  ;;  %v1827_v46 = vpop.f32.mrb[10].mxu0 }
 0x109   : > { %v1924_v48 = vadd.f32 %v802_v41, %v520_v40  ;;  %v803_v45 = vmul.f32 %v1827_v46, %v2401_v39  ;;  %v736_v49 = vpop.f32.mrb[11].mxu0 }
 0x10a   : > { %v1929_v51 = vadd.f32 %v800_v44, %v518_v43  ;;  %v801_v53 = vmul.f32 %v2385_v18, %v736_v49 }
 0x10b   : > { %v1934_v54 = vadd.f32 %v803_v45, %v521_v47 }
 0x10c   : > { %v1939_v56 = vadd.f32 %v801_v53, %v519_v52 }
 0x10e   : > { %v1858_v57 = vpop.f32.mrb[12].mxu0 }
 0x10f   : > { %v1834_v50 = vpop.f32.mrb[12].mxu1  ;;  %v1120_v58 = vpop.f32.mrb[13].mxu0  ;;  %v1153_v12 = vmul.f32 %v1858_v57, %v2373_v5 }
 0x110   : > { %v919_v59 = vmul.f32 %v1834_v50, %v2371_v3  ;;  %v886_v55 = vpop.f32.mrb[13].mxu1  ;;  %v1859_v60 = vpop.f32.mrb[14].mxu0  ;;  %v1151_v16 = vmul.f32 %v1120_v58, %v2365_v0 }
 0x111   : > { %v917_v61 = vmul.f32 %v886_v55, %v2363_v63  ;;  %v1835_v62 = vpop.f32.mrb[14].mxu1  ;;  %v1123_v10 = vpop.f32.mrb[15].mxu0  ;;  %v1154_v22 = vmul.f32 %v1859_v60, %v2377_v6 }
 0x112   : > { %v1905_v11 = vadd.f32 %v1904_v29, %v919_v59  ;;  %v920_v13 = vmul.f32 %v1835_v62, %v2375_v4  ;;  %v889_v14 = vpop.f32.mrb[15].mxu1  ;;  %v1152_v25 = vmul.f32 %v1123_v10, %v2369_v2 }
 0x113   : > { %v1910_v15 = vadd.f32 %v1909_v33, %v917_v61  ;;  %v918_v17 = vmul.f32 %v889_v14, %v2367_v1 }
 0x114   : > { %v1906_v19 = vadd.f32 %v1905_v11, %v1153_v12  ;;  %v1915_v21 = vadd.f32 %v1914_v35, %v920_v13 }
 0x115   : > { %v1911_v23 = vadd.f32 %v1910_v15, %v1151_v16  ;;  %v1920_v24 = vadd.f32 %v1919_v36, %v918_v17 }
 0x116   : > { %v1916_v26 = vadd.f32 %v1915_v21, %v1154_v22  ;;  %v1862_v28 = vpop.f32.mrb[16].mxu0 }
 0x117   : > { %v1921_v29 = vadd.f32 %v1920_v24, %v1152_v25  ;;  %v1838_v30 = vpop.f32.mrb[16].mxu1  ;;  %v1136_v31 = vpop.f32.mrb[17].mxu0  ;;  %v1157_v42 = vmul.f32 %v1862_v28, %v2393_v27 }
 0x118   : > { %v923_v32 = vmul.f32 %v1838_v30, %v2387_v20  ;;  %v902_v33 = vpop.f32.mrb[17].mxu1  ;;  %v1863_v34 = vpop.f32.mrb[18].mxu0  ;;  %v1155_v46 = vmul.f32 %v1136_v31, %v2381_v8 }
 0x119   : > { %v921_v38 = vmul.f32 %v902_v33, %v2379_v7  ;;  %v1839_v40 = vpop.f32.mrb[18].mxu1  ;;  %v1139_v41 = vpop.f32.mrb[19].mxu0  ;;  %v1158_v52 = vmul.f32 %v1863_v34, %v2401_v39 }
 0x11a   : > { %v1925_v35 = vadd.f32 %v1924_v48, %v923_v32  ;;  %v924_v36 = vmul.f32 %v1839_v40, %v2399_v37  ;;  %v905_v43 = vpop.f32.mrb[19].mxu1  ;;  %v1156_v50 = vmul.f32 %v1139_v41, %v2385_v18 }
 0x11b   : > { %v1930_v44 = vadd.f32 %v1929_v51, %v921_v38  ;;  %v922_v47 = vmul.f32 %v905_v43, %v2383_v9 }
 0x11c   : > { %v1926_v45 = vadd.f32 %v1925_v35, %v1157_v42  ;;  %v1935_v49 = vadd.f32 %v1934_v54, %v924_v36 }
 0x11d   : > { %v1931_v53 = vadd.f32 %v1930_v44, %v1155_v46  ;;  %v1940_v57 = vadd.f32 %v1939_v56, %v922_v47 }
 0x11e   : > { %v1936_v58 = vadd.f32 %v1935_v49, %v1158_v52  ;;  %v1870_v48 = vpop.f32.mrb[20].mxu0 }
 0x11f   : > { %v1941_v59 = vadd.f32 %v1940_v57, %v1156_v50  ;;  %v1274_v55 = vmul.f32 %v1870_v48, %v2371_v3  ;;  %v1241_v60 = vpop.f32.mrb[21].mxu0 }
 0x120   : > { %v1272_v51 = vmul.f32 %v1241_v60, %v2363_v63  ;;  %v1871_v61 = vpop.f32.mrb[22].mxu0 }
 0x121   : > { %v1275_v62 = vmul.f32 %v1871_v61, %v2375_v4  ;;  %v1244_v10 = vpop.f32.mrb[23].mxu0  ;;  %v1907_v11 = vadd.f32 %v1906_v19, %v1274_v55 }
 0x122   : > { %v1273_v54 = vmul.f32 %v1244_v10, %v2367_v1  ;;  %v1912_v12 = vadd.f32 %v1911_v23, %v1272_v51 }
 0x123   : > { %v1917_v13 = vadd.f32 %v1916_v26, %v1275_v62 }
 0x124   : > { %v1922_v56 = vadd.f32 %v1921_v29, %v1273_v54 }
 0x126   : > { %v1874_v14 = vpop.f32.mrb[24].mxu0 }
 0x127   : > { %v1278_v15 = vmul.f32 %v1874_v14, %v2387_v20  ;;  %v1257_v16 = vpop.f32.mrb[25].mxu0 }
 0x128   : > { %v1276_v17 = vmul.f32 %v1257_v16, %v2379_v7  ;;  %v1875_v3 = vpop.f32.mrb[26].mxu0 }
 0x129   : > { %v1279_v63 = vmul.f32 %v1875_v3, %v2399_v37  ;;  %v1260_v21 = vpop.f32.mrb[27].mxu0  ;;  %v1927_v22 = vadd.f32 %v1926_v45, %v1278_v15 }
 0x12a   : > { %v1277_v4 = vmul.f32 %v1260_v21, %v2383_v9  ;;  %v1932_v19 = vadd.f32 %v1931_v53, %v1276_v17 }
 0x12b   : > { %v1937_v24 = vadd.f32 %v1936_v58, %v1279_v63 }
 0x12c   : > { %v1942_v1 = vadd.f32 %v1941_v59, %v1277_v4 }
 0x12e   : > { %v1894_v23 = vpop.f32.mrb[28].mxu0 }
 0x12f   : > { %v1882_v25 = vpop.f32.mrb[4].mxu1  ;;  %v1508_v26 = vmul.f32 %v1894_v23, %v2373_v5  ;;  %v1475_v28 = vpop.f32.mrb[29].mxu0 }
 0x130   : > { %v1908_v20 = vadd.f32 %v1907_v11, %v1882_v25  ;;  %v1362_v29 = vpop.f32.mrb[5].mxu1  ;;  %v1506_v7 = vmul.f32 %v1475_v28, %v2365_v0  ;;  %v1895_v30 = vpop.f32.mrb[30].mxu0 }
 0x131   : > { %v1913_v9 = vadd.f32 %v1912_v12, %v1362_v29  ;;  %v1883_v37 = vpop.f32.mrb[6].mxu1  ;;  %v1509_v31 = vmul.f32 %v1895_v30, %v2377_v6  ;;  %v1478_v5 = vpop.f32.mrb[31].mxu0 }
 0x132   : > { %v1516_v32 = vadd.f32 %v1908_v20, %v1508_v26  ;;  %v1918_v33 = vadd.f32 %v1917_v13, %v1883_v37  ;;  %v1365_v34 = vpop.f32.mrb[7].mxu1  ;;  %v1507_v0 = vmul.f32 %v1478_v5, %v2369_v2 }
 0x133   : > { %v1514_v38 = vadd.f32 %v1913_v9, %v1506_v7  ;;  %v1923_v40 = vadd.f32 %v1922_v56, %v1365_v34 }
 0x134   : > { %1524 = vst.msk [vmem:[%s2442_s27 + $0x10] sm:$0xff] %vm340_vm0, %v1516_v32  ;;  %v1555_v41 = vmul.f32 %v1516_v32, %v1516_v32  ;;  %v1517_v35 = vadd.f32 %v1918_v33, %v1509_v31  ;;  %v1533_v6 = vsel %vm340_vm0, %v1516_v32, 0.0 }
 0x135   : > { %1522 = vst.msk [vmem:[%s2442_s27] sm:$0xff] %vm340_vm0, %v1514_v38  ;;  %v1553_v42 = vmul.f32 %v1514_v38, %v1514_v38  ;;  %v1515_v36 = vadd.f32 %v1923_v40, %v1507_v0  ;;  %v1530_v43 = vsel %vm340_vm0, %v1514_v38, 0.0 }
 0x136   : > { %1525 = vst.msk [vmem:[%s2442_s27 + $0x18] sm:$0xff] %vm340_vm0, %v1517_v35  ;;  %v1898_v44 = vpop.f32.mrb[32].mxu0  ;;  %v1564_v46 = vsel %vm340_vm0, %v1555_v41, 0.0  ;;  %v1556_v53 = vmul.f32 %v1517_v35, %v1517_v35  ;;  %v1535_v56 = vsel %vm340_vm0, %v1517_v35, 0.0 }
 0x137   : > { %1523 = vst.msk [vmem:[%s2442_s27 + $0x8] sm:$0xff] %vm340_vm0, %v1515_v36  ;;  %v1531_v2 = vsel %vm340_vm0, %v1515_v36, 0.0  ;;  %v1554_v47 = vmul.f32 %v1515_v36, %v1515_v36  ;;  %v1886_v45 = vpop.f32.mrb[8].mxu1  ;;  %v1512_v49 = vmul.f32 %v1898_v44, %v2393_v27  ;;  %v1491_v52 = vpop.f32.mrb[33].mxu0  ;;  %v1561_v55 = vsel %vm340_vm0, %v1553_v42, 0.0 }
 0x138   : > { %v1532_v57 = vadd.f32 %v1531_v2, %v1530_v43  ;;  %v1928_v50 = vadd.f32 %v1927_v22, %v1886_v45  ;;  %v1378_v58 = vpop.f32.mrb[9].mxu1  ;;  %v1510_v48 = vmul.f32 %v1491_v52, %v2381_v8  ;;  %v1899_v59 = vpop.f32.mrb[34].mxu0  ;;  %v1566_v16 = vsel %vm340_vm0, %v1556_v53, 0.0 }
 0x139   : > { %v1562_v60 = vsel %vm340_vm0, %v1554_v47, 0.0  ;;  %v1933_v51 = vadd.f32 %v1932_v19, %v1378_v58  ;;  %v1887_v61 = vpop.f32.mrb[10].mxu1  ;;  %v1513_v62 = vmul.f32 %v1899_v59, %v2401_v39  ;;  %v1494_v10 = vpop.f32.mrb[35].mxu0 }
 0x13a   : > { %v1534_v27 = vadd.f32 %v1533_v6, %v1532_v57  ;;  %v1563_v11 = vadd.f32 %v1562_v60, %v1561_v55  ;;  %v1520_v54 = vadd.f32 %v1928_v50, %v1512_v49  ;;  %v1938_v12 = vadd.f32 %v1937_v24, %v1887_v61  ;;  %v1381_v13 = vpop.f32.mrb[11].mxu1 }
 0x13b   : > { %v1518_v8 = vadd.f32 %v1933_v51, %v1510_v48  ;;  %v1943_v14 = vadd.f32 %v1942_v1, %v1381_v13  ;;  %v1511_v15 = vmul.f32 %v1494_v10, %v2385_v18 }
 0x13c   : > { %v1565_v17 = vadd.f32 %v1564_v46, %v1563_v11  ;;  %1528 = vst.msk [vmem:[%s2442_s27 + $0x30] sm:$0xff] %vm340_vm0, %v1520_v54  ;;  %v1536_v39 = vadd.f32 %v1535_v56, %v1534_v27  ;;  %v1521_v21 = vadd.f32 %v1938_v12, %v1513_v62  ;;  %v1559_v1 = vmul.f32 %v1520_v54, %v1520_v54 }
 0x13d   : > { %1526 = vst.msk [vmem:[%s2442_s27 + $0x20] sm:$0xff] %vm340_vm0, %v1518_v8  ;;  %v1537_v3 = vsel %vm340_vm0, %v1518_v8, 0.0  ;;  %v1557_v63 = vmul.f32 %v1518_v8, %v1518_v8  ;;  %v1519_v22 = vadd.f32 %v1943_v14, %v1511_v15  ;;  %v1541_v28 = vsel %vm340_vm0, %v1520_v54, 0.0 }
 0x13e   : > { %v1538_v4 = vadd.f32 %v1537_v3, %v1536_v39  ;;  %v1567_v19 = vadd.f32 %v1566_v16, %v1565_v17  ;;  %1529 = vst.msk [vmem:[%s2442_s27 + $0x38] sm:$0xff] %vm340_vm0, %v1521_v21  ;;  %v1560_v20 = vmul.f32 %v1521_v21, %v1521_v21  ;;  %v1543_v30 = vsel %vm340_vm0, %v1521_v21, 0.0 }
 0x13f   : > { %v1568_v24 = vsel %vm340_vm0, %v1557_v63, 0.0  ;;  %1527 = vst.msk [vmem:[%s2442_s27 + $0x28] sm:$0xff] %vm340_vm0, %v1519_v22  ;;  %v1539_v18 = vsel %vm340_vm0, %v1519_v22, 0.0  ;;  %v1558_v26 = vmul.f32 %v1519_v22, %v1519_v22  ;;  %v1572_v37 = vsel %vm340_vm0, %v1559_v1, 0.0 }
 0x140   : > { %v1569_v23 = vadd.f32 %v1568_v24, %v1567_v19  ;;  %v1540_v25 = vadd.f32 %v1539_v18, %v1538_v4  ;;  %v1574_v32 = vsel %vm340_vm0, %v1560_v20, 0.0 }
 0x141   : > { %v1570_v7 = vsel %vm340_vm0, %v1558_v26, 0.0 }
 0x142   : > { %v1542_v29 = vadd.f32 %v1541_v28, %v1540_v25  ;;  %v1571_v9 = vadd.f32 %v1570_v7, %v1569_v23 }
 0x144   : > { %v1544_v31 = vadd.f32 %v1543_v30, %v1542_v29  ;;  %v1573_v5 = vadd.f32 %v1572_v37, %v1571_v9 }
 0x146   : > { %v1545_v33 = vrot.slane %v1544_v31, 4  ;;  %v1575_v34 = vadd.f32 %v1574_v32, %v1573_v5 }
 0x148   : > { %v1546_v0 = vadd.f32 %v1545_v33, %v1544_v31  ;;  %v1576_v38 = vrot.slane %v1575_v34, 4 }
 0x14a   : > { %v1547_v40 = vrot.slane %v1546_v0, 2  ;;  %v1577_v41 = vadd.f32 %v1576_v38, %v1575_v34 }
 0x14c   : > { %v1548_v35 = vadd.f32 %v1547_v40, %v1546_v0  ;;  %v1578_v42 = vrot.slane %v1577_v41, 2 }
 0x14e   : > { %v1549_v36 = vrot.slane %v1548_v35, 1  ;;  %v1579_v6 = vadd.f32 %v1578_v42, %v1577_v41 }
 0x150   : > { %v1550_v43 = vadd.f32 %v1549_v36, %v1548_v35  ;;  %v1580_v44 = vrot.slane %v1579_v6, 1 }
 0x152   : > { %1552 = vst.msk [vmem:[%s292_s30] sm:$0x1] %vm1551_vm1, %v1550_v43  ;;  %v1581_v46 = vadd.f32 %v1580_v44, %v1579_v6 }
 0x154   : > { %1582 = vst.msk [vmem:[%s292_s30 + $0x1] sm:$0x1] %vm1551_vm1, %v1581_v46 }
 0x155 PF: > { %s18_s24 = sadd.s32 1, %s1996_s24  }
 0x156   : > { %p15_p5 = scmp.ge.s32.totalorder %s18_s24, 4  }
 0x158   :  { %17 = sbr.rel (!%p15_p5) target bundleno = 1 (0x1), region = 86 }

// kernel: down_refinement_block.12
= control target key start
LH: loop header
LB: loop body
LE: loop exit
PB: predicated region body
PF: predicated region fallthrough
CT: control target
= control target key end

     0   :  { %s696_s18 = smov 0   ;;  %s792_s0 = inlined_call_operand.vmem [shape: f32[128,128], index: 0, kind: input, shape index: {}]   ;;  %s793_s1 = inlined_call_operand.vmem [shape: f32[1,128], index: 1, kind: input, shape index: {}]   ;;  %s794_s2 = inlined_call_operand.vmem [shape: f32[1,128], index: 2, kind: input, shape index: {}]   ;;  %s795_s3 = inlined_call_operand.vmem [shape: bf16[128,32], index: 3, kind: input, shape index: {}]   ;;  %s796_s4 = inlined_call_operand.vmem [shape: f32[128,32], index: 4, kind: output, shape index: {0}]   ;;  %s797_s5 = inlined_call_operand.vmem [shape: f32[2,2,32], index: 5, kind: output, shape index: {1}]  }
   0x1 LB: > { %s702_s19 = sadd.s32 4294967295, %s664_s18   ;;  %p572_p0 = scmp.ge.s32.totalorder %s664_s18, 1  ;;  %s664_s18 = sphi %s696_s18, %s16_s18  }
   0x2   : > { %p191_p1 = scmp.lt.s32.totalorder %s664_s18, 3 }
   0x4   : > { %p192_p2 = pnand %p572_p0, %p191_p1 }
   0x5   : > { %v650_v0 = vld [vmem:[%s795_s3] sm:$0xff] (!%p192_p2)   ;;  %s573_s22 = sshll.u32 (!%p192_p2), %s702_s19, 3  ;;  %v651_v1 = vld [vmem:[%s795_s3 + $0x8] sm:$0xff] (!%p192_p2)   ;;  %v652_v2 = vld [vmem:[%s795_s3 + $0x10] sm:$0xff] (!%p192_p2)   ;;  %vm419_vm0 = vcmask (!%p192_p2), 261120   ;;  %p235_p4 = scmp.lt.s32.totalorder (!%p192_p2), %s702_s19, 1 }
   0x6   : > { %195 = sbr.rel (%p192_p2) target bundleno = 283 (0x11b), region = 36  ;;  %p224_p3 = scmp.lt.s32.totalorder (!%p192_p2), %s573_s22, 15  ;;  %602 = vmatprep.subr.bf16.mxu0 (!%p192_p2), %v650_v0  ;;  %626 = vmatprep.subr.bf16.mxu1 (!%p192_p2), %v650_v0  ;;  %v653_v3 = vld [vmem:[%s795_s3 + $0x18] sm:$0xff] (!%p192_p2)   ;;  %v578_v6 = vld [vmem:[%s793_s1] ss:$0 sm:$0xff] (!%p192_p2)  ;;  %v655_v27 = vld [vmem:[%s795_s3 + $0x28] sm:$0xff] (!%p192_p2)  }
   0x7   : > { %603 = vmatpush3.bf16.msra.mxu0 (!%p192_p2), %v650_v0  ;;  %634 = vmatpush3.bf16.msra.mxu1 (!%p192_p2), %v650_v0  ;;  %v579_v9 = vld [vmem:[%s794_s2] ss:$0 sm:$0xff] (!%p192_p2)  ;;  %v656_v34 = vld [vmem:[%s795_s3 + $0x30] sm:$0xff] (!%p192_p2)   ;;  %v657_v39 = vld [vmem:[%s795_s3 + $0x38] sm:$0xff] (!%p192_p2)   ;;  %vm449_vm1 = vcmask (!%p192_p2), 253952  }
   0x8   : > { %604 = vmatprep.subr.bf16.mxu0 (!%p192_p2), %v651_v1  ;;  %627 = vmatprep.subr.bf16.mxu1 (!%p192_p2), %v651_v1  ;;  %v654_v15 = vld [vmem:[%s795_s3 + $0x20] sm:$0xff] (!%p192_p2)  }
   0xb   : > { %605 = vmatpush3.bf16.msra.mxu0 (!%p192_p2), %v651_v1  ;;  %635 = vmatpush3.bf16.msra.mxu1 (!%p192_p2), %v651_v1 }
   0xc   : > { %606 = vmatprep.subr.bf16.mxu0 (!%p192_p2), %v652_v2  ;;  %628 = vmatprep.subr.bf16.mxu1 (!%p192_p2), %v652_v2 }
   0xd   : > { %s799_s22 = smov (!%p224_p3, %s573_s22), 15  ;;  %s801_s19 = smov (!%p235_p4, %s702_s19), 1 }
   0xe   : > { %s574_s27 = sshll.u32 %s799_s22, 3  ;;  %s577_s22 = sshll.u32 %s801_s19, 1 }
   0xf   : > { %s724_s30 = scalar_lea.vmem %s792_s0, %s574_s27  ;;  %607 = vmatpush3.bf16.msra.mxu0 %v652_v2  ;;  %636 = vmatpush3.bf16.msra.mxu1 %v652_v2  ;;  %s233_s25 = scalar_lea.vmem %s796_s4, %s574_s27 }
  0x10   : > { %v240_v4 = vld [vmem:[%s724_s30] sm:$0xff]  ;;  %v241_v5 = vld [vmem:[%s724_s30 + $0x8] sm:$0xff]  ;;  %608 = vmatprep.subr.bf16.mxu0 %v653_v3  ;;  %629 = vmatprep.subr.bf16.mxu1 %v653_v3  ;;  %v242_v20 = vld [vmem:[%s724_s30 + $0x10] sm:$0xff]  ;;  %s238_s28 = scalar_lea.vmem %s797_s5, %s577_s22 }
  0x11   : > { %v255_v7 = vmul.f32 %v578_v6, %v240_v4  ;;  %v256_v8 = vmul.f32 %v578_v6, %v241_v5  ;;  %v244_v10 = vld [vmem:[%s724_s30 + $0x20] sm:$0xff]  ;;  %v245_v11 = vld [vmem:[%s724_s30 + $0x28] sm:$0xff]  ;;  %v243_v23 = vld [vmem:[%s724_s30 + $0x18] sm:$0xff]  ;;  %v257_v29 = vmul.f32 %v578_v6, %v242_v20 }
  0x12   : > { %v259_v14 = vmul.f32 %v578_v6, %v244_v10  ;;  %v260_v16 = vmul.f32 %v578_v6, %v245_v11  ;;  %v246_v25 = vld [vmem:[%s724_s30 + $0x30] sm:$0xff]  ;;  %v247_v26 = vld [vmem:[%s724_s30 + $0x38] sm:$0xff]  ;;  %v258_v30 = vmul.f32 %v578_v6, %v243_v23 }
  0x13   : > { %v270_v12 = vadd.f32 %v579_v9, %v255_v7  ;;  %v271_v13 = vadd.f32 %v579_v9, %v256_v8  ;;  %609 = vmatpush3.bf16.msra.mxu0 %v653_v3  ;;  %637 = vmatpush3.bf16.msra.mxu1 %v653_v3  ;;  %v261_v32 = vmul.f32 %v578_v6, %v246_v25 }
  0x14   : > { %v274_v19 = vadd.f32 %v579_v9, %v259_v14  ;;  %v275_v21 = vadd.f32 %v579_v9, %v260_v16  ;;  %610 = vmatprep.subr.bf16.mxu0 %v654_v15  ;;  %630 = vmatprep.subr.bf16.mxu1 %v654_v15  ;;  %v262_v33 = vmul.f32 %v578_v6, %v247_v26 }
  0x15   : > { %v278_v17 = vmax.f32 %v270_v12, 0.0  ;;  %v279_v18 = vmax.f32 %v271_v13, 0.0  ;;  %v272_v35 = vadd.f32 %v579_v9, %v257_v29  ;;  %v273_v36 = vadd.f32 %v579_v9, %v258_v30 }
  0x16   : > { %v282_v24 = vmax.f32 %v274_v19, 0.0  ;;  %v283_v28 = vmax.f32 %v275_v21, 0.0  ;;  %v276_v37 = vadd.f32 %v579_v9, %v261_v32  ;;  %v277_v38 = vadd.f32 %v579_v9, %v262_v33 }
  0x17   : > { %v286_v22 = vpack.c.bf16 %v279_v18, %v278_v17  ;;  %611 = vmatpush3.bf16.msra.mxu0 %v654_v15  ;;  %638 = vmatpush3.bf16.msra.mxu1 %v654_v15  ;;  %v280_v40 = vmax.f32 %v272_v35, 0.0  ;;  %v281_v41 = vmax.f32 %v273_v36, 0.0 }
  0x18   : > { %v288_v31 = vpack.c.bf16 %v283_v28, %v282_v24  ;;  %612 = vmatprep.subr.bf16.mxu0 %v655_v27  ;;  %631 = vmatprep.subr.bf16.mxu1 %v655_v27  ;;  %v284_v42 = vmax.f32 %v276_v37, 0.0  ;;  %v285_v43 = vmax.f32 %v277_v38, 0.0 }
  0x19   : > { %618 = vmatprep.mubr.bf16.mxu0 %v286_v22  ;;  %v287_v44 = vpack.c.bf16 %v281_v41, %v280_v40 }
  0x1a   : > { %622 = vmatprep.mubr.bf16.mxu1 %v288_v31  ;;  %v289_v45 = vpack.c.bf16 %v285_v43, %v284_v42 }
  0x1b   : > { %613 = vmatpush3.bf16.msra.mxu0 %v655_v27  ;;  %639 = vmatpush3.bf16.msra.mxu1 %v655_v27 }
  0x1c   : > { %614 = vmatprep.subr.bf16.mxu0 %v656_v34  ;;  %632 = vmatprep.subr.bf16.mxu1 %v656_v34 }
  0x1f   : > { %615 = vmatpush3.bf16.msra.mxu0 %v656_v34  ;;  %640 = vmatpush3.bf16.msra.mxu1 %v656_v34 }
  0x20   : > { %616 = vmatprep.subr.bf16.mxu0 %v657_v39  ;;  %633 = vmatprep.subr.bf16.mxu1 %v657_v39 }
  0x23   : > { %617 = vmatpush3.bf16.msra.mxu0 %v657_v39  ;;  %641 = vmatpush3.bf16.msra.mxu1 %v657_v39 }
  0x26   : > { %619 = vmatmul.mubr.bf16.vlgmr.msra.gmra.mrb[0].mxu0 %v287_v44  ;;  %623 = vmatmul.mubr.bf16.vlgmr.msra.gmra.mrb[0].mxu1 %v289_v45 }
  0xf9   : > { %v620_v46 = vpop.f32.mrb[0].mxu0  ;;  %v624_v47 = vpop.f32.mrb[0].mxu1 }
  0xfa   : > { %422 = vst.msk [vmem:[%s233_s25 + $0x10] sm:$0xff] %vm419_vm0, %v620_v46  ;;  %v388_v48 = vpop.f32.mrb[1].mxu0  ;;  %426 = vst.msk [vmem:[%s233_s25 + $0x30] sm:$0xff] %vm419_vm0, %v624_v47  ;;  %v404_v49 = vpop.f32.mrb[1].mxu1  ;;  %v453_v55 = vmul.f32 %v620_v46, %v620_v46  ;;  %v431_v59 = vsel %vm419_vm0, %v620_v46, 0.0  ;;  %v457_v13 = vmul.f32 %v624_v47, %v624_v47  ;;  %v439_v17 = vsel %vm419_vm0, %v624_v47, 0.0 }
  0xfb   : > { %420 = vst.msk [vmem:[%s233_s25] sm:$0xff] %vm419_vm0, %v388_v48  ;;  %v451_v50 = vmul.f32 %v388_v48, %v388_v48  ;;  %v621_v51 = vpop.f32.mrb[2].mxu0  ;;  %424 = vst.msk [vmem:[%s233_s25 + $0x20] sm:$0xff] %vm419_vm0, %v404_v49  ;;  %v625_v52 = vpop.f32.mrb[2].mxu1  ;;  %v428_v56 = vsel %vm419_vm0, %v388_v48, 0.0  ;;  %v455_v0 = vmul.f32 %v404_v49, %v404_v49  ;;  %v435_v5 = vsel %vm419_vm0, %v404_v49, 0.0 }
  0xfc   : > { %423 = vst.msk [vmem:[%s233_s25 + $0x18] sm:$0xff] %vm419_vm0, %v621_v51  ;;  %v391_v53 = vpop.f32.mrb[3].mxu0  ;;  %427 = vst.msk [vmem:[%s233_s25 + $0x38] sm:$0xff] %vm419_vm0, %v625_v52  ;;  %v407_v54 = vpop.f32.mrb[3].mxu1  ;;  %v454_v62 = vmul.f32 %v621_v51, %v621_v51  ;;  %v462_v3 = vsel %vm419_vm0, %v453_v55, 0.0  ;;  %v433_v4 = vsel %vm419_vm0, %v621_v51, 0.0  ;;  %v458_v18 = vmul.f32 %v625_v52, %v625_v52 }
  0xfd   : > { %421 = vst.msk [vmem:[%s233_s25 + $0x8] sm:$0xff] %vm419_vm0, %v391_v53  ;;  %v429_v57 = vsel %vm419_vm0, %v391_v53, 0.0  ;;  %v452_v58 = vmul.f32 %v391_v53, %v391_v53  ;;  %425 = vst.msk [vmem:[%s233_s25 + $0x28] sm:$0xff] %vm419_vm0, %v407_v54  ;;  %v459_v61 = vsel %vm419_vm0, %v451_v50, 0.0  ;;  %v466_v9 = vsel %vm419_vm0, %v455_v0, 0.0 }
  0xfe   : > { %v430_v60 = vadd.f32 %v429_v57, %v428_v56  ;;  %v464_v8 = vsel %vm419_vm0, %v454_v62, 0.0  ;;  %v456_v10 = vmul.f32 %v407_v54, %v407_v54  ;;  %v437_v14 = vsel %vm419_vm0, %v407_v54, 0.0 }
  0xff   : > { %v460_v63 = vsel %vm419_vm0, %v452_v58, 0.0  ;;  %v470_v22 = vsel %vm419_vm0, %v457_v13, 0.0  ;;  %v441_v23 = vsel %vm419_vm0, %v625_v52, 0.0  ;;  %v472_v26 = vsel %vm419_vm0, %v458_v18, 0.0 }
 0x100   : > { %v432_v1 = vadd.f32 %v431_v59, %v430_v60  ;;  %v461_v2 = vadd.f32 %v460_v63, %v459_v61  ;;  %v468_v19 = vsel %vm419_vm0, %v456_v10, 0.0 }
 0x102   : > { %v463_v6 = vadd.f32 %v462_v3, %v461_v2  ;;  %v434_v7 = vadd.f32 %v433_v4, %v432_v1 }
 0x104   : > { %v436_v11 = vadd.f32 %v435_v5, %v434_v7  ;;  %v465_v12 = vadd.f32 %v464_v8, %v463_v6 }
 0x106   : > { %v467_v15 = vadd.f32 %v466_v9, %v465_v12  ;;  %v438_v16 = vadd.f32 %v437_v14, %v436_v11 }
 0x108   : > { %v440_v20 = vadd.f32 %v439_v17, %v438_v16  ;;  %v469_v21 = vadd.f32 %v468_v19, %v467_v15 }
 0x10a   : > { %v442_v24 = vadd.f32 %v441_v23, %v440_v20  ;;  %v471_v25 = vadd.f32 %v470_v22, %v469_v21 }
 0x10c   : > { %v443_v27 = vrot.slane %v442_v24, 4  ;;  %v473_v28 = vadd.f32 %v472_v26, %v471_v25 }
 0x10e   : > { %v444_v29 = vadd.f32 %v443_v27, %v442_v24  ;;  %v474_v30 = vrot.slane %v473_v28, 4 }
 0x110   : > { %v445_v31 = vrot.slane %v444_v29, 2  ;;  %v475_v32 = vadd.f32 %v474_v30, %v473_v28 }
 0x112   : > { %v446_v33 = vadd.f32 %v445_v31, %v444_v29  ;;  %v476_v34 = vrot.slane %v475_v32, 2 }
 0x114   : > { %v447_v35 = vrot.slane %v446_v33, 1  ;;  %v477_v36 = vadd.f32 %v476_v34, %v475_v32 }
 0x116   : > { %v448_v37 = vadd.f32 %v447_v35, %v446_v33  ;;  %v478_v38 = vrot.slane %v477_v36, 1 }
 0x118   : > { %450 = vst.msk [vmem:[%s238_s28] sm:$0x1] %vm449_vm1, %v448_v37  ;;  %v479_v39 = vadd.f32 %v478_v38, %v477_v36 }
 0x11a   : > { %480 = vst.msk [vmem:[%s238_s28 + $0x1] sm:$0x1] %vm449_vm1, %v479_v39 }
 0x11b PF: > { %s16_s18 = sadd.s32 1, %s664_s18  }
 0x11c   : > { %p13_p5 = scmp.ge.s32.totalorder %s16_s18, 4  }
 0x11e   :  { %15 = sbr.rel (!%p13_p5) target bundleno = 1 (0x1), region = 78 }

// kernel: down_refinement_block.14
= control target key start
LH: loop header
LB: loop body
LE: loop exit
PB: predicated region body
PF: predicated region fallthrough
CT: control target
= control target key end

     0   :  { %12 = vsyncpa [#allocation3], 0  ;;  %s926_s0 = inlined_call_operand.vmem [shape: f32[128,32], index: 0, kind: input, shape index: {}]   ;;  %s927_s1 = inlined_call_operand.vmem [shape: f32[1,32], index: 1, kind: input, shape index: {}]   ;;  %s928_s2 = inlined_call_operand.vmem [shape: f32[1,32], index: 2, kind: input, shape index: {}]   ;;  %s929_s3 = inlined_call_operand.vmem [shape: bf16[32,128], index: 3, kind: input, shape index: {}]   ;;  %s930_s4 = inlined_call_operand.vmem [shape: f32[128,128], index: 4, kind: input, shape index: {}]   ;;  %s931_s5 = inlined_call_operand.vmem [shape: f32[128,128], index: 5, kind: output, shape index: {0}]   ;;  %s932_s6 = inlined_call_operand.hbm [shape: f32[2,2,128], index: 6, kind: output, shape index: {1}]  }
   0x1   :  { %14 = vsyncpa [#allocation3 + $0x1], 0  ;;  %s790_s21 = smov 0   ;;  %s792_s22 = smov 0  }
   0x2   :  { %s794_s23 = smov 0   ;;  %s796_s24 = smov 0  }
   0x3 LB: > { %s811_s25 = sadd.s32 4294967295, %s752_s24   ;;  %s604_s26 = sadd.s32 4294967294, %s752_s24   ;;  %s752_s24 = sphi %s796_s24, %s938_s24   ;;  %s748_s23 = sphi %s794_s23, %s937_s23   ;;  %s744_s22 = sphi %s792_s22, %s936_s22   ;;  %s740_s21 = sphi %s790_s21, %s935_s21  }
   0x4   : > { %s815_s27 = sadd.s32 1, %s752_s24   ;;  %s168_s28 = sadd.s32 1, %s748_s23 }
   0x5   : > { %s165_s29 = ssub.s32 %s752_s24, %s815_s27  ;;  %p178_p0 = scmp.ne.s32.totalorder %s748_s23, %s744_s22 }
   0x6   : > { %p166_p1 = scmp.eq.s32.totalorder %s165_s29, 0  ;;  %p179_p2 = scmp.eq.s32.totalorder %s811_s25, 1 }
   0x7   : > { %p184_p3 = scmp.ne.s32.totalorder %s744_s22, %s740_s21  ;;  %p185_p4 = scmp.eq.s32.totalorder %s604_s26, 1 }
   0x8   : > { %s826_s30 = scalar_select %p166_p1, %s748_s23, %s168_s28  }
   0x9   : > { %p828_p5 = por %p179_p2, %p178_p0  ;;  %p832_p6 = por %p185_p4, %p184_p3 }
   0xa   : > { %p607_p7 = scmp.ge.s32.totalorder %s752_s24, 1  ;;  %p230_p8 = scmp.lt.s32.totalorder %s752_s24, 3 }
   0xc   : > { %p231_p9 = pnand %p607_p7, %p230_p8 }
   0xd   : > { %v688_v0 = vld [vmem:[%s929_s3] sm:$0xff] (!%p231_p9)   ;;  %s609_s11 = sshll.u32 (!%p231_p9), %s811_s25, 3  ;;  %v689_v1 = vld [vmem:[%s929_s3 + $0x8] sm:$0xff] (!%p231_p9)   ;;  %vm363_vm0 = vcmask (!%p231_p9), 261120   ;;  %s267_s13 = sand.u32 (!%p231_p9), 1, %s744_s22  }
   0xe   : > { %234 = sbr.rel (%p231_p9) target bundleno = 293 (0x125), region = 40  ;;  %p271_p10 = scmp.lt.s32.totalorder (!%p231_p9), %s609_s11, 15  ;;  %633 = vmatprep.subr.bf16.mxu0 (!%p231_p9), %v688_v0  ;;  %645 = vmatprep.subr.bf16.mxu1 (!%p231_p9), %v688_v0  ;;  %v615_v2 = vld [vmem:[%s927_s1] ss:$0 sm:$0xff] (!%p231_p9) }
   0xf   : > { %634 = vmatpush3.bf16.msra.mxu0 (!%p231_p9), %v688_v0  ;;  %647 = vmatpush3.bf16.msra.mxu1 (!%p231_p9), %v688_v0  ;;  %v616_v3 = vld [vmem:[%s928_s2] ss:$0 sm:$0xff] (!%p231_p9)  ;;  %s624_s15 = sshll.u32 (!%p231_p9), %s811_s25, 5  ;;  %s491_s26 = scalar_lea.sflag (!%p231_p9), [#allocation3], %s267_s13 }
  0x10   : > { %635 = vmatprep.subr.bf16.mxu0 (!%p231_p9), %v689_v1  ;;  %646 = vmatprep.subr.bf16.mxu1 (!%p231_p9), %v689_v1  ;;  %s884_s20 = scalar_lea.hbm (!%p231_p9), %s932_s6, %s624_s15  ;;  %s754_s25 = smov (!%p231_p9), [#allocation2]  }
  0x11   : > { %s694_s29 = sshll.u32 (!%p231_p9), %s754_s25, 4  ;;  %s695_s29 = int_to_ptr.vmem [resolvable:$false] %s694_s29 }
  0x13   : > { %636 = vmatpush3.bf16.msra.mxu0 (!%p231_p9), %v689_v1  ;;  %648 = vmatpush3.bf16.msra.mxu1 (!%p231_p9), %v689_v1 }
  0x15   : > { %s940_s11 = smov (!%p271_p10, %s609_s11), 15 }
  0x16   : > { %s845_s14 = sshll.u32 %s940_s11, 3 }
  0x17   : > { %s274_s19 = scalar_lea.vmem %s926_s0, %s845_s14  ;;  %s280_s9 = scalar_lea.vmem %s930_s4, %s845_s14 }
  0x18   : > { %v289_v4 = vld [vmem:[%s274_s19] sm:$0xff]  ;;  %v290_v5 = vld [vmem:[%s274_s19 + $0x8] sm:$0xff]  ;;  %v291_v6 = vld [vmem:[%s274_s19 + $0x10] sm:$0xff]  ;;  %s869_s12 = scalar_lea.vmem %s931_s5, %s845_s14  ;;  %s608_s14 = sshll.u32 %s267_s13, 1 }
  0x19   : > { %v304_v7 = vmul.f32 %v615_v2, %v289_v4  ;;  %v305_v8 = vmul.f32 %v615_v2, %v290_v5  ;;  %v292_v9 = vld [vmem:[%s274_s19 + $0x18] sm:$0xff]  ;;  %v306_v10 = vmul.f32 %v615_v2, %v291_v6  ;;  %v293_v11 = vld [vmem:[%s274_s19 + $0x20] sm:$0xff]  ;;  %v294_v12 = vld [vmem:[%s274_s19 + $0x28] sm:$0xff]  ;;  %s269_s16 = scalar_lea.vmem [#allocation2], %s608_s14 }
  0x1a   : > { %v307_v13 = vmul.f32 %v615_v2, %v292_v9  ;;  %v308_v14 = vmul.f32 %v615_v2, %v293_v11  ;;  %v309_v15 = vmul.f32 %v615_v2, %v294_v12  ;;  %v295_v16 = vld [vmem:[%s274_s19 + $0x30] sm:$0xff]  ;;  %v296_v17 = vld [vmem:[%s274_s19 + $0x38] sm:$0xff]  ;;  %v343_v41 = vld [vmem:[%s280_s9] sm:$0xff]  ;;  %s508_s17 = sshll.u32 %s269_s16, 4  ;;  %s886_s17 = int_to_ptr.vmem [resolvable:$true] %s508_s17 }
  0x1b   : > { %v319_v18 = vadd.f32 %v616_v3, %v304_v7  ;;  %v320_v19 = vadd.f32 %v616_v3, %v305_v8  ;;  %v321_v20 = vadd.f32 %v616_v3, %v306_v10  ;;  %v310_v21 = vmul.f32 %v615_v2, %v295_v16  ;;  %v345_v40 = vld [vmem:[%s280_s9 + $0x10] sm:$0xff]  ;;  %v346_v43 = vld [vmem:[%s280_s9 + $0x18] sm:$0xff]  ;;  %v344_v47 = vld [vmem:[%s280_s9 + $0x8] sm:$0xff]  ;;  %s690_s28 = scalar_lea.vmem %s886_s17, 32  ;;  %p697_p0 = scmp.lt.s32.totalorder %s886_s17, %s695_s29 }
  0x1c   : > { %v322_v22 = vadd.f32 %v616_v3, %v307_v13  ;;  %v323_v23 = vadd.f32 %v616_v3, %v308_v14  ;;  %v324_v24 = vadd.f32 %v616_v3, %v309_v15  ;;  %v311_v25 = vmul.f32 %v615_v2, %v296_v17  ;;  %v349_v44 = vld [vmem:[%s280_s9 + $0x30] sm:$0xff]  ;;  %v347_v48 = vld [vmem:[%s280_s9 + $0x20] sm:$0xff]  ;;  %v350_v52 = vld [vmem:[%s280_s9 + $0x38] sm:$0xff]  ;;  %p691_p11 = scmp.ne.s32.totalorder %s886_s17, %s690_s28 }
  0x1d   : > { %v327_v26 = vmax.f32 %v319_v18, 0.0  ;;  %v328_v27 = vmax.f32 %v320_v19, 0.0  ;;  %v329_v28 = vmax.f32 %v321_v20, 0.0  ;;  %v325_v29 = vadd.f32 %v616_v3, %v310_v21  ;;  %v348_v57 = vld [vmem:[%s280_s9 + $0x28] sm:$0xff]  ;;  %s696_s9 = scalar_lea.vmem %s695_s29, 64 }
  0x1e   : > { %v330_v30 = vmax.f32 %v322_v22, 0.0  ;;  %v331_v31 = vmax.f32 %v323_v23, 0.0  ;;  %v332_v32 = vmax.f32 %v324_v24, 0.0  ;;  %v326_v33 = vadd.f32 %v616_v3, %v311_v25  ;;  %p692_p12 = pnand %p691_p11, %p828_p5  ;;  %p698_p1 = scmp.lt.s32.totalorder %s696_s9, %s690_s28 }
  0x1f   : > { %v335_v34 = vpack.c.bf16 %v328_v27, %v327_v26  ;;  %v333_v35 = vmax.f32 %v325_v29, 0.0 }
  0x20   : > { %v336_v36 = vpack.c.bf16 %v330_v30, %v329_v28  ;;  %v337_v37 = vpack.c.bf16 %v332_v32, %v331_v31  ;;  %v334_v38 = vmax.f32 %v326_v33, 0.0  ;;  %p693_p13 = pneg %p692_p12  ;;  %p699_p2 = por %p698_p1, %p697_p0 }
  0x21   : > { %637 = vmatprep.mubr.msk.bf16.mxu0 %vm363_vm0, %v335_v34 }
  0x22   : > { %638 = vmatmul.mubr.msk.bf16.vlgmr.msra.gmra.mrb[0].mxu0 %vm363_vm0, %v336_v36  ;;  %641 = vmatprep.mubr.msk.bf16.mxu1 %vm363_vm0, %v337_v37  ;;  %v338_v39 = vpack.c.bf16 %v334_v38, %v333_v35  ;;  %p700_p3 = pnand %p699_p2, %p693_p13 }
  0x24   : > { %642 = vmatmul.mubr.msk.bf16.vlgmr.msra.gmra.mrb[0].mxu1 %vm363_vm0, %v338_v39 }
  0xf5   : > { %v639_v42 = vpop.f32.mrb[0].mxu0 }
  0xf6   : > { %v419_v45 = vadd.f32 %v639_v42, %v345_v40  ;;  %v410_v46 = vpop.f32.mrb[1].mxu0 }
  0xf7   : > { %v411_v49 = vadd.f32 %v410_v46, %v343_v41  ;;  %v640_v50 = vpop.f32.mrb[2].mxu0  ;;  %v643_v51 = vpop.f32.mrb[0].mxu1 }
  0xf8   : > { %443 = vst [vmem:[%s869_s12 + $0x10] sm:$0xff] %v419_v45  ;;  %v422_v53 = vadd.f32 %v640_v50, %v346_v43  ;;  %v413_v54 = vpop.f32.mrb[3].mxu0  ;;  %v435_v55 = vadd.f32 %v643_v51, %v349_v44  ;;  %v426_v56 = vpop.f32.mrb[1].mxu1  ;;  %v465_v3 = vmul.f32 %v419_v45, %v419_v45 }
  0xf9   : > { %441 = vst [vmem:[%s869_s12] sm:$0xff] %v411_v49  ;;  %v414_v58 = vadd.f32 %v413_v54, %v344_v47  ;;  %v427_v59 = vadd.f32 %v426_v56, %v347_v48  ;;  %v644_v60 = vpop.f32.mrb[2].mxu1  ;;  %v463_v63 = vmul.f32 %v411_v49, %v411_v49 }
  0xfa   : > { %444 = vst [vmem:[%s869_s12 + $0x18] sm:$0xff] %v422_v53  ;;  %447 = vst [vmem:[%s869_s12 + $0x30] sm:$0xff] %v435_v55  ;;  %v438_v61 = vadd.f32 %v644_v60, %v350_v52  ;;  %v429_v62 = vpop.f32.mrb[3].mxu1  ;;  %v466_v6 = vmul.f32 %v422_v53, %v422_v53  ;;  %v469_v15 = vmul.f32 %v435_v55, %v435_v55 }
  0xfb   : > { %442 = vst [vmem:[%s869_s12 + $0x8] sm:$0xff] %v414_v58  ;;  %v449_v0 = vadd.f32 %v414_v58, %v411_v49  ;;  %v464_v1 = vmul.f32 %v414_v58, %v414_v58  ;;  %445 = vst [vmem:[%s869_s12 + $0x20] sm:$0xff] %v427_v59  ;;  %v430_v2 = vadd.f32 %v429_v62, %v348_v57 }
  0xfc   : > { %448 = vst [vmem:[%s869_s12 + $0x38] sm:$0xff] %v438_v61  ;;  %v467_v9 = vmul.f32 %v427_v59, %v427_v59  ;;  %v470_v18 = vmul.f32 %v438_v61, %v438_v61 }
  0xfd   : > { %v450_v4 = vadd.f32 %v449_v0, %v419_v45  ;;  %v471_v5 = vadd.f32 %v464_v1, %v463_v63  ;;  %446 = vst [vmem:[%s869_s12 + $0x28] sm:$0xff] %v430_v2  ;;  %v468_v14 = vmul.f32 %v430_v2, %v430_v2 }
  0xff   : > { %v472_v7 = vadd.f32 %v471_v5, %v465_v3  ;;  %v451_v8 = vadd.f32 %v450_v4, %v422_v53 }
 0x101   : > { %v452_v10 = vadd.f32 %v451_v8, %v427_v59  ;;  %v473_v11 = vadd.f32 %v472_v7, %v466_v6 }
 0x103   : > { %v474_v12 = vadd.f32 %v473_v11, %v467_v9  ;;  %v453_v13 = vadd.f32 %v452_v10, %v430_v2 }
 0x105   : > { %v454_v16 = vadd.f32 %v453_v13, %v435_v55  ;;  %v475_v17 = vadd.f32 %v474_v12, %v468_v14 }
 0x107   : > { %v455_v19 = vadd.f32 %v454_v16, %v438_v61  ;;  %v476_v20 = vadd.f32 %v475_v17, %v469_v15 }
 0x109   : > { %v456_v21 = vrot.slane %v455_v19, 4  ;;  %v477_v22 = vadd.f32 %v476_v20, %v470_v18 }
 0x10b   : > { %v457_v23 = vadd.f32 %v456_v21, %v455_v19  ;;  %v478_v24 = vrot.slane %v477_v22, 4 }
 0x10d   : > { %v458_v25 = vrot.slane %v457_v23, 2  ;;  %v479_v26 = vadd.f32 %v478_v24, %v477_v22 }
 0x10f   : > { %v459_v27 = vadd.f32 %v458_v25, %v457_v23  ;;  %v480_v28 = vrot.slane %v479_v26, 2 }
 0x111   : > { %v460_v29 = vrot.slane %v459_v27, 1  ;;  %v481_v30 = vadd.f32 %v480_v28, %v479_v26 }
 0x113   : > { %v461_v31 = vadd.f32 %v460_v29, %v459_v27  ;;  %v482_v32 = vrot.slane %v481_v30, 1 }
 0x115   : > { %462 = vst [vmem:[%s269_s16] sm:$0x1] %v461_v31  ;;  %v483_v33 = vadd.f32 %v482_v32, %v481_v30 }
 0x117   : > { %484 = vst [vmem:[%s269_s16 + $0x1] sm:$0x1] %v483_v33 }
 0x118   : > { %703 = shalt.err (!%p700_p3)
}
 0x119   : > { %s704_s10 = scalar_lea.hbm %s884_s20, 32  ;;  %s708_s13 = scalar_lea.hbm %s932_s6, 64 }
 0x11a   : > { %p705_p4 = scmp.ne.s32.totalorder %s884_s20, %s704_s10  ;;  %p709_p9 = scmp.lt.u32.totalorder %s884_s20, %s932_s6 }
 0x11b   : > { %p710_p10 = scmp.lt.u32.totalorder %s708_s13, %s704_s10  ;;  %p712_p12 = scmp.lt.u32.totalorder %s704_s10, %s884_s20 }
 0x11c   : > { %p706_p7 = pnand %p705_p4, %p828_p5 }
 0x11d   : > { %p711_p11 = por %p710_p10, %p709_p9 }
 0x11e   : > { %p707_p8 = pneg %p706_p7 }
 0x11f   : > { %p713_p13 = por %p712_p12, %p711_p11 }
 0x121   : > { %p714_p0 = pnand %p713_p13, %p707_p8 }
 0x123   : > { %717 = shalt.err (!%p714_p0)
}
 0x124   : > { %649 = dma.vmem_to_hbm [thread:$0]  (%p828_p5), %s886_s17, 32, %s884_s20, %s491_s26  }
 0x125 PF: > { %p655_p1 = scmp.ge.s32.totalorder %s752_s24, 2  ;;  %s528_s16 = sand.u32 1, %s740_s21  }
 0x126   : > { %s529_s18 = scalar_lea.sflag [#allocation3], %s528_s16 }
 0x127   : > { %p652_p2 = pnand %p655_p1, %p832_p6 }
 0x129   : > { %735 = dma.done.wait (!%p652_p2), %s529_s18, 32  }
 0x12a   : > { %737 = vsyncadd (!%p652_p2), %s529_s18, 4294967264  ;;  %p17_p3 = scmp.ge.s32.totalorder %s815_s27, 4   ;;  %s935_s21 = smov %s744_s22 }
 0x12b   : > { %s936_s22 = smov %s748_s23  ;;  %s937_s23 = smov %s826_s30 }
 0x12c   : > { %s938_s24 = smov %s815_s27  ;;  %19 = sbr.rel (!%p17_p3) target bundleno = 3 (0x3), region = 90 }
 0x133   :  { %534 = vsyncpa [#allocation3], 1 }
 0x134   :  { %536 = vsyncpa [#allocation3 + $0x1], 1 }

// kernel: down_refinement_block.15
= control target key start
LH: loop header
LB: loop body
LE: loop exit
PB: predicated region body
PF: predicated region fallthrough
CT: control target
= control target key end

     0   :  { %s1782_s15 = smov 0   ;;  %s2129_s0 = inlined_call_operand.vmem [shape: f32[128,128], index: 0, kind: input, shape index: {}]   ;;  %s2130_s1 = inlined_call_operand.vmem [shape: bf16[4,7], index: 1, kind: input, shape index: {}]   ;;  %s2131_s2 = inlined_call_operand.vmem [shape: bf16[128,64], index: 2, kind: input, shape index: {}]   ;;  %s2132_s3 = inlined_call_operand.vmem [shape: bf16[128,64], index: 3, kind: input, shape index: {}]   ;;  %s2133_s4 = inlined_call_operand.vmem [shape: f32[32,64], index: 4, kind: output, shape index: {}]  }
   0x1 LB: > { %s1328_s16 = sadd.s32 4294967295, %s1752_s15   ;;  %p1332_p0 = scmp.ge.s32.totalorder %s1752_s15, 1  ;;  %s1752_s15 = sphi %s1782_s15, %s14_s15  }
   0x2   : > { %p163_p1 = scmp.lt.s32.totalorder %s1752_s15, 3 }
   0x4   : > { %p164_p2 = pnand %p1332_p0, %p163_p1 }
   0x5   : > { %s1333_s17 = sshll.u32 (!%p164_p2), %s1328_s16, 3  ;;  %v1682_v0 = vld [vmem:[%s2131_s2] sm:$0xff] (!%p164_p2)   ;;  %v1754_v1 = vmov (!%p164_p2), 0.0   ;;  %vm1755_vm0 = vmmov (!%p164_p2), 0   ;;  %v1684_v2 = vld [vmem:[%s2131_s2 + $0x8] sm:$0xff] (!%p164_p2)   ;;  %vm215_vm1 = vcmask (!%p164_p2), 1042432  }
   0x6   : > { %167 = sbr.rel (%p164_p2) target bundleno = 1125 (0x465), region = 36  ;;  %1487 = vmatprep.subr.bf16.mxu0 (!%p164_p2), %v1754_v1  ;;  %p190_p3 = scmp.lt.s32.totalorder (!%p164_p2), %s1333_s17, 15  ;;  %1493 = vmatprep.subr.bf16.mxu1 (!%p164_p2), %v1754_v1  ;;  %v1686_v3 = vld [vmem:[%s2131_s2 + $0x10] sm:$0xff] (!%p164_p2)   ;;  %vm216_vm2 = vcmask (!%p164_p2), 1043456   ;;  %v1756_v7 = vmov (!%p164_p2), 65535   ;;  %v1688_v10 = vld [vmem:[%s2131_s2 + $0x18] sm:$0xff] (!%p164_p2)  }
   0x7   : > { %1489 = vmatprep.mubr.msk.bf16.mxu0 (!%p164_p2), %vm1755_vm0, %v1754_v1  ;;  %1494 = vmatpush3.bf16.msra.mxu1 (!%p164_p2), %v1682_v0  ;;  %v217_v8 = vsel (!%p164_p2), %vm215_vm1, 4294967295, %v1756_v7  ;;  %v1690_v14 = vld [vmem:[%s2131_s2 + $0x20] sm:$0xff] (!%p164_p2)   ;;  %vm211_vm3 = vcmask (!%p164_p2), 56320   ;;  %v1692_v18 = vld [vmem:[%s2131_s2 + $0x28] sm:$0xff] (!%p164_p2)   ;;  %v1694_v20 = vld [vmem:[%s2131_s2 + $0x30] sm:$0xff] (!%p164_p2)   ;;  %s1335_s20 = sshll.u32 (!%p164_p2), %s1328_s16, 1 }
   0x8   : > { %1495 = vmatprep.subr.bf16.mxu1 (!%p164_p2), %v1754_v1  ;;  %1509 = vmatprep.mubr.msk.bf16.mxu1 (!%p164_p2), %vm1755_vm0, %v1754_v1  ;;  %v1820_v12 = vsel (!%p164_p2), %vm216_vm2, %v217_v8, 0  ;;  %v210_v16 = vld [vmem:[%s2130_s1] sm:$0x3] (!%p164_p2)  ;;  %v1685_v19 = vld [vmem:[%s2132_s3 + $0x8] sm:$0xff] (!%p164_p2)   ;;  %v1687_v21 = vld [vmem:[%s2132_s3 + $0x10] sm:$0xff] (!%p164_p2)   ;;  %p196_p4 = scmp.lt.s32.totalorder (!%p164_p2), %s1335_s20, 3 }
   0x9   : > { %v1683_v17 = vld [vmem:[%s2132_s3] sm:$0xff] (!%p164_p2)   ;;  %v1696_v22 = vld [vmem:[%s2131_s2 + $0x38] sm:$0xff] (!%p164_p2)   ;;  %v1693_v25 = vld [vmem:[%s2132_s3 + $0x28] sm:$0xff] (!%p164_p2)   ;;  %vm472_vm4 = vcmask (!%p164_p2), 519168  }
   0xa   : > { %v1689_v23 = vld [vmem:[%s2132_s3 + $0x18] sm:$0xff] (!%p164_p2)   ;;  %v1691_v24 = vld [vmem:[%s2132_s3 + $0x20] sm:$0xff] (!%p164_p2)   ;;  %v1695_v26 = vld [vmem:[%s2132_s3 + $0x30] sm:$0xff] (!%p164_p2)  }
   0xb   : > { %1496 = vmatpush3.bf16.msra.mxu1 (!%p164_p2), %v1684_v2  ;;  %v1697_v27 = vld [vmem:[%s2132_s3 + $0x38] sm:$0xff] (!%p164_p2)   ;;  %v1698_v38 = vld [vmem:[%s2131_s2] sm:$0xff] (!%p164_p2)   ;;  %v1700_v41 = vld [vmem:[%s2131_s2 + $0x8] sm:$0xff] (!%p164_p2)  }
   0xc   : > { %1497 = vmatprep.subr.bf16.mxu1 (!%p164_p2), %v1754_v1  ;;  %v482_v42 = vld [vmem:[%s2130_s1] sm:$0x3] (!%p164_p2)  ;;  %v1702_v44 = vld [vmem:[%s2131_s2 + $0x10] sm:$0xff] (!%p164_p2)   ;;  %v1701_v45 = vld [vmem:[%s2132_s3 + $0x8] sm:$0xff] (!%p164_p2)  }
   0xd   : > { %s2135_s17 = smov (!%p190_p3, %s1333_s17), 15  ;;  %v1699_v43 = vld [vmem:[%s2132_s3] sm:$0xff]   ;;  %v1704_v46 = vld [vmem:[%s2131_s2 + $0x18] sm:$0xff]   ;;  %v1703_v47 = vld [vmem:[%s2132_s3 + $0x10] sm:$0xff]   ;;  %s2137_s20 = smov (!%p196_p4, %s1335_s20), 3 }
   0xe   : > { %s1334_s22 = sshll.u32 %s2135_s17, 3  ;;  %v1706_v48 = vld [vmem:[%s2131_s2 + $0x20] sm:$0xff]   ;;  %v1705_v49 = vld [vmem:[%s2132_s3 + $0x18] sm:$0xff]   ;;  %v1708_v50 = vld [vmem:[%s2131_s2 + $0x28] sm:$0xff]   ;;  %s1336_s21 = sshll.u32 %s2137_s20, 3 }
   0xf   : > { %s1808_s25 = scalar_lea.vmem %s2129_s0, %s1334_s22  ;;  %1498 = vmatpush3.bf16.msra.mxu1 %v1686_v3  ;;  %v1707_v51 = vld [vmem:[%s2132_s3 + $0x20] sm:$0xff]   ;;  %v1709_v52 = vld [vmem:[%s2132_s3 + $0x28] sm:$0xff]   ;;  %v1710_v53 = vld [vmem:[%s2131_s2 + $0x30] sm:$0xff]   ;;  %s1964_s24 = scalar_lea.vmem %s2133_s4, %s1336_s21 }
  0x10   : > { %v202_v4 = vld [vmem:[%s1808_s25] sm:$0xff]  ;;  %v203_v5 = vld [vmem:[%s1808_s25 + $0x8] sm:$0xff]  ;;  %1499 = vmatprep.subr.bf16.mxu1 %v1754_v1  ;;  %v474_v28 = vld [vmem:[%s1808_s25 + $0x10] sm:$0xff] }
  0x11   : > { %v204_v6 = vmax.f32 %v202_v4, %v203_v5  ;;  %v475_v29 = vld [vmem:[%s1808_s25 + $0x18] sm:$0xff]  ;;  %v1711_v54 = vld [vmem:[%s2132_s3 + $0x30] sm:$0xff]   ;;  %v740_v57 = vld [vmem:[%s1808_s25 + $0x20] sm:$0xff] }
  0x12   : > { %v476_v30 = vmax.f32 %v474_v28, %v475_v29  ;;  %v1712_v55 = vld [vmem:[%s2131_s2 + $0x38] sm:$0xff]   ;;  %v741_v58 = vld [vmem:[%s1808_s25 + $0x28] sm:$0xff]  ;;  %v1726_v29 = vld [vmem:[%s2131_s2 + $0x30] sm:$0xff]  }
  0x13   : > { %v206_v9 = vrot.slane %v204_v6, 1  ;;  %1500 = vmatpush3.bf16.msra.mxu1 %v1688_v10  ;;  %v1713_v56 = vld [vmem:[%s2132_s3 + $0x38] sm:$0xff]   ;;  %v742_v59 = vmax.f32 %v740_v57, %v741_v58  ;;  %v1725_v28 = vld [vmem:[%s2132_s3 + $0x28] sm:$0xff]   ;;  %v1734_v57 = vld [vmem:[%s2131_s2 + $0x10] sm:$0xff]  }
  0x14   : > { %1501 = vmatprep.subr.bf16.mxu1 %v1754_v1  ;;  %v478_v31 = vrot.slane %v476_v30, 1  ;;  %v1733_v58 = vld [vmem:[%s2132_s3 + $0x8] sm:$0xff]  }
  0x15   : > { %v208_v11 = vmax.f32 %v204_v6, %v206_v9  ;;  %v744_v60 = vrot.slane %v742_v59, 1 }
  0x16   : > { %v480_v32 = vmax.f32 %v476_v30, %v478_v31  ;;  %v1727_v30 = vld [vmem:[%s2132_s3 + $0x30] sm:$0xff]   ;;  %v1728_v31 = vld [vmem:[%s2131_s2 + $0x38] sm:$0xff]  }
  0x17   : > { %v209_v13 = vpack.c.bf16 %v208_v11, %v208_v11  ;;  %1502 = vmatpush3.bf16.msra.mxu1 %v1690_v14  ;;  %v746_v63 = vmax.f32 %v742_v59, %v744_v60  ;;  %v1714_v14 = vld [vmem:[%s2131_s2] sm:$0xff]   ;;  %v1736_v59 = vld [vmem:[%s2131_s2 + $0x18] sm:$0xff]   ;;  %v1735_v60 = vld [vmem:[%s2132_s3 + $0x10] sm:$0xff]  }
  0x18   : > { %1503 = vmatprep.subr.bf16.mxu1 %v1754_v1  ;;  %v481_v33 = vpack.c.bf16 %v480_v32, %v480_v32  ;;  %v1729_v32 = vld [vmem:[%s2132_s3 + $0x38] sm:$0xff]  }
  0x19   : > { %v220_v15 = vand.u32 %v1820_v12, %v209_v13  ;;  %v747_v8 = vpack.c.bf16 %v746_v63, %v746_v63  ;;  %v1739_v63 = vld [vmem:[%s2132_s3 + $0x20] sm:$0xff]  }
  0x1a   : > { %v487_v35 = vand.u32 %v481_v33, %v1820_v12  ;;  %v1006_v33 = vld [vmem:[%s1808_s25 + $0x30] sm:$0xff] }
  0x1b   : > { %1488 = vmatpush3.bf16.msra.mxu0 %v220_v15  ;;  %1504 = vmatpush3.bf16.msra.mxu1 %v1692_v18  ;;  %v753_v10 = vand.u32 %v747_v8, %v1820_v12  ;;  %v748_v18 = vld [vmem:[%s2130_s1] sm:$0x3] }
  0x1c   : > { %1513 = vmatprep.subr.bf16.mxu0 %v1754_v1  ;;  %1505 = vmatprep.subr.bf16.mxu1 %v1754_v1 }
  0x1e   : > { %1490 = vmatmul.mubr.msk.bf16.vlgmr.msra.gmra.mrb[0].mxu0 %vm211_vm3, %v210_v16 }
  0x1f   : > { %1514 = vmatpush3.bf16.msra.mxu0 %v1683_v17  ;;  %1529 = vmatprep.mubr.msk.bf16.mxu0 %vm1755_vm0, %v1754_v1  ;;  %v1716_v17 = vld [vmem:[%s2131_s2 + $0x8] sm:$0xff]  }
  0x20   : > { %1515 = vmatprep.subr.bf16.mxu0 %v1754_v1  ;;  %1506 = vmatpush3.bf16.msra.mxu1 %v1694_v20  ;;  %v1718_v20 = vld [vmem:[%s2131_s2 + $0x10] sm:$0xff]  }
  0x21   : > { %1507 = vmatprep.subr.bf16.mxu1 %v1754_v1 }
  0x23   : > { %1516 = vmatpush3.bf16.msra.mxu0 %v1685_v19  ;;  %v1715_v19 = vld [vmem:[%s2132_s3] sm:$0xff]  }
  0x24   : > { %1517 = vmatprep.subr.bf16.mxu0 %v1754_v1  ;;  %1508 = vmatpush3.bf16.msra.mxu1 %v1696_v22  ;;  %v1720_v22 = vld [vmem:[%s2131_s2 + $0x18] sm:$0xff]  }
  0x25   : > { %1533 = vmatprep.subr.bf16.mxu1 %v1754_v1 }
  0x27   : > { %1518 = vmatpush3.bf16.msra.mxu0 %v1687_v21  ;;  %v1717_v21 = vld [vmem:[%s2132_s3 + $0x8] sm:$0xff]  }
  0x28   : > { %1519 = vmatprep.subr.bf16.mxu0 %v1754_v1 }
  0x2b   : > { %1520 = vmatpush3.bf16.msra.mxu0 %v1689_v23  ;;  %v1719_v23 = vld [vmem:[%s2132_s3 + $0x10] sm:$0xff]  }
  0x2c   : > { %1521 = vmatprep.subr.bf16.mxu0 %v1754_v1 }
  0x2f   : > { %1522 = vmatpush3.bf16.msra.mxu0 %v1691_v24  ;;  %v1722_v24 = vld [vmem:[%s2131_s2 + $0x20] sm:$0xff]  }
  0x30   : > { %1523 = vmatprep.subr.bf16.mxu0 %v1754_v1 }
  0x33   : > { %1524 = vmatpush3.bf16.msra.mxu0 %v1693_v25  ;;  %v1721_v25 = vld [vmem:[%s2132_s3 + $0x18] sm:$0xff]  }
  0x34   : > { %1525 = vmatprep.subr.bf16.mxu0 %v1754_v1 }
  0x37   : > { %1526 = vmatpush3.bf16.msra.mxu0 %v1695_v26  ;;  %v1724_v26 = vld [vmem:[%s2131_s2 + $0x28] sm:$0xff]  }
  0x38   : > { %1527 = vmatprep.subr.bf16.mxu0 %v1754_v1 }
  0x3b   : > { %1528 = vmatpush3.bf16.msra.mxu0 %v1697_v27  ;;  %v1723_v27 = vld [vmem:[%s2132_s3 + $0x20] sm:$0xff]  }
  0x3c   : > { %1539 = vmatprep.subr.bf16.mxu0 %v1754_v1 }
  0xf1   : > { %v256_v34 = vpop.f32.mrb[0].mxu0 }
  0xf2   : > { %v262_v36 = vpack.c.bf16 %v256_v34, %v256_v34  ;;  %v1491_v37 = vpop.f32.mrb[1].mxu0  ;;  %v1007_v34 = vld [vmem:[%s1808_s25 + $0x38] sm:$0xff] }
  0xf3   : > { %v259_v39 = vpop.f32.mrb[2].mxu0 }
  0xf4   : > { %v1492_v40 = vpop.f32.mrb[3].mxu0  ;;  %1510 = vmatmul.mubr.bf16.vlgmr.msra.gmra.mrb[0].mxu1 %v262_v36  ;;  %1530 = vmatmul.mubr.bf16.vlgmr.msra.gmra.mrb[4].mxu0 %v262_v36 }
  0xf5   : > { %1534 = vmatpush3.bf16.msra.mxu1 %v487_v35  ;;  %1535 = vmatprep.mubr.msk.bf16.mxu1 %vm1755_vm0, %v1754_v1  ;;  %v1008_v35 = vmax.f32 %v1006_v33, %v1007_v34 }
  0xf6   : > { %1540 = vmatpush3.bf16.msra.mxu0 %v1698_v38  ;;  %1559 = vmatprep.subr.bf16.mxu1 %v1754_v1 }
  0xf7   : > { %1541 = vmatprep.subr.bf16.mxu0 %v1754_v1  ;;  %1555 = vmatprep.mubr.msk.bf16.mxu0 %vm1755_vm0, %v1754_v1  ;;  %v1010_v36 = vrot.slane %v1008_v35, 1 }
  0xf9   : > { %v1012_v39 = vmax.f32 %v1008_v35, %v1010_v36 }
  0xfa   : > { %1542 = vmatpush3.bf16.msra.mxu0 %v1700_v41 }
  0xfb   : > { %1543 = vmatprep.subr.bf16.mxu0 %v1754_v1 }
  0xfc   : > { %1536 = vmatmul.mubr.msk.bf16.vlgmr.msra.gmra.mrb[4].mxu1 %vm211_vm3, %v482_v42 }
  0xfd   : > { %1560 = vmatpush3.bf16.msra.mxu1 %v1699_v43  ;;  %1575 = vmatprep.mubr.msk.bf16.mxu1 %vm1755_vm0, %v1754_v1 }
  0xfe   : > { %1561 = vmatprep.subr.bf16.mxu1 %v1754_v1  ;;  %1544 = vmatpush3.bf16.msra.mxu0 %v1702_v44 }
  0xff   : > { %1545 = vmatprep.subr.bf16.mxu0 %v1754_v1 }
 0x101   : > { %1562 = vmatpush3.bf16.msra.mxu1 %v1701_v45 }
 0x102   : > { %1563 = vmatprep.subr.bf16.mxu1 %v1754_v1  ;;  %1546 = vmatpush3.bf16.msra.mxu0 %v1704_v46 }
 0x103   : > { %1547 = vmatprep.subr.bf16.mxu0 %v1754_v1 }
 0x105   : > { %1564 = vmatpush3.bf16.msra.mxu1 %v1703_v47  ;;  %v1013_v47 = vpack.c.bf16 %v1012_v39, %v1012_v39 }
 0x106   : > { %1565 = vmatprep.subr.bf16.mxu1 %v1754_v1  ;;  %1548 = vmatpush3.bf16.msra.mxu0 %v1706_v48 }
 0x107   : > { %1549 = vmatprep.subr.bf16.mxu0 %v1754_v1 }
 0x109   : > { %1566 = vmatpush3.bf16.msra.mxu1 %v1705_v49  ;;  %v1019_v49 = vand.u32 %v1013_v47, %v1820_v12  ;;  %v1732_v12 = vld [vmem:[%s2131_s2 + $0x8] sm:$0xff]  }
 0x10a   : > { %1567 = vmatprep.subr.bf16.mxu1 %v1754_v1  ;;  %1550 = vmatpush3.bf16.msra.mxu0 %v1708_v50 }
 0x10b   : > { %1551 = vmatprep.subr.bf16.mxu0 %v1754_v1 }
 0x10d   : > { %1568 = vmatpush3.bf16.msra.mxu1 %v1707_v51 }
 0x10e   : > { %1569 = vmatprep.subr.bf16.mxu1 %v1754_v1  ;;  %1552 = vmatpush3.bf16.msra.mxu0 %v1710_v53 }
 0x10f   : > { %1553 = vmatprep.subr.bf16.mxu0 %v1754_v1 }
 0x111   : > { %1570 = vmatpush3.bf16.msra.mxu1 %v1709_v52  ;;  %v1730_v52 = vld [vmem:[%s2131_s2] sm:$0xff]  }
 0x112   : > { %1571 = vmatprep.subr.bf16.mxu1 %v1754_v1  ;;  %1554 = vmatpush3.bf16.msra.mxu0 %v1712_v55  ;;  %v1014_v55 = vld [vmem:[%s2130_s1] sm:$0x3] }
 0x113   : > { %1579 = vmatprep.subr.bf16.mxu0 %v1754_v1 }
 0x115   : > { %1572 = vmatpush3.bf16.msra.mxu1 %v1711_v54 }
 0x116   : > { %1573 = vmatprep.subr.bf16.mxu1 %v1754_v1 }
 0x119   : > { %1574 = vmatpush3.bf16.msra.mxu1 %v1713_v56  ;;  %v1731_v56 = vld [vmem:[%s2132_s3] sm:$0xff]  }
 0x11a   : > { %1585 = vmatprep.subr.bf16.mxu1 %v1754_v1 }
 0x1c7   : > { %v361_v61 = vpop.f32.mrb[0].mxu1  ;;  %v465_v62 = vpop.f32.mrb[4].mxu0 }
 0x1c8   : > { %v471_v0 = vmax.f32 %v361_v61, %v465_v62  ;;  %v1511_v2 = vpop.f32.mrb[1].mxu1  ;;  %v1531_v3 = vpop.f32.mrb[5].mxu0  ;;  %v1738_v61 = vld [vmem:[%s2131_s2 + $0x20] sm:$0xff]   ;;  %v1737_v62 = vld [vmem:[%s2132_s3 + $0x18] sm:$0xff]  }
 0x1c9   : > { %v364_v4 = vpop.f32.mrb[2].mxu1  ;;  %v468_v5 = vpop.f32.mrb[6].mxu0  ;;  %v1741_v2 = vld [vmem:[%s2132_s3 + $0x28] sm:$0xff]   ;;  %v1742_v3 = vld [vmem:[%s2131_s2 + $0x30] sm:$0xff]  }
 0x1ca   : > { %473 = vst.msk [vmem:[%s1964_s24] sm:$0xf] %vm472_vm4, %v471_v0  ;;  %v1512_v6 = vpop.f32.mrb[3].mxu1  ;;  %v1532_v7 = vpop.f32.mrb[7].mxu0  ;;  %v1740_v0 = vld [vmem:[%s2131_s2 + $0x28] sm:$0xff]   ;;  %v1743_v4 = vld [vmem:[%s2132_s3 + $0x30] sm:$0xff]  }
 0x1cb   : > { %v1744_v5 = vld [vmem:[%s2131_s2 + $0x38] sm:$0xff]  }
 0x1cc   : > { %v1745_v6 = vld [vmem:[%s2132_s3 + $0x38] sm:$0xff]  }
 0x1cf   : > { %v523_v9 = vpop.f32.mrb[4].mxu1 }
 0x1d0   : > { %v529_v11 = vpack.c.bf16 %v523_v9, %v523_v9  ;;  %v1537_v13 = vpop.f32.mrb[5].mxu1 }
 0x1d1   : > { %v526_v15 = vpop.f32.mrb[6].mxu1 }
 0x1d2   : > { %v1538_v16 = vpop.f32.mrb[7].mxu1  ;;  %1556 = vmatmul.mubr.bf16.vlgmr.msra.gmra.mrb[8].mxu0 %v529_v11  ;;  %1576 = vmatmul.mubr.bf16.vlgmr.msra.gmra.mrb[8].mxu1 %v529_v11 }
 0x1d3   : > { %1580 = vmatpush3.bf16.msra.mxu0 %v753_v10  ;;  %1581 = vmatprep.mubr.msk.bf16.mxu0 %vm1755_vm0, %v1754_v1 }
 0x1d4   : > { %1586 = vmatpush3.bf16.msra.mxu1 %v1714_v14  ;;  %1605 = vmatprep.subr.bf16.mxu0 %v1754_v1 }
 0x1d5   : > { %1587 = vmatprep.subr.bf16.mxu1 %v1754_v1  ;;  %1601 = vmatprep.mubr.msk.bf16.mxu1 %vm1755_vm0, %v1754_v1 }
 0x1d8   : > { %1588 = vmatpush3.bf16.msra.mxu1 %v1716_v17 }
 0x1d9   : > { %1589 = vmatprep.subr.bf16.mxu1 %v1754_v1 }
 0x1da   : > { %1582 = vmatmul.mubr.msk.bf16.vlgmr.msra.gmra.mrb[12].mxu0 %vm211_vm3, %v748_v18 }
 0x1db   : > { %1606 = vmatpush3.bf16.msra.mxu0 %v1715_v19  ;;  %1621 = vmatprep.mubr.msk.bf16.mxu0 %vm1755_vm0, %v1754_v1 }
 0x1dc   : > { %1607 = vmatprep.subr.bf16.mxu0 %v1754_v1  ;;  %1590 = vmatpush3.bf16.msra.mxu1 %v1718_v20 }
 0x1dd   : > { %1591 = vmatprep.subr.bf16.mxu1 %v1754_v1 }
 0x1df   : > { %1608 = vmatpush3.bf16.msra.mxu0 %v1717_v21 }
 0x1e0   : > { %1609 = vmatprep.subr.bf16.mxu0 %v1754_v1  ;;  %1592 = vmatpush3.bf16.msra.mxu1 %v1720_v22 }
 0x1e1   : > { %1593 = vmatprep.subr.bf16.mxu1 %v1754_v1 }
 0x1e3   : > { %1610 = vmatpush3.bf16.msra.mxu0 %v1719_v23 }
 0x1e4   : > { %1611 = vmatprep.subr.bf16.mxu0 %v1754_v1  ;;  %1594 = vmatpush3.bf16.msra.mxu1 %v1722_v24 }
 0x1e5   : > { %1595 = vmatprep.subr.bf16.mxu1 %v1754_v1 }
 0x1e7   : > { %1612 = vmatpush3.bf16.msra.mxu0 %v1721_v25 }
 0x1e8   : > { %1613 = vmatprep.subr.bf16.mxu0 %v1754_v1  ;;  %1596 = vmatpush3.bf16.msra.mxu1 %v1724_v26 }
 0x1e9   : > { %1597 = vmatprep.subr.bf16.mxu1 %v1754_v1 }
 0x1eb   : > { %1614 = vmatpush3.bf16.msra.mxu0 %v1723_v27 }
 0x1ec   : > { %1615 = vmatprep.subr.bf16.mxu0 %v1754_v1  ;;  %1598 = vmatpush3.bf16.msra.mxu1 %v1726_v29 }
 0x1ed   : > { %1599 = vmatprep.subr.bf16.mxu1 %v1754_v1 }
 0x1ef   : > { %1616 = vmatpush3.bf16.msra.mxu0 %v1725_v28 }
 0x1f0   : > { %1617 = vmatprep.subr.bf16.mxu0 %v1754_v1  ;;  %1600 = vmatpush3.bf16.msra.mxu1 %v1728_v31 }
 0x1f1   : > { %1625 = vmatprep.subr.bf16.mxu1 %v1754_v1 }
 0x1f3   : > { %1618 = vmatpush3.bf16.msra.mxu0 %v1727_v30 }
 0x1f4   : > { %1619 = vmatprep.subr.bf16.mxu0 %v1754_v1 }
 0x1f7   : > { %1620 = vmatpush3.bf16.msra.mxu0 %v1729_v32 }
 0x1f8   : > { %1631 = vmatprep.subr.bf16.mxu0 %v1754_v1 }
 0x2a5   : > { %v628_v37 = vpop.f32.mrb[8].mxu0  ;;  %v732_v38 = vpop.f32.mrb[8].mxu1 }
 0x2a6   : > { %v738_v40 = vmax.f32 %v628_v37, %v732_v38  ;;  %v1557_v41 = vpop.f32.mrb[9].mxu0  ;;  %v1577_v42 = vpop.f32.mrb[9].mxu1 }
 0x2a7   : > { %v631_v43 = vpop.f32.mrb[10].mxu0  ;;  %v735_v44 = vpop.f32.mrb[10].mxu1 }
 0x2a8   : > { %739 = vst.msk [vmem:[%s1964_s24 + $0x4] sm:$0xf] %vm472_vm4, %v738_v40  ;;  %v1558_v45 = vpop.f32.mrb[11].mxu0  ;;  %v1578_v46 = vpop.f32.mrb[11].mxu1 }
 0x2ad   : > { %v789_v48 = vpop.f32.mrb[12].mxu0 }
 0x2ae   : > { %v795_v50 = vpack.c.bf16 %v789_v48, %v789_v48  ;;  %v1583_v51 = vpop.f32.mrb[13].mxu0 }
 0x2af   : > { %v792_v53 = vpop.f32.mrb[14].mxu0 }
 0x2b0   : > { %v1584_v54 = vpop.f32.mrb[15].mxu0  ;;  %1602 = vmatmul.mubr.bf16.vlgmr.msra.gmra.mrb[12].mxu1 %v795_v50  ;;  %1622 = vmatmul.mubr.bf16.vlgmr.msra.gmra.mrb[16].mxu0 %v795_v50 }
 0x2b1   : > { %1626 = vmatpush3.bf16.msra.mxu1 %v1019_v49  ;;  %1627 = vmatprep.mubr.msk.bf16.mxu1 %vm1755_vm0, %v1754_v1 }
 0x2b2   : > { %1651 = vmatprep.subr.bf16.mxu1 %v1754_v1  ;;  %1632 = vmatpush3.bf16.msra.mxu0 %v1730_v52 }
 0x2b3   : > { %1633 = vmatprep.subr.bf16.mxu0 %v1754_v1  ;;  %1647 = vmatprep.mubr.msk.bf16.mxu0 %vm1755_vm0, %v1754_v1 }
 0x2b6   : > { %1634 = vmatpush3.bf16.msra.mxu0 %v1732_v12 }
 0x2b7   : > { %1635 = vmatprep.subr.bf16.mxu0 %v1754_v1 }
 0x2b8   : > { %1628 = vmatmul.mubr.msk.bf16.vlgmr.msra.gmra.mrb[16].mxu1 %vm211_vm3, %v1014_v55 }
 0x2b9   : > { %1652 = vmatpush3.bf16.msra.mxu1 %v1731_v56  ;;  %1667 = vmatprep.mubr.msk.bf16.mxu1 %vm1755_vm0, %v1754_v1 }
 0x2ba   : > { %1653 = vmatprep.subr.bf16.mxu1 %v1754_v1  ;;  %1636 = vmatpush3.bf16.msra.mxu0 %v1734_v57 }
 0x2bb   : > { %1637 = vmatprep.subr.bf16.mxu0 %v1754_v1 }
 0x2bd   : > { %1654 = vmatpush3.bf16.msra.mxu1 %v1733_v58 }
 0x2be   : > { %1655 = vmatprep.subr.bf16.mxu1 %v1754_v1  ;;  %1638 = vmatpush3.bf16.msra.mxu0 %v1736_v59 }
 0x2bf   : > { %1639 = vmatprep.subr.bf16.mxu0 %v1754_v1 }
 0x2c1   : > { %1656 = vmatpush3.bf16.msra.mxu1 %v1735_v60 }
 0x2c2   : > { %1657 = vmatprep.subr.bf16.mxu1 %v1754_v1  ;;  %1640 = vmatpush3.bf16.msra.mxu0 %v1738_v61 }
 0x2c3   : > { %1641 = vmatprep.subr.bf16.mxu0 %v1754_v1 }
 0x2c5   : > { %1658 = vmatpush3.bf16.msra.mxu1 %v1737_v62 }
 0x2c6   : > { %1659 = vmatprep.subr.bf16.mxu1 %v1754_v1  ;;  %1642 = vmatpush3.bf16.msra.mxu0 %v1740_v0 }
 0x2c7   : > { %1643 = vmatprep.subr.bf16.mxu0 %v1754_v1 }
 0x2c9   : > { %1660 = vmatpush3.bf16.msra.mxu1 %v1739_v63 }
 0x2ca   : > { %1661 = vmatprep.subr.bf16.mxu1 %v1754_v1  ;;  %1644 = vmatpush3.bf16.msra.mxu0 %v1742_v3 }
 0x2cb   : > { %1645 = vmatprep.subr.bf16.mxu0 %v1754_v1 }
 0x2cd   : > { %1662 = vmatpush3.bf16.msra.mxu1 %v1741_v2 }
 0x2ce   : > { %1663 = vmatprep.subr.bf16.mxu1 %v1754_v1  ;;  %1646 = vmatpush3.bf16.msra.mxu0 %v1744_v5 }
 0x2d1   : > { %1664 = vmatpush3.bf16.msra.mxu1 %v1743_v4 }
 0x2d2   : > { %1665 = vmatprep.subr.bf16.mxu1 %v1754_v1 }
 0x2d5   : > { %1666 = vmatpush3.bf16.msra.mxu1 %v1745_v6 }
 0x383   : > { %v894_v7 = vpop.f32.mrb[12].mxu1  ;;  %v998_v8 = vpop.f32.mrb[16].mxu0 }
 0x384   : > { %v1004_v9 = vmax.f32 %v894_v7, %v998_v8  ;;  %v1603_v10 = vpop.f32.mrb[13].mxu1  ;;  %v1623_v11 = vpop.f32.mrb[17].mxu0 }
 0x385   : > { %v897_v13 = vpop.f32.mrb[14].mxu1  ;;  %v1001_v14 = vpop.f32.mrb[18].mxu0 }
 0x386   : > { %1005 = vst.msk [vmem:[%s1964_s24 + $0x8] sm:$0xf] %vm472_vm4, %v1004_v9  ;;  %v1604_v1 = vpop.f32.mrb[15].mxu1  ;;  %v1624_v15 = vpop.f32.mrb[19].mxu0 }
 0x38b   : > { %v1055_v16 = vpop.f32.mrb[16].mxu1 }
 0x38c   : > { %v1061_v17 = vpack.c.bf16 %v1055_v16, %v1055_v16  ;;  %v1629_v18 = vpop.f32.mrb[17].mxu1 }
 0x38d   : > { %v1058_v19 = vpop.f32.mrb[18].mxu1 }
 0x38e   : > { %v1630_v20 = vpop.f32.mrb[19].mxu1  ;;  %1648 = vmatmul.mubr.bf16.vlgmr.msra.gmra.mrb[20].mxu0 %v1061_v17  ;;  %1668 = vmatmul.mubr.bf16.vlgmr.msra.gmra.mrb[20].mxu1 %v1061_v17 }
 0x461   : > { %v1160_v21 = vpop.f32.mrb[20].mxu0  ;;  %v1264_v22 = vpop.f32.mrb[20].mxu1 }
 0x462   : > { %v1270_v23 = vmax.f32 %v1160_v21, %v1264_v22  ;;  %v1649_v24 = vpop.f32.mrb[21].mxu0  ;;  %v1669_v25 = vpop.f32.mrb[21].mxu1 }
 0x463   : > { %v1163_v26 = vpop.f32.mrb[22].mxu0  ;;  %v1267_v27 = vpop.f32.mrb[22].mxu1 }
 0x464   : > { %1271 = vst.msk [vmem:[%s1964_s24 + $0xc] sm:$0xf] %vm472_vm4, %v1270_v23  ;;  %v1650_v28 = vpop.f32.mrb[23].mxu0  ;;  %v1670_v29 = vpop.f32.mrb[23].mxu1 }
 0x465 PF: > { %s14_s15 = sadd.s32 1, %s1752_s15  }
 0x466   : > { %p11_p5 = scmp.ge.s32.totalorder %s14_s15, 4  }
 0x468   :  { %13 = sbr.rel (!%p11_p5) target bundleno = 1 (0x1), region = 66 }

</bundles_post_ra>
